<compile_context>
chip_gen: v7x
topology: tpu7x:2x2x1
jax: 0.10.0
libtpu: 0.0.40
codegen_flags: <defaults>
</compile_context>

<pallas_src>
import jax
import jax.numpy as jnp
from jax import lax
from jax.experimental import pallas as pl
from jax.experimental.pallas import tpu as pltpu

# ---------------- small ViT config (consistent with the module) --------------
IMG = 16          # img_size
PATCH = 4         # patch_size
CIN = 3           # in_channels
EMBED = 32        # embed_dim
DEPTH = 2         # depth
HEADS = 4         # num_heads
MLP_RATIO = 4.0
NUM_CLASSES = 16
BATCH = 2

HEAD_DIM = EMBED // HEADS
HIDDEN = int(EMBED * MLP_RATIO)
NUM_PATCHES = (IMG // PATCH) ** 2
SEQ = NUM_PATCHES + 1
SEQ_PAD = ((SEQ + 7) // 8) * 8          # 17 -> 24 rows (sublane multiple)
PATCH_DIM = PATCH * PATCH * CIN         # 48
EPS = 1e-5                              # PyTorch LayerNorm default
ATTN_SCALE = HEAD_DIM ** -0.5
LANE = 128                              # lane-dense slab / logits width


# ----------------------- weight-slab layout (static) --------------------------
def _build_layout():
    layout = {}
    rows = [0]

    def add(name, r, c):
        layout[name] = (rows[0], r, c)
        rows[0] += ((r + 7) // 8) * 8   # 8-row (sublane) aligned entries

    add("patch_w", PATCH_DIM, EMBED)
    add("patch_b", 1, EMBED)
    add("cls", 1, EMBED)
    add("pos", SEQ_PAD, EMBED)          # rows SEQ..SEQ_PAD-1 stay zero
    for d in range(DEPTH):
        add(f"ln1_w_{d}", 1, EMBED)
        add(f"ln1_b_{d}", 1, EMBED)
        add(f"qkv_w_{d}", EMBED, 3 * EMBED)
        add(f"qkv_b_{d}", 1, 3 * EMBED)
        add(f"proj_w_{d}", EMBED, EMBED)
        add(f"proj_b_{d}", 1, EMBED)
        add(f"ln2_w_{d}", 1, EMBED)
        add(f"ln2_b_{d}", 1, EMBED)
        add(f"fc1_w_{d}", EMBED, HIDDEN)
        add(f"fc1_b_{d}", 1, HIDDEN)
        add(f"fc2_w_{d}", HIDDEN, EMBED)
        add(f"fc2_b_{d}", 1, EMBED)
    add("ln_w", 1, EMBED)
    add("ln_b", 1, EMBED)
    add("head_w", EMBED, LANE)          # NUM_CLASSES cols padded to 128 lanes
    add("head_b", 1, LANE)
    total = ((rows[0] + 7) // 8) * 8
    return layout, total


_LAYOUT, _SLAB_ROWS = _build_layout()


def pack_slab(params):
    """Pack all parameters into one lane-dense f32 (rows, 128) slab (one DMA)."""
    slab = jnp.zeros((_SLAB_ROWS, LANE), jnp.float32)

    def put(slab, name, arr):
        arr = jnp.asarray(arr, jnp.float32)
        if arr.ndim == 1:
            arr = arr.reshape(1, -1)
        off, _, _ = _LAYOUT[name]
        r, c = arr.shape
        return slab.at[off:off + r, :c].set(arr)

    slab = put(slab, "patch_w", params["patch_w"])
    slab = put(slab, "patch_b", params["patch_b"])
    slab = put(slab, "cls", params["cls"])
    slab = put(slab, "pos", params["pos"])
    for d in range(DEPTH):
        for base in ("ln1_w", "ln1_b", "qkv_w", "qkv_b", "proj_w", "proj_b",
                     "ln2_w", "ln2_b", "fc1_w", "fc1_b", "fc2_w", "fc2_b"):
            slab = put(slab, f"{base}_{d}", params[base][d])
    slab = put(slab, "ln_w", params["ln_w"])
    slab = put(slab, "ln_b", params["ln_b"])
    slab = put(slab, "head_w", params["head_w"])
    slab = put(slab, "head_b", params["head_b"])
    return slab


# ------------------------------ fused kernel ----------------------------------
def _layernorm(h, w, b):
    mu = jnp.mean(h, axis=-1, keepdims=True)
    var = jnp.mean((h - mu) ** 2, axis=-1, keepdims=True)
    return (h - mu) * lax.rsqrt(var + EPS) * w + b


def _make_vit_kernel(b_tile):
    n_rows = b_tile * SEQ_PAD

    def kernel(patches_ref, slab_ref, o_ref):
        def W(name):                                    # static slab slice -> load
            off, r, c = _LAYOUT[name]
            return slab_ref[off:off + r, :c]

        # ---- patch embedding: one (b_tile*16, 48) x (48, 32) matmul ----
        p = patches_ref[...].reshape(b_tile * NUM_PATCHES, PATCH_DIM)
        emb = jnp.dot(p, W("patch_w"),
                      preferred_element_type=jnp.float32) + W("patch_b")

        # ---- CLS concat + positional embedding, rows padded to SEQ_PAD ----
        cls = W("cls")                                  # (1, E)
        pos = W("pos")                                  # (SEQ_PAD, E), pad rows zero
        zpad = jnp.zeros((SEQ_PAD - SEQ, EMBED), jnp.float32)
        x_list = []
        for b in range(b_tile):
            e_b = emb[b * NUM_PATCHES:(b + 1) * NUM_PATCHES, :]
            x_list.append(jnp.concatenate([cls, e_b, zpad], axis=0) + pos)
        x = x_list[0] if b_tile == 1 else jnp.concatenate(x_list, axis=0)  # (n_rows,E)

        # additive key mask: valid keys 0, padded keys -1e30
        key_ids = lax.broadcasted_iota(jnp.int32, (1, SEQ_PAD), 1)
        key_mask = jnp.where(key_ids < SEQ,
                             jnp.float32(0.0), jnp.float32(-1e30))

        # ---- transformer blocks (static unroll over DEPTH) ----
        for d in range(DEPTH):
            # -------- multi-head self-attention --------
            h = _layernorm(x, W(f"ln1_w_{d}"), W(f"ln1_b_{d}"))
            qkv = jnp.dot(h, W(f"qkv_w_{d}"),
                          preferred_element_type=jnp.float32) + W(f"qkv_b_{d}")
            proj_w = W(f"proj_w_{d}")                   # (E, E)

            attn_imgs = []
            for b in range(b_tile):
                qkv_img = qkv[b * SEQ_PAD:(b + 1) * SEQ_PAD, :]       # (24, 3E)
                acc = None
                for hh in range(HEADS):
                    lo = hh * HEAD_DIM
                    # head split = contiguous lane slices (no stack/concat)
                    q_i = qkv_img[:, lo:lo + HEAD_DIM] * jnp.float32(ATTN_SCALE)
                    k_i = qkv_img[:, EMBED + lo:EMBED + lo + HEAD_DIM]
                    v_i = qkv_img[:, 2 * EMBED + lo:2 * EMBED + lo + HEAD_DIM]
                    s = lax.dot_general(q_i, k_i, (((1,), (1,)), ((), ())),
                                        preferred_element_type=jnp.float32)
                    s = s + key_mask
                    s = s - jnp.max(s, axis=-1, keepdims=True)
                    pexp = jnp.exp(s)
                    denom = jnp.sum(pexp, axis=-1, keepdims=True)
                    o_i = jnp.dot(pexp, v_i,
                                  preferred_element_type=jnp.float32)  # (24, hd)
                    o_i = o_i / denom        # deferred (exact) softmax normalization
                    # head merge folded into the output projection
                    contrib = jnp.dot(o_i, proj_w[lo:lo + HEAD_DIM, :],
                                      preferred_element_type=jnp.float32)
                    acc = contrib if acc is None else acc + contrib
                attn_imgs.append(acc)
            attn = attn_imgs[0] if b_tile == 1 else jnp.concatenate(attn_imgs, axis=0)
            x = x + attn + W(f"proj_b_{d}")

            # -------- MLP --------
            h = _layernorm(x, W(f"ln2_w_{d}"), W(f"ln2_b_{d}"))
            h = jnp.dot(h, W(f"fc1_w_{d}"),
                        preferred_element_type=jnp.float32) + W(f"fc1_b_{d}")
            # exact GELU (erf form) to match nn.GELU() default numerics
            h = 0.5 * h * (1.0 + lax.erf(h * jnp.float32(0.7071067811865476)))
            h = jnp.dot(h, W(f"fc2_w_{d}"),
                        preferred_element_type=jnp.float32) + W(f"fc2_b_{d}")
            x = x + h

        # ---- final LayerNorm (CLS rows only) + classifier head ----
        cls_rows = [x[b * SEQ_PAD:b * SEQ_PAD + 1, :] for b in range(b_tile)]
        cls_x = cls_rows[0] if b_tile == 1 else jnp.concatenate(cls_rows, axis=0)
        cls_x = _layernorm(cls_x, W("ln_w"), W("ln_b"))
        logits = jnp.dot(cls_x, W("head_w"),
                         preferred_element_type=jnp.float32) + W("head_b")
        o_ref[0] = logits.astype(o_ref.dtype)           # lane-dense 128-wide store

    return kernel


# -------------------------------- wrapper --------------------------------------
def patchify(x):
    # 'b c (h p1) (w p2) -> b (h w) (p1 p2 c)'
    B, C, H, Wd = x.shape
    h, w = H // PATCH, Wd // PATCH
    x = x.reshape(B, C, h, PATCH, w, PATCH)
    x = x.transpose(0, 2, 4, 3, 5, 1)                   # (B, h, w, p1, p2, C)
    return x.reshape(B, h * w, PATCH * PATCH * C)


@jax.jit
def vit_forward(x, slab):
    B = x.shape[0]
    # <=2 grid steps: 2 "parallel" steps feed both v7x TensorCores; on 1-TC
    # v5e/v6e this caps per-step fixed cost at 2 steps regardless of batch size.
    b_tile = max(1, (B + 1) // 2)
    grid_b = pl.cdiv(B, b_tile)
    b_pad = grid_b * b_tile

    patches = patchify(x).astype(jnp.float32)           # (B, 16, 48)
    if b_pad != B:
        patches = jnp.pad(patches, ((0, b_pad - B), (0, 0), (0, 0)))

    out = pl.pallas_call(
        _make_vit_kernel(b_tile),
        out_shape=jax.ShapeDtypeStruct((grid_b, b_tile, LANE), jnp.float32),
        grid=(grid_b,),
        in_specs=[
            pl.BlockSpec((b_tile, NUM_PATCHES, PATCH_DIM), lambda g: (g, 0, 0)),
            # whole weight slab, constant index -> single DMA, resident in VMEM
            pl.BlockSpec((_SLAB_ROWS, LANE), lambda g: (0, 0)),
        ],
        out_specs=pl.BlockSpec((1, b_tile, LANE), lambda g: (g, 0, 0)),
        compiler_params=pltpu.CompilerParams(
            dimension_semantics=("parallel",)),
    )(patches, slab)

    return out.reshape(b_pad, LANE)[:B, :NUM_CLASSES]


# --------------------------- parameter construction ----------------------------
def init_params(key):
    def normal(k, shape):
        return 0.02 * jax.random.normal(k, shape, dtype=jnp.float32)

    keys = jax.random.split(key, 8)
    return {
        "patch_w": normal(keys[0], (PATCH_DIM, EMBED)),      # stored (in, out)
        "patch_b": jnp.zeros((1, EMBED), jnp.float32),
        "cls": normal(keys[1], (1, EMBED)),
        "pos": normal(keys[2], (SEQ, EMBED)),
        "ln_w": jnp.ones((1, EMBED), jnp.float32),
        "ln_b": jnp.zeros((1, EMBED), jnp.float32),
        "head_w": normal(keys[3], (EMBED, NUM_CLASSES)),
        "head_b": jnp.zeros((1, NUM_CLASSES), jnp.float32),
        # per-block params stacked along a leading DEPTH axis
        "ln1_w": jnp.ones((DEPTH, 1, EMBED), jnp.float32),
        "ln1_b": jnp.zeros((DEPTH, 1, EMBED), jnp.float32),
        "qkv_w": normal(keys[4], (DEPTH, EMBED, 3 * EMBED)),
        "qkv_b": jnp.zeros((DEPTH, 1, 3 * EMBED), jnp.float32),
        "proj_w": normal(keys[5], (DEPTH, EMBED, EMBED)),
        "proj_b": jnp.zeros((DEPTH, 1, EMBED), jnp.float32),
        "ln2_w": jnp.ones((DEPTH, 1, EMBED), jnp.float32),
        "ln2_b": jnp.zeros((DEPTH, 1, EMBED), jnp.float32),
        "fc1_w": normal(keys[6], (DEPTH, EMBED, HIDDEN)),
        "fc1_b": jnp.zeros((DEPTH, 1, HIDDEN), jnp.float32),
        "fc2_w": normal(keys[7], (DEPTH, HIDDEN, EMBED)),
        "fc2_b": jnp.zeros((DEPTH, 1, EMBED), jnp.float32),
    }


# ----------------------------------- main ---------------------------------------
if __name__ == "__main__":
    key = jax.random.PRNGKey(0)
    k_img, k_params = jax.random.split(key)
    images = jax.random.normal(k_img, (BATCH, CIN, IMG, IMG), dtype=jnp.float32)
    params = init_params(k_params)
    slab = pack_slab(params)                  # host-side weight packing (once)

    out = vit_forward(images, slab)
    out = jax.block_until_ready(out)
    assert out.shape == (BATCH, NUM_CLASSES)
    print("KERNEL_OK")
</pallas_src>

<mosaic_0001>
module attributes {stable_mosaic.version = 11 : i64} {
  func.func @kernel(%arg0: i32, %arg1: memref<1x16x48xf32, #tpu.memory_space<vmem>>, %arg2: memref<720x128xf32, #tpu.memory_space<vmem>>, %arg3: memref<1x1x128xf32, #tpu.memory_space<vmem>>) attributes {dimension_semantics = [#tpu.dimension_semantics<parallel>], iteration_bounds = array<i64: 2>, scalar_prefetch = 0 : i64, scratch_operands = 0 : i64, tpu.core_type = #tpu.core_type<tc>, window_params = [{transform_indices = @transform_0, window_bounds = array<i64: 1, 16, 48>}, {pipeline_mode = #tpu.pipeline_mode<synchronous>, transform_indices = @transform_1, window_bounds = array<i64: 720, 128>}, {transform_indices = @transform_2, window_bounds = array<i64: 1, 1, 128>}]} {
    %c0 = arith.constant 0 : index
    %c0_0 = arith.constant 0 : index
    %c0_1 = arith.constant 0 : index
    %0 = vector.load %arg1[%c0, %c0_0, %c0_1] : memref<1x16x48xf32, #tpu.memory_space<vmem>>, vector<1x16x48xf32>
    %1 = vector.shape_cast %0 : vector<1x16x48xf32> to vector<16x48xf32>
    %c0_2 = arith.constant 0 : index
    %c0_3 = arith.constant 0 : index
    %2 = vector.load %arg2[%c0_2, %c0_3] : memref<720x128xf32, #tpu.memory_space<vmem>>, vector<48x32xf32>
    %cst = arith.constant dense<0.000000e+00> : vector<16x32xf32>
    %3 = tpu.matmul %1, %2, %cst {dimension_numbers = #tpu.dot_dimension_numbers<[1], [0], [0], [1], [0, 0, 1, 1], [], []>} : vector<16x48xf32>, vector<48x32xf32>, vector<16x32xf32> -> vector<16x32xf32>
    %c48 = arith.constant 48 : index
    %c0_4 = arith.constant 0 : index
    %4 = vector.load %arg2[%c48, %c0_4] : memref<720x128xf32, #tpu.memory_space<vmem>>, vector<1x32xf32>
    %5 = vector.broadcast %4 : vector<1x32xf32> to vector<16x32xf32>
    %6 = arith.addf %3, %5 : vector<16x32xf32>
    %c56 = arith.constant 56 : index
    %c0_5 = arith.constant 0 : index
    %7 = vector.load %arg2[%c56, %c0_5] : memref<720x128xf32, #tpu.memory_space<vmem>>, vector<1x32xf32>
    %c64 = arith.constant 64 : index
    %c0_6 = arith.constant 0 : index
    %8 = vector.load %arg2[%c64, %c0_6] : memref<720x128xf32, #tpu.memory_space<vmem>>, vector<24x32xf32>
    %cst_7 = arith.constant 0.000000e+00 : f32
    %9 = vector.broadcast %cst_7 : f32 to vector<7x32xf32>
    %10 = tpu.concatenate %7, %6, %9 in 0 : vector<1x32xf32>, vector<16x32xf32>, vector<7x32xf32> -> vector<24x32xf32>
    %11 = arith.addf %10, %8 : vector<24x32xf32>
    %12 = tpu.iota {dimensions = array<i32: 1>} : vector<1x24xi32>
    %c17_i32 = arith.constant 17 : i32
    %13 = vector.broadcast %c17_i32 : i32 to vector<1x24xi32>
    %14 = arith.cmpi slt, %12, %13 : vector<1x24xi32>
    %cst_8 = arith.constant 0.000000e+00 : f32
    %cst_9 = arith.constant -1.000000e+30 : f32
    %15 = vector.broadcast %cst_8 : f32 to vector<1x24xf32>
    %16 = vector.broadcast %cst_9 : f32 to vector<1x24xf32>
    %17 = arith.select %14, %15, %16 : vector<1x24xi1>, vector<1x24xf32>
    %c88 = arith.constant 88 : index
    %c0_10 = arith.constant 0 : index
    %18 = vector.load %arg2[%c88, %c0_10] : memref<720x128xf32, #tpu.memory_space<vmem>>, vector<1x32xf32>
    %c96 = arith.constant 96 : index
    %c0_11 = arith.constant 0 : index
    %19 = vector.load %arg2[%c96, %c0_11] : memref<720x128xf32, #tpu.memory_space<vmem>>, vector<1x32xf32>
    %cst_12 = arith.constant dense<0.000000e+00> : vector<24xf32>
    %20 = vector.multi_reduction <add>, %11, %cst_12 [1] : vector<24x32xf32> to vector<24xf32>
    %21 = vector.shape_cast %20 : vector<24xf32> to vector<24x1xf32>
    %cst_13 = arith.constant 3.200000e+01 : f32
    %22 = vector.broadcast %cst_13 : f32 to vector<24x1xf32>
    %23 = arith.divf %21, %22 : vector<24x1xf32>
    %24 = vector.broadcast %23 : vector<24x1xf32> to vector<24x32xf32>
    %25 = arith.subf %11, %24 : vector<24x32xf32>
    %26 = arith.mulf %25, %25 : vector<24x32xf32>
    %cst_14 = arith.constant dense<0.000000e+00> : vector<24xf32>
    %27 = vector.multi_reduction <add>, %26, %cst_14 [1] : vector<24x32xf32> to vector<24xf32>
    %28 = vector.shape_cast %27 : vector<24xf32> to vector<24x1xf32>
    %cst_15 = arith.constant 3.200000e+01 : f32
    %29 = vector.broadcast %cst_15 : f32 to vector<24x1xf32>
    %30 = arith.divf %28, %29 : vector<24x1xf32>
    %31 = vector.broadcast %23 : vector<24x1xf32> to vector<24x32xf32>
    %32 = arith.subf %11, %31 : vector<24x32xf32>
    %cst_16 = arith.constant 9.99999974E-6 : f32
    %33 = vector.broadcast %cst_16 : f32 to vector<24x1xf32>
    %34 = arith.addf %30, %33 : vector<24x1xf32>
    %35 = math.rsqrt %34 : vector<24x1xf32>
    %36 = vector.broadcast %35 : vector<24x1xf32> to vector<24x32xf32>
    %37 = arith.mulf %32, %36 : vector<24x32xf32>
    %38 = vector.broadcast %18 : vector<1x32xf32> to vector<24x32xf32>
    %39 = arith.mulf %37, %38 : vector<24x32xf32>
    %40 = vector.broadcast %19 : vector<1x32xf32> to vector<24x32xf32>
    %41 = arith.addf %39, %40 : vector<24x32xf32>
    %c104 = arith.constant 104 : index
    %c0_17 = arith.constant 0 : index
    %42 = vector.load %arg2[%c104, %c0_17] : memref<720x128xf32, #tpu.memory_space<vmem>>, vector<32x96xf32>
    %cst_18 = arith.constant dense<0.000000e+00> : vector<24x96xf32>
    %43 = tpu.matmul %41, %42, %cst_18 {dimension_numbers = #tpu.dot_dimension_numbers<[1], [0], [0], [1], [0, 0, 1, 1], [], []>} : vector<24x32xf32>, vector<32x96xf32>, vector<24x96xf32> -> vector<24x96xf32>
    %c136 = arith.constant 136 : index
    %c0_19 = arith.constant 0 : index
    %44 = vector.load %arg2[%c136, %c0_19] : memref<720x128xf32, #tpu.memory_space<vmem>>, vector<1x96xf32>
    %45 = vector.broadcast %44 : vector<1x96xf32> to vector<24x96xf32>
    %46 = arith.addf %43, %45 : vector<24x96xf32>
    %c144 = arith.constant 144 : index
    %c0_20 = arith.constant 0 : index
    %47 = vector.load %arg2[%c144, %c0_20] : memref<720x128xf32, #tpu.memory_space<vmem>>, vector<32x32xf32>
    %48 = vector.extract_strided_slice %46 {offsets = [0, 0], sizes = [24, 8], strides = [1, 1]} : vector<24x96xf32> to vector<24x8xf32>
    %cst_21 = arith.constant 0.353553385 : f32
    %49 = vector.broadcast %cst_21 : f32 to vector<24x8xf32>
    %50 = arith.mulf %48, %49 : vector<24x8xf32>
    %51 = vector.extract_strided_slice %46 {offsets = [0, 32], sizes = [24, 8], strides = [1, 1]} : vector<24x96xf32> to vector<24x8xf32>
    %52 = vector.extract_strided_slice %46 {offsets = [0, 64], sizes = [24, 8], strides = [1, 1]} : vector<24x96xf32> to vector<24x8xf32>
    %cst_22 = arith.constant dense<0.000000e+00> : vector<24x24xf32>
    %53 = tpu.matmul %50, %51, %cst_22 {dimension_numbers = #tpu.dot_dimension_numbers<[1], [1], [0], [0], [0, 0, 1, 0], [], []>} : vector<24x8xf32>, vector<24x8xf32>, vector<24x24xf32> -> vector<24x24xf32>
    %54 = vector.broadcast %17 : vector<1x24xf32> to vector<24x24xf32>
    %55 = arith.addf %53, %54 : vector<24x24xf32>
    %cst_23 = arith.constant dense<0xFF800000> : vector<24xf32>
    %56 = vector.multi_reduction <maximumf>, %55, %cst_23 [1] : vector<24x24xf32> to vector<24xf32>
    %57 = vector.shape_cast %56 : vector<24xf32> to vector<24x1xf32>
    %58 = vector.broadcast %57 : vector<24x1xf32> to vector<24x24xf32>
    %59 = arith.subf %55, %58 : vector<24x24xf32>
    %60 = math.exp %59 : vector<24x24xf32>
    %cst_24 = arith.constant dense<0.000000e+00> : vector<24xf32>
    %61 = vector.multi_reduction <add>, %60, %cst_24 [1] : vector<24x24xf32> to vector<24xf32>
    %62 = vector.shape_cast %61 : vector<24xf32> to vector<24x1xf32>
    %cst_25 = arith.constant dense<0.000000e+00> : vector<24x8xf32>
    %63 = tpu.matmul %60, %52, %cst_25 {dimension_numbers = #tpu.dot_dimension_numbers<[1], [0], [0], [1], [0, 0, 1, 1], [], []>} : vector<24x24xf32>, vector<24x8xf32>, vector<24x8xf32> -> vector<24x8xf32>
    %64 = vector.broadcast %62 : vector<24x1xf32> to vector<24x8xf32>
    %65 = arith.divf %63, %64 : vector<24x8xf32>
    %66 = vector.extract_strided_slice %47 {offsets = [0, 0], sizes = [8, 32], strides = [1, 1]} : vector<32x32xf32> to vector<8x32xf32>
    %cst_26 = arith.constant dense<0.000000e+00> : vector<24x32xf32>
    %67 = tpu.matmul %65, %66, %cst_26 {dimension_numbers = #tpu.dot_dimension_numbers<[1], [0], [0], [1], [0, 0, 1, 1], [], []>} : vector<24x8xf32>, vector<8x32xf32>, vector<24x32xf32> -> vector<24x32xf32>
    %68 = vector.extract_strided_slice %46 {offsets = [0, 8], sizes = [24, 8], strides = [1, 1]} : vector<24x96xf32> to vector<24x8xf32>
    %cst_27 = arith.constant 0.353553385 : f32
    %69 = vector.broadcast %cst_27 : f32 to vector<24x8xf32>
    %70 = arith.mulf %68, %69 : vector<24x8xf32>
    %71 = vector.extract_strided_slice %46 {offsets = [0, 40], sizes = [24, 8], strides = [1, 1]} : vector<24x96xf32> to vector<24x8xf32>
    %72 = vector.extract_strided_slice %46 {offsets = [0, 72], sizes = [24, 8], strides = [1, 1]} : vector<24x96xf32> to vector<24x8xf32>
    %cst_28 = arith.constant dense<0.000000e+00> : vector<24x24xf32>
    %73 = tpu.matmul %70, %71, %cst_28 {dimension_numbers = #tpu.dot_dimension_numbers<[1], [1], [0], [0], [0, 0, 1, 0], [], []>} : vector<24x8xf32>, vector<24x8xf32>, vector<24x24xf32> -> vector<24x24xf32>
    %74 = vector.broadcast %17 : vector<1x24xf32> to vector<24x24xf32>
    %75 = arith.addf %73, %74 : vector<24x24xf32>
    %cst_29 = arith.constant dense<0xFF800000> : vector<24xf32>
    %76 = vector.multi_reduction <maximumf>, %75, %cst_29 [1] : vector<24x24xf32> to vector<24xf32>
    %77 = vector.shape_cast %76 : vector<24xf32> to vector<24x1xf32>
    %78 = vector.broadcast %77 : vector<24x1xf32> to vector<24x24xf32>
    %79 = arith.subf %75, %78 : vector<24x24xf32>
    %80 = math.exp %79 : vector<24x24xf32>
    %cst_30 = arith.constant dense<0.000000e+00> : vector<24xf32>
    %81 = vector.multi_reduction <add>, %80, %cst_30 [1] : vector<24x24xf32> to vector<24xf32>
    %82 = vector.shape_cast %81 : vector<24xf32> to vector<24x1xf32>
    %cst_31 = arith.constant dense<0.000000e+00> : vector<24x8xf32>
    %83 = tpu.matmul %80, %72, %cst_31 {dimension_numbers = #tpu.dot_dimension_numbers<[1], [0], [0], [1], [0, 0, 1, 1], [], []>} : vector<24x24xf32>, vector<24x8xf32>, vector<24x8xf32> -> vector<24x8xf32>
    %84 = vector.broadcast %82 : vector<24x1xf32> to vector<24x8xf32>
    %85 = arith.divf %83, %84 : vector<24x8xf32>
    %86 = vector.extract_strided_slice %47 {offsets = [8, 0], sizes = [8, 32], strides = [1, 1]} : vector<32x32xf32> to vector<8x32xf32>
    %cst_32 = arith.constant dense<0.000000e+00> : vector<24x32xf32>
    %87 = tpu.matmul %85, %86, %cst_32 {dimension_numbers = #tpu.dot_dimension_numbers<[1], [0], [0], [1], [0, 0, 1, 1], [], []>} : vector<24x8xf32>, vector<8x32xf32>, vector<24x32xf32> -> vector<24x32xf32>
    %88 = arith.addf %67, %87 : vector<24x32xf32>
    %89 = vector.extract_strided_slice %46 {offsets = [0, 16], sizes = [24, 8], strides = [1, 1]} : vector<24x96xf32> to vector<24x8xf32>
    %cst_33 = arith.constant 0.353553385 : f32
    %90 = vector.broadcast %cst_33 : f32 to vector<24x8xf32>
    %91 = arith.mulf %89, %90 : vector<24x8xf32>
    %92 = vector.extract_strided_slice %46 {offsets = [0, 48], sizes = [24, 8], strides = [1, 1]} : vector<24x96xf32> to vector<24x8xf32>
    %93 = vector.extract_strided_slice %46 {offsets = [0, 80], sizes = [24, 8], strides = [1, 1]} : vector<24x96xf32> to vector<24x8xf32>
    %cst_34 = arith.constant dense<0.000000e+00> : vector<24x24xf32>
    %94 = tpu.matmul %91, %92, %cst_34 {dimension_numbers = #tpu.dot_dimension_numbers<[1], [1], [0], [0], [0, 0, 1, 0], [], []>} : vector<24x8xf32>, vector<24x8xf32>, vector<24x24xf32> -> vector<24x24xf32>
    %95 = vector.broadcast %17 : vector<1x24xf32> to vector<24x24xf32>
    %96 = arith.addf %94, %95 : vector<24x24xf32>
    %cst_35 = arith.constant dense<0xFF800000> : vector<24xf32>
    %97 = vector.multi_reduction <maximumf>, %96, %cst_35 [1] : vector<24x24xf32> to vector<24xf32>
    %98 = vector.shape_cast %97 : vector<24xf32> to vector<24x1xf32>
    %99 = vector.broadcast %98 : vector<24x1xf32> to vector<24x24xf32>
    %100 = arith.subf %96, %99 : vector<24x24xf32>
    %101 = math.exp %100 : vector<24x24xf32>
    %cst_36 = arith.constant dense<0.000000e+00> : vector<24xf32>
    %102 = vector.multi_reduction <add>, %101, %cst_36 [1] : vector<24x24xf32> to vector<24xf32>
    %103 = vector.shape_cast %102 : vector<24xf32> to vector<24x1xf32>
    %cst_37 = arith.constant dense<0.000000e+00> : vector<24x8xf32>
    %104 = tpu.matmul %101, %93, %cst_37 {dimension_numbers = #tpu.dot_dimension_numbers<[1], [0], [0], [1], [0, 0, 1, 1], [], []>} : vector<24x24xf32>, vector<24x8xf32>, vector<24x8xf32> -> vector<24x8xf32>
    %105 = vector.broadcast %103 : vector<24x1xf32> to vector<24x8xf32>
    %106 = arith.divf %104, %105 : vector<24x8xf32>
    %107 = vector.extract_strided_slice %47 {offsets = [16, 0], sizes = [8, 32], strides = [1, 1]} : vector<32x32xf32> to vector<8x32xf32>
    %cst_38 = arith.constant dense<0.000000e+00> : vector<24x32xf32>
    %108 = tpu.matmul %106, %107, %cst_38 {dimension_numbers = #tpu.dot_dimension_numbers<[1], [0], [0], [1], [0, 0, 1, 1], [], []>} : vector<24x8xf32>, vector<8x32xf32>, vector<24x32xf32> -> vector<24x32xf32>
    %109 = arith.addf %88, %108 : vector<24x32xf32>
    %110 = vector.extract_strided_slice %46 {offsets = [0, 24], sizes = [24, 8], strides = [1, 1]} : vector<24x96xf32> to vector<24x8xf32>
    %cst_39 = arith.constant 0.353553385 : f32
    %111 = vector.broadcast %cst_39 : f32 to vector<24x8xf32>
    %112 = arith.mulf %110, %111 : vector<24x8xf32>
    %113 = vector.extract_strided_slice %46 {offsets = [0, 56], sizes = [24, 8], strides = [1, 1]} : vector<24x96xf32> to vector<24x8xf32>
    %114 = vector.extract_strided_slice %46 {offsets = [0, 88], sizes = [24, 8], strides = [1, 1]} : vector<24x96xf32> to vector<24x8xf32>
    %cst_40 = arith.constant dense<0.000000e+00> : vector<24x24xf32>
    %115 = tpu.matmul %112, %113, %cst_40 {dimension_numbers = #tpu.dot_dimension_numbers<[1], [1], [0], [0], [0, 0, 1, 0], [], []>} : vector<24x8xf32>, vector<24x8xf32>, vector<24x24xf32> -> vector<24x24xf32>
    %116 = vector.broadcast %17 : vector<1x24xf32> to vector<24x24xf32>
    %117 = arith.addf %115, %116 : vector<24x24xf32>
    %cst_41 = arith.constant dense<0xFF800000> : vector<24xf32>
    %118 = vector.multi_reduction <maximumf>, %117, %cst_41 [1] : vector<24x24xf32> to vector<24xf32>
    %119 = vector.shape_cast %118 : vector<24xf32> to vector<24x1xf32>
    %120 = vector.broadcast %119 : vector<24x1xf32> to vector<24x24xf32>
    %121 = arith.subf %117, %120 : vector<24x24xf32>
    %122 = math.exp %121 : vector<24x24xf32>
    %cst_42 = arith.constant dense<0.000000e+00> : vector<24xf32>
    %123 = vector.multi_reduction <add>, %122, %cst_42 [1] : vector<24x24xf32> to vector<24xf32>
    %124 = vector.shape_cast %123 : vector<24xf32> to vector<24x1xf32>
    %cst_43 = arith.constant dense<0.000000e+00> : vector<24x8xf32>
    %125 = tpu.matmul %122, %114, %cst_43 {dimension_numbers = #tpu.dot_dimension_numbers<[1], [0], [0], [1], [0, 0, 1, 1], [], []>} : vector<24x24xf32>, vector<24x8xf32>, vector<24x8xf32> -> vector<24x8xf32>
    %126 = vector.broadcast %124 : vector<24x1xf32> to vector<24x8xf32>
    %127 = arith.divf %125, %126 : vector<24x8xf32>
    %128 = vector.extract_strided_slice %47 {offsets = [24, 0], sizes = [8, 32], strides = [1, 1]} : vector<32x32xf32> to vector<8x32xf32>
    %cst_44 = arith.constant dense<0.000000e+00> : vector<24x32xf32>
    %129 = tpu.matmul %127, %128, %cst_44 {dimension_numbers = #tpu.dot_dimension_numbers<[1], [0], [0], [1], [0, 0, 1, 1], [], []>} : vector<24x8xf32>, vector<8x32xf32>, vector<24x32xf32> -> vector<24x32xf32>
    %130 = arith.addf %109, %129 : vector<24x32xf32>
    %131 = arith.addf %11, %130 : vector<24x32xf32>
    %c176 = arith.constant 176 : index
    %c0_45 = arith.constant 0 : index
    %132 = vector.load %arg2[%c176, %c0_45] : memref<720x128xf32, #tpu.memory_space<vmem>>, vector<1x32xf32>
    %133 = vector.broadcast %132 : vector<1x32xf32> to vector<24x32xf32>
    %134 = arith.addf %131, %133 : vector<24x32xf32>
    %c184 = arith.constant 184 : index
    %c0_46 = arith.constant 0 : index
    %135 = vector.load %arg2[%c184, %c0_46] : memref<720x128xf32, #tpu.memory_space<vmem>>, vector<1x32xf32>
    %c192 = arith.constant 192 : index
    %c0_47 = arith.constant 0 : index
    %136 = vector.load %arg2[%c192, %c0_47] : memref<720x128xf32, #tpu.memory_space<vmem>>, vector<1x32xf32>
    %cst_48 = arith.constant dense<0.000000e+00> : vector<24xf32>
    %137 = vector.multi_reduction <add>, %134, %cst_48 [1] : vector<24x32xf32> to vector<24xf32>
    %138 = vector.shape_cast %137 : vector<24xf32> to vector<24x1xf32>
    %cst_49 = arith.constant 3.200000e+01 : f32
    %139 = vector.broadcast %cst_49 : f32 to vector<24x1xf32>
    %140 = arith.divf %138, %139 : vector<24x1xf32>
    %141 = vector.broadcast %140 : vector<24x1xf32> to vector<24x32xf32>
    %142 = arith.subf %134, %141 : vector<24x32xf32>
    %143 = arith.mulf %142, %142 : vector<24x32xf32>
    %cst_50 = arith.constant dense<0.000000e+00> : vector<24xf32>
    %144 = vector.multi_reduction <add>, %143, %cst_50 [1] : vector<24x32xf32> to vector<24xf32>
    %145 = vector.shape_cast %144 : vector<24xf32> to vector<24x1xf32>
    %cst_51 = arith.constant 3.200000e+01 : f32
    %146 = vector.broadcast %cst_51 : f32 to vector<24x1xf32>
    %147 = arith.divf %145, %146 : vector<24x1xf32>
    %148 = vector.broadcast %140 : vector<24x1xf32> to vector<24x32xf32>
    %149 = arith.subf %134, %148 : vector<24x32xf32>
    %cst_52 = arith.constant 9.99999974E-6 : f32
    %150 = vector.broadcast %cst_52 : f32 to vector<24x1xf32>
    %151 = arith.addf %147, %150 : vector<24x1xf32>
    %152 = math.rsqrt %151 : vector<24x1xf32>
    %153 = vector.broadcast %152 : vector<24x1xf32> to vector<24x32xf32>
    %154 = arith.mulf %149, %153 : vector<24x32xf32>
    %155 = vector.broadcast %135 : vector<1x32xf32> to vector<24x32xf32>
    %156 = arith.mulf %154, %155 : vector<24x32xf32>
    %157 = vector.broadcast %136 : vector<1x32xf32> to vector<24x32xf32>
    %158 = arith.addf %156, %157 : vector<24x32xf32>
    %c200 = arith.constant 200 : index
    %c0_53 = arith.constant 0 : index
    %159 = vector.load %arg2[%c200, %c0_53] : memref<720x128xf32, #tpu.memory_space<vmem>>, vector<32x128xf32>
    %cst_54 = arith.constant dense<0.000000e+00> : vector<24x128xf32>
    %160 = tpu.matmul %158, %159, %cst_54 {dimension_numbers = #tpu.dot_dimension_numbers<[1], [0], [0], [1], [0, 0, 1, 1], [], []>} : vector<24x32xf32>, vector<32x128xf32>, vector<24x128xf32> -> vector<24x128xf32>
    %c232 = arith.constant 232 : index
    %c0_55 = arith.constant 0 : index
    %161 = vector.load %arg2[%c232, %c0_55] : memref<720x128xf32, #tpu.memory_space<vmem>>, vector<1x128xf32>
    %162 = vector.broadcast %161 : vector<1x128xf32> to vector<24x128xf32>
    %163 = arith.addf %160, %162 : vector<24x128xf32>
    %cst_56 = arith.constant 5.000000e-01 : f32
    %164 = vector.broadcast %cst_56 : f32 to vector<24x128xf32>
    %165 = arith.mulf %164, %163 : vector<24x128xf32>
    %cst_57 = arith.constant 0.707106769 : f32
    %166 = vector.broadcast %cst_57 : f32 to vector<24x128xf32>
    %167 = arith.mulf %163, %166 : vector<24x128xf32>
    %168 = math.erf %167 : vector<24x128xf32>
    %cst_58 = arith.constant 1.000000e+00 : f32
    %169 = vector.broadcast %cst_58 : f32 to vector<24x128xf32>
    %170 = arith.addf %169, %168 : vector<24x128xf32>
    %171 = arith.mulf %165, %170 : vector<24x128xf32>
    %c240 = arith.constant 240 : index
    %c0_59 = arith.constant 0 : index
    %172 = vector.load %arg2[%c240, %c0_59] : memref<720x128xf32, #tpu.memory_space<vmem>>, vector<128x32xf32>
    %cst_60 = arith.constant dense<0.000000e+00> : vector<24x32xf32>
    %173 = tpu.matmul %171, %172, %cst_60 {dimension_numbers = #tpu.dot_dimension_numbers<[1], [0], [0], [1], [0, 0, 1, 1], [], []>} : vector<24x128xf32>, vector<128x32xf32>, vector<24x32xf32> -> vector<24x32xf32>
    %c368 = arith.constant 368 : index
    %c0_61 = arith.constant 0 : index
    %174 = vector.load %arg2[%c368, %c0_61] : memref<720x128xf32, #tpu.memory_space<vmem>>, vector<1x32xf32>
    %175 = vector.broadcast %174 : vector<1x32xf32> to vector<24x32xf32>
    %176 = arith.addf %173, %175 : vector<24x32xf32>
    %177 = arith.addf %134, %176 : vector<24x32xf32>
    %c376 = arith.constant 376 : index
    %c0_62 = arith.constant 0 : index
    %178 = vector.load %arg2[%c376, %c0_62] : memref<720x128xf32, #tpu.memory_space<vmem>>, vector<1x32xf32>
    %c384 = arith.constant 384 : index
    %c0_63 = arith.constant 0 : index
    %179 = vector.load %arg2[%c384, %c0_63] : memref<720x128xf32, #tpu.memory_space<vmem>>, vector<1x32xf32>
    %cst_64 = arith.constant dense<0.000000e+00> : vector<24xf32>
    %180 = vector.multi_reduction <add>, %177, %cst_64 [1] : vector<24x32xf32> to vector<24xf32>
    %181 = vector.shape_cast %180 : vector<24xf32> to vector<24x1xf32>
    %cst_65 = arith.constant 3.200000e+01 : f32
    %182 = vector.broadcast %cst_65 : f32 to vector<24x1xf32>
    %183 = arith.divf %181, %182 : vector<24x1xf32>
    %184 = vector.broadcast %183 : vector<24x1xf32> to vector<24x32xf32>
    %185 = arith.subf %177, %184 : vector<24x32xf32>
    %186 = arith.mulf %185, %185 : vector<24x32xf32>
    %cst_66 = arith.constant dense<0.000000e+00> : vector<24xf32>
    %187 = vector.multi_reduction <add>, %186, %cst_66 [1] : vector<24x32xf32> to vector<24xf32>
    %188 = vector.shape_cast %187 : vector<24xf32> to vector<24x1xf32>
    %cst_67 = arith.constant 3.200000e+01 : f32
    %189 = vector.broadcast %cst_67 : f32 to vector<24x1xf32>
    %190 = arith.divf %188, %189 : vector<24x1xf32>
    %191 = vector.broadcast %183 : vector<24x1xf32> to vector<24x32xf32>
    %192 = arith.subf %177, %191 : vector<24x32xf32>
    %cst_68 = arith.constant 9.99999974E-6 : f32
    %193 = vector.broadcast %cst_68 : f32 to vector<24x1xf32>
    %194 = arith.addf %190, %193 : vector<24x1xf32>
    %195 = math.rsqrt %194 : vector<24x1xf32>
    %196 = vector.broadcast %195 : vector<24x1xf32> to vector<24x32xf32>
    %197 = arith.mulf %192, %196 : vector<24x32xf32>
    %198 = vector.broadcast %178 : vector<1x32xf32> to vector<24x32xf32>
    %199 = arith.mulf %197, %198 : vector<24x32xf32>
    %200 = vector.broadcast %179 : vector<1x32xf32> to vector<24x32xf32>
    %201 = arith.addf %199, %200 : vector<24x32xf32>
    %c392 = arith.constant 392 : index
    %c0_69 = arith.constant 0 : index
    %202 = vector.load %arg2[%c392, %c0_69] : memref<720x128xf32, #tpu.memory_space<vmem>>, vector<32x96xf32>
    %cst_70 = arith.constant dense<0.000000e+00> : vector<24x96xf32>
    %203 = tpu.matmul %201, %202, %cst_70 {dimension_numbers = #tpu.dot_dimension_numbers<[1], [0], [0], [1], [0, 0, 1, 1], [], []>} : vector<24x32xf32>, vector<32x96xf32>, vector<24x96xf32> -> vector<24x96xf32>
    %c424 = arith.constant 424 : index
    %c0_71 = arith.constant 0 : index
    %204 = vector.load %arg2[%c424, %c0_71] : memref<720x128xf32, #tpu.memory_space<vmem>>, vector<1x96xf32>
    %205 = vector.broadcast %204 : vector<1x96xf32> to vector<24x96xf32>
    %206 = arith.addf %203, %205 : vector<24x96xf32>
    %c432 = arith.constant 432 : index
    %c0_72 = arith.constant 0 : index
    %207 = vector.load %arg2[%c432, %c0_72] : memref<720x128xf32, #tpu.memory_space<vmem>>, vector<32x32xf32>
    %208 = vector.extract_strided_slice %206 {offsets = [0, 0], sizes = [24, 8], strides = [1, 1]} : vector<24x96xf32> to vector<24x8xf32>
    %cst_73 = arith.constant 0.353553385 : f32
    %209 = vector.broadcast %cst_73 : f32 to vector<24x8xf32>
    %210 = arith.mulf %208, %209 : vector<24x8xf32>
    %211 = vector.extract_strided_slice %206 {offsets = [0, 32], sizes = [24, 8], strides = [1, 1]} : vector<24x96xf32> to vector<24x8xf32>
    %212 = vector.extract_strided_slice %206 {offsets = [0, 64], sizes = [24, 8], strides = [1, 1]} : vector<24x96xf32> to vector<24x8xf32>
    %cst_74 = arith.constant dense<0.000000e+00> : vector<24x24xf32>
    %213 = tpu.matmul %210, %211, %cst_74 {dimension_numbers = #tpu.dot_dimension_numbers<[1], [1], [0], [0], [0, 0, 1, 0], [], []>} : vector<24x8xf32>, vector<24x8xf32>, vector<24x24xf32> -> vector<24x24xf32>
    %214 = vector.broadcast %17 : vector<1x24xf32> to vector<24x24xf32>
    %215 = arith.addf %213, %214 : vector<24x24xf32>
    %cst_75 = arith.constant dense<0xFF800000> : vector<24xf32>
    %216 = vector.multi_reduction <maximumf>, %215, %cst_75 [1] : vector<24x24xf32> to vector<24xf32>
    %217 = vector.shape_cast %216 : vector<24xf32> to vector<24x1xf32>
    %218 = vector.broadcast %217 : vector<24x1xf32> to vector<24x24xf32>
    %219 = arith.subf %215, %218 : vector<24x24xf32>
    %220 = math.exp %219 : vector<24x24xf32>
    %cst_76 = arith.constant dense<0.000000e+00> : vector<24xf32>
    %221 = vector.multi_reduction <add>, %220, %cst_76 [1] : vector<24x24xf32> to vector<24xf32>
    %222 = vector.shape_cast %221 : vector<24xf32> to vector<24x1xf32>
    %cst_77 = arith.constant dense<0.000000e+00> : vector<24x8xf32>
    %223 = tpu.matmul %220, %212, %cst_77 {dimension_numbers = #tpu.dot_dimension_numbers<[1], [0], [0], [1], [0, 0, 1, 1], [], []>} : vector<24x24xf32>, vector<24x8xf32>, vector<24x8xf32> -> vector<24x8xf32>
    %224 = vector.broadcast %222 : vector<24x1xf32> to vector<24x8xf32>
    %225 = arith.divf %223, %224 : vector<24x8xf32>
    %226 = vector.extract_strided_slice %207 {offsets = [0, 0], sizes = [8, 32], strides = [1, 1]} : vector<32x32xf32> to vector<8x32xf32>
    %cst_78 = arith.constant dense<0.000000e+00> : vector<24x32xf32>
    %227 = tpu.matmul %225, %226, %cst_78 {dimension_numbers = #tpu.dot_dimension_numbers<[1], [0], [0], [1], [0, 0, 1, 1], [], []>} : vector<24x8xf32>, vector<8x32xf32>, vector<24x32xf32> -> vector<24x32xf32>
    %228 = vector.extract_strided_slice %206 {offsets = [0, 8], sizes = [24, 8], strides = [1, 1]} : vector<24x96xf32> to vector<24x8xf32>
    %cst_79 = arith.constant 0.353553385 : f32
    %229 = vector.broadcast %cst_79 : f32 to vector<24x8xf32>
    %230 = arith.mulf %228, %229 : vector<24x8xf32>
    %231 = vector.extract_strided_slice %206 {offsets = [0, 40], sizes = [24, 8], strides = [1, 1]} : vector<24x96xf32> to vector<24x8xf32>
    %232 = vector.extract_strided_slice %206 {offsets = [0, 72], sizes = [24, 8], strides = [1, 1]} : vector<24x96xf32> to vector<24x8xf32>
    %cst_80 = arith.constant dense<0.000000e+00> : vector<24x24xf32>
    %233 = tpu.matmul %230, %231, %cst_80 {dimension_numbers = #tpu.dot_dimension_numbers<[1], [1], [0], [0], [0, 0, 1, 0], [], []>} : vector<24x8xf32>, vector<24x8xf32>, vector<24x24xf32> -> vector<24x24xf32>
    %234 = vector.broadcast %17 : vector<1x24xf32> to vector<24x24xf32>
    %235 = arith.addf %233, %234 : vector<24x24xf32>
    %cst_81 = arith.constant dense<0xFF800000> : vector<24xf32>
    %236 = vector.multi_reduction <maximumf>, %235, %cst_81 [1] : vector<24x24xf32> to vector<24xf32>
    %237 = vector.shape_cast %236 : vector<24xf32> to vector<24x1xf32>
    %238 = vector.broadcast %237 : vector<24x1xf32> to vector<24x24xf32>
    %239 = arith.subf %235, %238 : vector<24x24xf32>
    %240 = math.exp %239 : vector<24x24xf32>
    %cst_82 = arith.constant dense<0.000000e+00> : vector<24xf32>
    %241 = vector.multi_reduction <add>, %240, %cst_82 [1] : vector<24x24xf32> to vector<24xf32>
    %242 = vector.shape_cast %241 : vector<24xf32> to vector<24x1xf32>
    %cst_83 = arith.constant dense<0.000000e+00> : vector<24x8xf32>
    %243 = tpu.matmul %240, %232, %cst_83 {dimension_numbers = #tpu.dot_dimension_numbers<[1], [0], [0], [1], [0, 0, 1, 1], [], []>} : vector<24x24xf32>, vector<24x8xf32>, vector<24x8xf32> -> vector<24x8xf32>
    %244 = vector.broadcast %242 : vector<24x1xf32> to vector<24x8xf32>
    %245 = arith.divf %243, %244 : vector<24x8xf32>
    %246 = vector.extract_strided_slice %207 {offsets = [8, 0], sizes = [8, 32], strides = [1, 1]} : vector<32x32xf32> to vector<8x32xf32>
    %cst_84 = arith.constant dense<0.000000e+00> : vector<24x32xf32>
    %247 = tpu.matmul %245, %246, %cst_84 {dimension_numbers = #tpu.dot_dimension_numbers<[1], [0], [0], [1], [0, 0, 1, 1], [], []>} : vector<24x8xf32>, vector<8x32xf32>, vector<24x32xf32> -> vector<24x32xf32>
    %248 = arith.addf %227, %247 : vector<24x32xf32>
    %249 = vector.extract_strided_slice %206 {offsets = [0, 16], sizes = [24, 8], strides = [1, 1]} : vector<24x96xf32> to vector<24x8xf32>
    %cst_85 = arith.constant 0.353553385 : f32
    %250 = vector.broadcast %cst_85 : f32 to vector<24x8xf32>
    %251 = arith.mulf %249, %250 : vector<24x8xf32>
    %252 = vector.extract_strided_slice %206 {offsets = [0, 48], sizes = [24, 8], strides = [1, 1]} : vector<24x96xf32> to vector<24x8xf32>
    %253 = vector.extract_strided_slice %206 {offsets = [0, 80], sizes = [24, 8], strides = [1, 1]} : vector<24x96xf32> to vector<24x8xf32>
    %cst_86 = arith.constant dense<0.000000e+00> : vector<24x24xf32>
    %254 = tpu.matmul %251, %252, %cst_86 {dimension_numbers = #tpu.dot_dimension_numbers<[1], [1], [0], [0], [0, 0, 1, 0], [], []>} : vector<24x8xf32>, vector<24x8xf32>, vector<24x24xf32> -> vector<24x24xf32>
    %255 = vector.broadcast %17 : vector<1x24xf32> to vector<24x24xf32>
    %256 = arith.addf %254, %255 : vector<24x24xf32>
    %cst_87 = arith.constant dense<0xFF800000> : vector<24xf32>
    %257 = vector.multi_reduction <maximumf>, %256, %cst_87 [1] : vector<24x24xf32> to vector<24xf32>
    %258 = vector.shape_cast %257 : vector<24xf32> to vector<24x1xf32>
    %259 = vector.broadcast %258 : vector<24x1xf32> to vector<24x24xf32>
    %260 = arith.subf %256, %259 : vector<24x24xf32>
    %261 = math.exp %260 : vector<24x24xf32>
    %cst_88 = arith.constant dense<0.000000e+00> : vector<24xf32>
    %262 = vector.multi_reduction <add>, %261, %cst_88 [1] : vector<24x24xf32> to vector<24xf32>
    %263 = vector.shape_cast %262 : vector<24xf32> to vector<24x1xf32>
    %cst_89 = arith.constant dense<0.000000e+00> : vector<24x8xf32>
    %264 = tpu.matmul %261, %253, %cst_89 {dimension_numbers = #tpu.dot_dimension_numbers<[1], [0], [0], [1], [0, 0, 1, 1], [], []>} : vector<24x24xf32>, vector<24x8xf32>, vector<24x8xf32> -> vector<24x8xf32>
    %265 = vector.broadcast %263 : vector<24x1xf32> to vector<24x8xf32>
    %266 = arith.divf %264, %265 : vector<24x8xf32>
    %267 = vector.extract_strided_slice %207 {offsets = [16, 0], sizes = [8, 32], strides = [1, 1]} : vector<32x32xf32> to vector<8x32xf32>
    %cst_90 = arith.constant dense<0.000000e+00> : vector<24x32xf32>
    %268 = tpu.matmul %266, %267, %cst_90 {dimension_numbers = #tpu.dot_dimension_numbers<[1], [0], [0], [1], [0, 0, 1, 1], [], []>} : vector<24x8xf32>, vector<8x32xf32>, vector<24x32xf32> -> vector<24x32xf32>
    %269 = arith.addf %248, %268 : vector<24x32xf32>
    %270 = vector.extract_strided_slice %206 {offsets = [0, 24], sizes = [24, 8], strides = [1, 1]} : vector<24x96xf32> to vector<24x8xf32>
    %cst_91 = arith.constant 0.353553385 : f32
    %271 = vector.broadcast %cst_91 : f32 to vector<24x8xf32>
    %272 = arith.mulf %270, %271 : vector<24x8xf32>
    %273 = vector.extract_strided_slice %206 {offsets = [0, 56], sizes = [24, 8], strides = [1, 1]} : vector<24x96xf32> to vector<24x8xf32>
    %274 = vector.extract_strided_slice %206 {offsets = [0, 88], sizes = [24, 8], strides = [1, 1]} : vector<24x96xf32> to vector<24x8xf32>
    %cst_92 = arith.constant dense<0.000000e+00> : vector<24x24xf32>
    %275 = tpu.matmul %272, %273, %cst_92 {dimension_numbers = #tpu.dot_dimension_numbers<[1], [1], [0], [0], [0, 0, 1, 0], [], []>} : vector<24x8xf32>, vector<24x8xf32>, vector<24x24xf32> -> vector<24x24xf32>
    %276 = vector.broadcast %17 : vector<1x24xf32> to vector<24x24xf32>
    %277 = arith.addf %275, %276 : vector<24x24xf32>
    %cst_93 = arith.constant dense<0xFF800000> : vector<24xf32>
    %278 = vector.multi_reduction <maximumf>, %277, %cst_93 [1] : vector<24x24xf32> to vector<24xf32>
    %279 = vector.shape_cast %278 : vector<24xf32> to vector<24x1xf32>
    %280 = vector.broadcast %279 : vector<24x1xf32> to vector<24x24xf32>
    %281 = arith.subf %277, %280 : vector<24x24xf32>
    %282 = math.exp %281 : vector<24x24xf32>
    %cst_94 = arith.constant dense<0.000000e+00> : vector<24xf32>
    %283 = vector.multi_reduction <add>, %282, %cst_94 [1] : vector<24x24xf32> to vector<24xf32>
    %284 = vector.shape_cast %283 : vector<24xf32> to vector<24x1xf32>
    %cst_95 = arith.constant dense<0.000000e+00> : vector<24x8xf32>
    %285 = tpu.matmul %282, %274, %cst_95 {dimension_numbers = #tpu.dot_dimension_numbers<[1], [0], [0], [1], [0, 0, 1, 1], [], []>} : vector<24x24xf32>, vector<24x8xf32>, vector<24x8xf32> -> vector<24x8xf32>
    %286 = vector.broadcast %284 : vector<24x1xf32> to vector<24x8xf32>
    %287 = arith.divf %285, %286 : vector<24x8xf32>
    %288 = vector.extract_strided_slice %207 {offsets = [24, 0], sizes = [8, 32], strides = [1, 1]} : vector<32x32xf32> to vector<8x32xf32>
    %cst_96 = arith.constant dense<0.000000e+00> : vector<24x32xf32>
    %289 = tpu.matmul %287, %288, %cst_96 {dimension_numbers = #tpu.dot_dimension_numbers<[1], [0], [0], [1], [0, 0, 1, 1], [], []>} : vector<24x8xf32>, vector<8x32xf32>, vector<24x32xf32> -> vector<24x32xf32>
    %290 = arith.addf %269, %289 : vector<24x32xf32>
    %291 = arith.addf %177, %290 : vector<24x32xf32>
    %c464 = arith.constant 464 : index
    %c0_97 = arith.constant 0 : index
    %292 = vector.load %arg2[%c464, %c0_97] : memref<720x128xf32, #tpu.memory_space<vmem>>, vector<1x32xf32>
    %293 = vector.broadcast %292 : vector<1x32xf32> to vector<24x32xf32>
    %294 = arith.addf %291, %293 : vector<24x32xf32>
    %c472 = arith.constant 472 : index
    %c0_98 = arith.constant 0 : index
    %295 = vector.load %arg2[%c472, %c0_98] : memref<720x128xf32, #tpu.memory_space<vmem>>, vector<1x32xf32>
    %c480 = arith.constant 480 : index
    %c0_99 = arith.constant 0 : index
    %296 = vector.load %arg2[%c480, %c0_99] : memref<720x128xf32, #tpu.memory_space<vmem>>, vector<1x32xf32>
    %cst_100 = arith.constant dense<0.000000e+00> : vector<24xf32>
    %297 = vector.multi_reduction <add>, %294, %cst_100 [1] : vector<24x32xf32> to vector<24xf32>
    %298 = vector.shape_cast %297 : vector<24xf32> to vector<24x1xf32>
    %cst_101 = arith.constant 3.200000e+01 : f32
    %299 = vector.broadcast %cst_101 : f32 to vector<24x1xf32>
    %300 = arith.divf %298, %299 : vector<24x1xf32>
    %301 = vector.broadcast %300 : vector<24x1xf32> to vector<24x32xf32>
    %302 = arith.subf %294, %301 : vector<24x32xf32>
    %303 = arith.mulf %302, %302 : vector<24x32xf32>
    %cst_102 = arith.constant dense<0.000000e+00> : vector<24xf32>
    %304 = vector.multi_reduction <add>, %303, %cst_102 [1] : vector<24x32xf32> to vector<24xf32>
    %305 = vector.shape_cast %304 : vector<24xf32> to vector<24x1xf32>
    %cst_103 = arith.constant 3.200000e+01 : f32
    %306 = vector.broadcast %cst_103 : f32 to vector<24x1xf32>
    %307 = arith.divf %305, %306 : vector<24x1xf32>
    %308 = vector.broadcast %300 : vector<24x1xf32> to vector<24x32xf32>
    %309 = arith.subf %294, %308 : vector<24x32xf32>
    %cst_104 = arith.constant 9.99999974E-6 : f32
    %310 = vector.broadcast %cst_104 : f32 to vector<24x1xf32>
    %311 = arith.addf %307, %310 : vector<24x1xf32>
    %312 = math.rsqrt %311 : vector<24x1xf32>
    %313 = vector.broadcast %312 : vector<24x1xf32> to vector<24x32xf32>
    %314 = arith.mulf %309, %313 : vector<24x32xf32>
    %315 = vector.broadcast %295 : vector<1x32xf32> to vector<24x32xf32>
    %316 = arith.mulf %314, %315 : vector<24x32xf32>
    %317 = vector.broadcast %296 : vector<1x32xf32> to vector<24x32xf32>
    %318 = arith.addf %316, %317 : vector<24x32xf32>
    %c488 = arith.constant 488 : index
    %c0_105 = arith.constant 0 : index
    %319 = vector.load %arg2[%c488, %c0_105] : memref<720x128xf32, #tpu.memory_space<vmem>>, vector<32x128xf32>
    %cst_106 = arith.constant dense<0.000000e+00> : vector<24x128xf32>
    %320 = tpu.matmul %318, %319, %cst_106 {dimension_numbers = #tpu.dot_dimension_numbers<[1], [0], [0], [1], [0, 0, 1, 1], [], []>} : vector<24x32xf32>, vector<32x128xf32>, vector<24x128xf32> -> vector<24x128xf32>
    %c520 = arith.constant 520 : index
    %c0_107 = arith.constant 0 : index
    %321 = vector.load %arg2[%c520, %c0_107] : memref<720x128xf32, #tpu.memory_space<vmem>>, vector<1x128xf32>
    %322 = vector.broadcast %321 : vector<1x128xf32> to vector<24x128xf32>
    %323 = arith.addf %320, %322 : vector<24x128xf32>
    %cst_108 = arith.constant 5.000000e-01 : f32
    %324 = vector.broadcast %cst_108 : f32 to vector<24x128xf32>
    %325 = arith.mulf %324, %323 : vector<24x128xf32>
    %cst_109 = arith.constant 0.707106769 : f32
    %326 = vector.broadcast %cst_109 : f32 to vector<24x128xf32>
    %327 = arith.mulf %323, %326 : vector<24x128xf32>
    %328 = math.erf %327 : vector<24x128xf32>
    %cst_110 = arith.constant 1.000000e+00 : f32
    %329 = vector.broadcast %cst_110 : f32 to vector<24x128xf32>
    %330 = arith.addf %329, %328 : vector<24x128xf32>
    %331 = arith.mulf %325, %330 : vector<24x128xf32>
    %c528 = arith.constant 528 : index
    %c0_111 = arith.constant 0 : index
    %332 = vector.load %arg2[%c528, %c0_111] : memref<720x128xf32, #tpu.memory_space<vmem>>, vector<128x32xf32>
    %cst_112 = arith.constant dense<0.000000e+00> : vector<24x32xf32>
    %333 = tpu.matmul %331, %332, %cst_112 {dimension_numbers = #tpu.dot_dimension_numbers<[1], [0], [0], [1], [0, 0, 1, 1], [], []>} : vector<24x128xf32>, vector<128x32xf32>, vector<24x32xf32> -> vector<24x32xf32>
    %c656 = arith.constant 656 : index
    %c0_113 = arith.constant 0 : index
    %334 = vector.load %arg2[%c656, %c0_113] : memref<720x128xf32, #tpu.memory_space<vmem>>, vector<1x32xf32>
    %335 = vector.broadcast %334 : vector<1x32xf32> to vector<24x32xf32>
    %336 = arith.addf %333, %335 : vector<24x32xf32>
    %337 = arith.addf %294, %336 : vector<24x32xf32>
    %338 = vector.extract_strided_slice %337 {offsets = [0, 0], sizes = [1, 32], strides = [1, 1]} : vector<24x32xf32> to vector<1x32xf32>
    %c664 = arith.constant 664 : index
    %c0_114 = arith.constant 0 : index
    %339 = vector.load %arg2[%c664, %c0_114] : memref<720x128xf32, #tpu.memory_space<vmem>>, vector<1x32xf32>
    %c672 = arith.constant 672 : index
    %c0_115 = arith.constant 0 : index
    %340 = vector.load %arg2[%c672, %c0_115] : memref<720x128xf32, #tpu.memory_space<vmem>>, vector<1x32xf32>
    %cst_116 = arith.constant dense<0.000000e+00> : vector<1xf32>
    %341 = vector.multi_reduction <add>, %338, %cst_116 [1] : vector<1x32xf32> to vector<1xf32>
    %342 = vector.shape_cast %341 : vector<1xf32> to vector<1x1xf32>
    %cst_117 = arith.constant 3.200000e+01 : f32
    %343 = vector.broadcast %cst_117 : f32 to vector<1x1xf32>
    %344 = arith.divf %342, %343 : vector<1x1xf32>
    %345 = vector.broadcast %344 : vector<1x1xf32> to vector<1x32xf32>
    %346 = arith.subf %338, %345 : vector<1x32xf32>
    %347 = arith.mulf %346, %346 : vector<1x32xf32>
    %cst_118 = arith.constant dense<0.000000e+00> : vector<1xf32>
    %348 = vector.multi_reduction <add>, %347, %cst_118 [1] : vector<1x32xf32> to vector<1xf32>
    %349 = vector.shape_cast %348 : vector<1xf32> to vector<1x1xf32>
    %cst_119 = arith.constant 3.200000e+01 : f32
    %350 = vector.broadcast %cst_119 : f32 to vector<1x1xf32>
    %351 = arith.divf %349, %350 : vector<1x1xf32>
    %352 = vector.broadcast %344 : vector<1x1xf32> to vector<1x32xf32>
    %353 = arith.subf %338, %352 : vector<1x32xf32>
    %cst_120 = arith.constant 9.99999974E-6 : f32
    %354 = vector.broadcast %cst_120 : f32 to vector<1x1xf32>
    %355 = arith.addf %351, %354 : vector<1x1xf32>
    %356 = math.rsqrt %355 : vector<1x1xf32>
    %357 = vector.broadcast %356 : vector<1x1xf32> to vector<1x32xf32>
    %358 = arith.mulf %353, %357 : vector<1x32xf32>
    %359 = arith.mulf %358, %339 : vector<1x32xf32>
    %360 = arith.addf %359, %340 : vector<1x32xf32>
    %c680 = arith.constant 680 : index
    %c0_121 = arith.constant 0 : index
    %361 = vector.load %arg2[%c680, %c0_121] : memref<720x128xf32, #tpu.memory_space<vmem>>, vector<32x128xf32>
    %cst_122 = arith.constant dense<0.000000e+00> : vector<1x128xf32>
    %362 = tpu.matmul %360, %361, %cst_122 {dimension_numbers = #tpu.dot_dimension_numbers<[1], [0], [0], [1], [0, 0, 1, 1], [], []>} : vector<1x32xf32>, vector<32x128xf32>, vector<1x128xf32> -> vector<1x128xf32>
    %c712 = arith.constant 712 : index
    %c0_123 = arith.constant 0 : index
    %363 = vector.load %arg2[%c712, %c0_123] : memref<720x128xf32, #tpu.memory_space<vmem>>, vector<1x128xf32>
    %364 = arith.addf %362, %363 : vector<1x128xf32>
    %c0_124 = arith.constant 0 : index
    %c0_125 = arith.constant 0 : index
    %c0_126 = arith.constant 0 : index
    %365 = vector.load %arg3[%c0_124, %c0_125, %c0_126] : memref<1x1x128xf32, #tpu.memory_space<vmem>>, vector<1x1x128xf32>
    %366 = vector.shape_cast %365 : vector<1x1x128xf32> to vector<1x128xf32>
    %367 = vector.shape_cast %364 : vector<1x128xf32> to vector<1x1x128xf32>
    tpu.vector_store %arg3[%c0_124, %c0_125, %c0_126], %367 {strides = array<i32>} : memref<1x1x128xf32, #tpu.memory_space<vmem>>, vector<1x1x128xf32>,
    return
  }
  func.func @transform_0(%arg0: i32) -> (i32, i32, i32) {
    %c0_i32 = arith.constant 0 : i32
    %c0_i32_0 = arith.constant 0 : i32
    %c0_i32_1 = arith.constant 0 : i32
    return %arg0, %c0_i32, %c0_i32_0 : i32, i32, i32
  }
  func.func @transform_1(%arg0: i32) -> (i32, i32) {
    %c0_i32 = arith.constant 0 : i32
    %c0_i32_0 = arith.constant 0 : i32
    %c0_i32_1 = arith.constant 0 : i32
    return %c0_i32, %c0_i32_0 : i32, i32
  }
  func.func @transform_2(%arg0: i32) -> (i32, i32, i32) {
    %c0_i32 = arith.constant 0 : i32
    %c0_i32_0 = arith.constant 0 : i32
    %c0_i32_1 = arith.constant 0 : i32
    return %arg0, %c0_i32, %c0_i32_0 : i32, i32, i32
  }
}

</mosaic_0001>

<bundles_post_ra>
// kernel: vit_forward.1
= control target key start
LH: loop header
LB: loop body
LE: loop exit
PB: predicated region body
PF: predicated region fallthrough
CT: control target
= control target key end

     0   :  { %7 = vsyncpa [#allocation3], 0  ;;  %s6347_s0 = inlined_call_operand.vmem [shape: f32[2,16,48], index: 0, kind: input, shape index: {}]   ;;  %s6348_s1 = inlined_call_operand.vmem [shape: f32[720,128], index: 1, kind: input, shape index: {}]   ;;  %s6349_s2 = inlined_call_operand.hbm [shape: f32[2,1,128], index: 2, kind: output, shape index: {}]  }
   0x1   :  { %9 = vsyncpa [#allocation3 + $0x1], 0  ;;  %s5271_s9 = smov 0   ;;  %s5273_s10 = smov 0  }
   0x2   :  { %s5275_s11 = smov 0   ;;  %s5277_s12 = smov 0  }
   0x3 LB: > { %s5292_s13 = sadd.s32 4294967295, %s5238_s12   ;;  %s3913_s14 = sadd.s32 4294967294, %s5238_s12   ;;  %s5238_s12 = sphi %s5277_s12, %s6363_s12   ;;  %s5234_s11 = sphi %s5275_s11, %s6362_s11   ;;  %s5230_s10 = sphi %s5273_s10, %s6361_s10   ;;  %s5226_s9 = sphi %s5271_s9, %s6360_s9  }
   0x4   : > { %s5296_s15 = sadd.s32 1, %s5238_s12   ;;  %s69_s16 = sadd.s32 1, %s5234_s11 }
   0x5   : > { %s66_s17 = ssub.s32 %s5238_s12, %s5296_s15  ;;  %p79_p0 = scmp.ne.s32.totalorder %s5234_s11, %s5230_s10 }
   0x6   : > { %p67_p1 = scmp.eq.s32.totalorder %s66_s17, 0  ;;  %p80_p2 = scmp.eq.s32.totalorder %s5292_s13, 1 }
   0x7   : > { %p85_p3 = scmp.ne.s32.totalorder %s5230_s10, %s5226_s9  ;;  %p86_p4 = scmp.eq.s32.totalorder %s3913_s14, 1 }
   0x8   : > { %s5307_s18 = scalar_select %p67_p1, %s5234_s11, %s69_s16  }
   0x9   : > { %p5309_p5 = por %p80_p2, %p79_p0  ;;  %p5313_p6 = por %p86_p4, %p85_p3 }
   0xa   : > { %p3916_p7 = scmp.ge.s32.totalorder %s5238_s12, 1  ;;  %p115_p8 = scmp.lt.s32.totalorder %s5238_s12, 3 }
   0xc   : > { %p116_p9 = pnand %p3916_p7, %p115_p8 }
   0xd   : > { %v143_v0 = vld [vmem:[%s6348_s1] sm:$0xff] (!%p116_p9)  ;;  %v144_v1 = vld [vmem:[%s6348_s1 + $0x8] sm:$0xff] (!%p116_p9)  ;;  %v145_v2 = vld [vmem:[%s6348_s1 + $0x10] sm:$0xff] (!%p116_p9)  ;;  %p136_p10 = scmp.lt.s32.totalorder (!%p116_p9), %s5292_s13, 1  ;;  %vm154_vm0 = vcmask (!%p116_p9), 392192   ;;  %vm242_vm1 = vcmask (!%p116_p9), 1040384  }
   0xe   : > { %119 = sbr.rel (%p116_p9) target bundleno = 7668 (0x1df4), region = 28  ;;  %v4762_v3 = vpack.c.bf16 (!%p116_p9), %v144_v1, %v143_v0  ;;  %v146_v4 = vld [vmem:[%s6348_s1 + $0x18] sm:$0xff] (!%p116_p9)  ;;  %v147_v6 = vld [vmem:[%s6348_s1 + $0x20] sm:$0xff] (!%p116_p9)  ;;  %v148_v7 = vld [vmem:[%s6348_s1 + $0x28] sm:$0xff] (!%p116_p9)  ;;  %vm260_vm2 = vcmask (!%p116_p9), 261120   ;;  %v5240_v49 = vmov (!%p116_p9), 0.0|0.0  }
   0xf   : > { %v4766_v5 = vpack.c.bf16 (!%p116_p9), %v146_v4, %v145_v2  ;;  %v4770_v8 = vpack.c.bf16 (!%p116_p9), %v148_v7, %v147_v6  ;;  %v3919_v11 = vld [vmem:[%s6348_s1 + $0x30] ss:$0 sm:$0xff] (!%p116_p9)  ;;  %v236_v18 = vld [vmem:[%s6348_s1 + $0x38] sm:$0x1] (!%p116_p9)  ;;  %v237_v20 = vld [vmem:[%s6348_s1 + $0x40] sm:$0xff] (!%p116_p9)  ;;  %4774 = vmatprep.subr.bf16.mxu1 (!%p116_p9), %v5240_v49  ;;  %vm5241_vm3 = vmmov (!%p116_p9), 0  }
  0x10   : > { %4763 = vmatprep.subr.bf16.mxu0 (!%p116_p9), %v4762_v3  ;;  %v239_v16 = vld [vmem:[%s6348_s1 + $0x50] sm:$0xff] (!%p116_p9)  ;;  %v238_v25 = vld [vmem:[%s6348_s1 + $0x48] sm:$0xff] (!%p116_p9)  ;;  %v317_v48 = vld [vmem:[%s6348_s1 + $0x78] sm:$0xff] (!%p116_p9)  ;;  %v5242_v52 = vmov (!%p116_p9), 0.0   ;;  %s5243_s24 = smov (!%p116_p9), 96   ;;  %s5244_s25 = smov (!%p116_p9), 64  }
  0x11   : > { %4765 = vmatpush3.bf16.msra.mxu0 (!%p116_p9), %v4762_v3  ;;  %v315_v46 = vld [vmem:[%s6348_s1 + $0x68] sm:$0xff] (!%p116_p9)  ;;  %v316_v47 = vld [vmem:[%s6348_s1 + $0x70] sm:$0xff] (!%p116_p9)  ;;  %v318_v51 = vld [vmem:[%s6348_s1 + $0x80] sm:$0xff] (!%p116_p9)  ;;  %4281 = vmatprep.mubr.msk.f32.mxu1 (!%p116_p9), %vm5241_vm3, %v5242_v52  ;;  %vm429_vm4 = vcmask (!%p116_p9), 64512   ;;  %vm525_vm7 = vcmask (!%p116_p9), 195584   ;;  %s5246_s26 = smov (!%p116_p9), 88  }
  0x12   : > { %4767 = vmatprep.subr.bf16.mxu0 (!%p116_p9), %v4766_v5  ;;  %v4775_v50 = vpack.c.bf16 (!%p116_p9), %v316_v47, %v315_v46  ;;  %v4778_v53 = vpack.c.bf16 (!%p116_p9), %v318_v51, %v317_v48  ;;  %v3922_v0 = vld [vmem:[%s6348_s1 + $0x58] ss:$0 sm:$0xff] (!%p116_p9)  ;;  %v3923_v2 = vld [vmem:[%s6348_s1 + $0x60] ss:$0 sm:$0xff] (!%p116_p9)  ;;  %vm5425_vm5 = vmpackc.low (!%p116_p9), %vm429_vm4, %vm429_vm4  ;;  %s5247_s27 = smov (!%p116_p9), 120   ;;  %s5248_s28 = smov (!%p116_p9), 56  }
  0x13   : > { %s5249_s29 = smov (!%p116_p9), 80   ;;  %s5250_s30 = smov (!%p116_p9), 112   ;;  %vm3750_vm8 = vcmask (!%p116_p9), 253952  }
  0x14   : > { %4776 = vmatpush3.bf16.msra.mxu1 (!%p116_p9), %v4775_v50  ;;  %s5251_s3 = smov (!%p116_p9), 48   ;;  %s5252_s8 = smov (!%p116_p9), 72  }
  0x15   : > { %s137_s5 = scalar_select %p136_p10, %s5292_s13, 1  ;;  %4769 = vmatpush3.bf16.msra.mxu0 %v4766_v5  ;;  %4777 = vmatprep.subr.bf16.mxu1 %v5240_v49 }
  0x16   : > { %4771 = vmatprep.subr.bf16.mxu0 %v4770_v8  ;;  %s6350_s21 = smov 40  }
  0x17   : > { %s4050_s6 = sshll.u32 %s137_s5, 4 }
  0x18   : > { %s140_s14 = scalar_lea.vmem %s6347_s0, %s4050_s6  ;;  %4779 = vmatpush3.bf16.msra.mxu1 %v4778_v53  ;;  %s134_s6 = sand.u32 1, %s5230_s10  }
  0x19   : > { %v141_v9 = vld [vmem:[%s140_s14] sm:$0xff]  ;;  %4773 = vmatpush3.bf16.msra.mxu0 %v4770_v8  ;;  %v142_v10 = vld [vmem:[%s140_s14 + $0x8] sm:$0xff]  ;;  %4780 = vmatprep.subr.bf16.mxu1 %v5240_v49  ;;  %s6352_s14 = smov 104  }
  0x1a   : > { %4270 = vmatprep.mubr.msk.f32.mxu0 %vm154_vm0, %v141_v9  ;;  %4784 = vmatprep.subr.bf16.mxu0 %v5240_v49 }
  0x1c   : > { %4271 = vmatmul.mubr.msk.f32.vlgmr.msra.gmra.mrb[0].mxu0 %vm154_vm0, %v142_v10 }
  0x1d   : > { %4311 = vmatprep.mubr.msk.f32.mxu0 %vm5241_vm3, %v5242_v52 }
  0xef   : > { %v4272_v12 = vpop.f32.mrb[0].mxu0 }
  0xf0   : > { %v233_v13 = vadd.f32 %v4272_v12, %v3919_v11  ;;  %v227_v14 = vpop.f32.mrb[1].mxu0 }
  0xf1   : > { %v228_v15 = vadd.f32 %v3919_v11, %v227_v14 }
  0xf2   : > { %v244_v17 = vrot.slane %v233_v13, 7 }
  0xf3   : > { %v243_v19 = vrot.slane %v228_v15, 7  ;;  %v3924_v15 = vld [vmem:[%s6348_s1 + $0x88] ss:$0 sm:$0xff] }
  0xf4   : > { %v250_v21 = vsel %vm242_vm1, %v244_v17, 0.0 }
  0xf5   : > { %v5354_v22 = vadd.f32 %v250_v21, %v239_v16  ;;  %v245_v23 = vsel %vm242_vm1, %v243_v19, %v244_v17  ;;  %v249_v24 = vsel %vm242_vm1, %v236_v18, %v243_v19 }
  0xf6   : > { %v5359_v26 = vadd.f32 %v249_v24, %v237_v20  ;;  %v5365_v29 = vadd.f32 %v245_v23, %v238_v25 }
  0xf7   : > { %v267_v27 = vsel %vm260_vm2, %v5354_v22, 0.0 }
  0xf8   : > { %268 = vadd.xlane.f32.xlu1 %v267_v27  ;;  %v261_v28 = vsel %vm260_vm2, %v5359_v26, 0.0  ;;  %v264_v30 = vsel %vm260_vm2, %v5365_v29, 0.0 }
  0xf9   : > { %262 = vadd.xlane.f32.xlu0 %v261_v28 }
  0xfd   : > { %265 = vadd.xlane.f32.xlu0 %v264_v30 }
 0x185   : > { %v269_v31 = vpop.xlane.xlu1 %268 }
 0x186   : > { %v273_v32 = vmul.f32 0.03125, %v269_v31  ;;  %v263_v33 = vpop.xlane.xlu0 %262  ;;  %v2162_v31 = vld [vmem:[%s6348_s1 + $0x1c0] sm:$0xff] }
 0x187   : > { %v271_v34 = vmul.f32 0.03125, %v263_v33 }
 0x188   : > { %v276_v35 = vsub.f32 %v5354_v22, %v273_v32 }
 0x189   : > { %v274_v36 = vsub.f32 %v5359_v26, %v271_v34 }
 0x18a   : > { %v266_v37 = vpop.xlane.xlu0 %265  ;;  %v279_v42 = vmul.f32 %v276_v35, %v276_v35 }
 0x18b   : > { %v272_v38 = vmul.f32 0.03125, %v266_v37  ;;  %v277_v39 = vmul.f32 %v274_v36, %v274_v36 }
 0x18c   : > { %v286_v44 = vsel %vm260_vm2, %v279_v42, 0.0  ;;  %v5245_v42 = vmov -1e+30  }
 0x18d   : > { %v275_v40 = vsub.f32 %v5365_v29, %v272_v38  ;;  %v280_v41 = vsel %vm260_vm2, %v277_v39, 0.0 }
 0x18e   : > { %281 = vadd.xlane.f32.xlu1 %v280_v41 }
 0x18f   : > { %v278_v43 = vmul.f32 %v275_v40, %v275_v40 }
 0x191   : > { %v283_v45 = vsel %vm260_vm2, %v278_v43, 0.0 }
 0x192   : > { %287 = vadd.xlane.f32.xlu1 %v286_v44  ;;  %284 = vadd.xlane.f32.xlu0 %v283_v45 }
 0x21b   : > { %v282_v54 = vpop.xlane.xlu1 %281 }
 0x21c   : > { %v289_v55 = vmul.f32 0.03125, %v282_v54 }
 0x21e   : > { %v292_v56 = vadd.f32 1e-05, %v289_v55 }
 0x21f   : > { %v288_v57 = vpop.xlane.xlu1 %287  ;;  %v285_v58 = vpop.xlane.xlu0 %284 }
 0x220   : > { %5042 = vrsqrt.f32 %v292_v56  ;;  %v291_v59 = vmul.f32 0.03125, %v288_v57  ;;  %v290_v60 = vmul.f32 0.03125, %v285_v58 }
 0x222   : > { %v294_v61 = vadd.f32 1e-05, %v291_v59  ;;  %v293_v62 = vadd.f32 1e-05, %v290_v60 }
 0x224   : > { %5044 = vrsqrt.f32 %v294_v61 }
 0x225   : > { %5046 = vrsqrt.f32 %v293_v62 }
 0x22a   : > { %v5043_v63 = vpop.eup %5042 }
 0x22b   : > { %v298_v1 = vmul.f32 %v5043_v63, %v274_v36 }
 0x22d   : > { %v305_v3 = vmul.f32 %v3922_v0, %v298_v1 }
 0x22e   : > { %v5045_v4 = vpop.eup %5044 }
 0x22f   : > { %v5047_v5 = vpop.eup %5046  ;;  %v312_v6 = vadd.f32 %v3923_v2, %v305_v3  ;;  %v300_v8 = vmul.f32 %v5045_v4, %v276_v35 }
 0x230   : > { %v299_v7 = vmul.f32 %v5047_v5, %v275_v40  ;;  %v254_v40 = vlaneseq }
 0x231   : > { %4282 = vmatmul.mubr.msk.f32.vlgmr.msra.gmra.mrb[0].mxu1 %vm260_vm2, %v312_v6  ;;  %v307_v11 = vmul.f32 %v3922_v0, %v300_v8 }
 0x232   : > { %4284 = vmatprep.mubr.msk.f32.mxu1 %vm5241_vm3, %v5242_v52  ;;  %v306_v9 = vmul.f32 %v3922_v0, %v299_v7  ;;  %v255_v41 = vand.u32 127, %v254_v40 }
 0x233   : > { %v314_v12 = vadd.f32 %v3923_v2, %v307_v11 }
 0x234   : > { %v313_v10 = vadd.f32 %v3923_v2, %v306_v9  ;;  %vm256_vm6 = vcmp.lt.s32.totalorder %v255_v41, 17 }
 0x235   : > { %v5454_v43 = vsel %vm256_vm6, 0.0, %v5245_v42 }
 0x236   : > { %4285 = vmatmul.mubr.msk.f32.gmra.mrb[2].mxu1 %vm260_vm2, %v313_v10 }
 0x237   : > { %4287 = vmatprep.mubr.msk.f32.mxu1 %vm5241_vm3, %v5242_v52 }
 0x23a   : > { %4288 = vmatmul.mubr.msk.f32.gmra.mrb[4].mxu1 %vm260_vm2, %v314_v12 }
 0x23b   : > { %4296 = vmatprep.mubr.msk.f32.mxu1 %vm5241_vm3, %v5242_v52 }
 0x304   : > { %v399_v13 = vpop.f32.mrb[0].mxu1 }
 0x305   : > { %v4283_v14 = vpop.f32.mrb[1].mxu1  ;;  %v400_v17 = vadd.f32 %v3924_v15, %v399_v13 }
 0x307   : > { %v5434_v37 = vmul.f32 0.35355338, %v400_v17 }
 0x309   : > { %v404_v16 = vpop.f32.mrb[2].mxu1 }
 0x30a   : > { %v405_v18 = vadd.f32 %v3924_v15, %v404_v16  ;;  %v4286_v19 = vpop.f32.mrb[3].mxu1 }
 0x30c   : > { %v5413_v20 = vpack.i.bf16 %v405_v18, %v400_v17  ;;  %v5441_v38 = vmul.f32 0.35355338, %v405_v18 }
 0x30d   : > { %v409_v21 = vpop.f32.mrb[4].mxu1 }
 0x30e   : > { %v5415_v23 = vadd.f32 %v3924_v15, %v409_v21  ;;  %4963 = vrot.lane.b32.xlu0 %v5413_v20, %s5243_s24  ;;  %v4289_v24 = vpop.f32.mrb[5].mxu1 }
 0x310   : > { %427 = vrot.lane.b32.xlu1 %v5415_v23, %s5243_s24  ;;  %v5448_v39 = vmul.f32 0.35355338, %v5415_v23 }
 0x314   : > { %4968 = vrot.lane.b32.xlu1 %v5413_v20, %s5244_s25 }
 0x380   : > { %v4964_v25 = vpop.permute.xlu0 %4963 }
 0x381   : > { %v4966_v27 = vunpack.i.h.bf16 %v4964_v25  ;;  %v4965_v28 = vunpack.i.l.bf16 %v4964_v25 }
 0x382   : > { %v428_v30 = vpop.permute.xlu1 %427 }
 0x383   : > { %v4781_v32 = vpack.c.bf16 %v4966_v27, %v4965_v28 }
 0x385   : > { %4783 = vmatpush3.bf16.xpose.msk.msra.mxu1 %vm5425_vm5, %v4781_v32 }
 0x386   : > { %v4969_v33 = vpop.permute.xlu1 %4968  ;;  %4294 = vmatprep.subr.mxu1 %v5242_v52 }
 0x387   : > { %v4971_v34 = vunpack.i.h.bf16 %v4969_v33  ;;  %v4970_v35 = vunpack.i.l.bf16 %v4969_v33 }
 0x389   : > { %v4785_v36 = vpack.c.bf16 %v4971_v34, %v4970_v35 }
 0x38b   : > { %4786 = vmatpush3.bf16.msra.mxu0 %v4785_v36 }
 0x38c   : > { %4309 = vmatprep.subr.mxu0 %v5242_v52 }
 0x38d   : > { %4295 = vmatpush3.xpose.msk.msra.mxu1 %vm429_vm4, %v428_v30 }
 0x38e   : > { %4361 = vmatprep.subr.mxu1 %v5242_v52 }
 0x390   : > { %4297 = vmatmul.mubr.msk.f32.vlgmr.msra.gmra.mrb[6].mxu1 %vm429_vm4, %v5434_v37 }
 0x391   : > { %4299 = vmatprep.mubr.msk.f32.mxu1 %vm5241_vm3, %v5242_v52 }
 0x394   : > { %4300 = vmatmul.mubr.msk.f32.gmra.mrb[8].mxu1 %vm429_vm4, %v5441_v38 }
 0x395   : > { %4302 = vmatprep.mubr.msk.f32.mxu1 %vm5241_vm3, %v5242_v52 }
 0x398   : > { %4303 = vmatmul.mubr.msk.f32.gmra.mrb[10].mxu1 %vm429_vm4, %v5448_v39 }
 0x399   : > { %4363 = vmatprep.mubr.msk.f32.mxu1 %vm5241_vm3, %v5242_v52 }
 0x463   : > { %v511_v44 = vpop.f32.mrb[6].mxu1 }
 0x464   : > { %v512_v45 = vadd.f32 %v511_v44, %v5454_v43  ;;  %v4298_v46 = vpop.f32.mrb[7].mxu1 }
 0x466   : > { %v526_v47 = vsel %vm525_vm7, %v512_v45, -inf }
 0x467   : > { %527 = vmax.xlane.f32.xlu1 %v526_v47  ;;  %v516_v48 = vpop.f32.mrb[8].mxu1 }
 0x468   : > { %v517_v50 = vadd.f32 %v516_v48, %v5454_v43  ;;  %v4301_v51 = vpop.f32.mrb[9].mxu1 }
 0x46a   : > { %v529_v53 = vsel %vm525_vm7, %v517_v50, -inf }
 0x46b   : > { %530 = vmax.xlane.f32.xlu0 %v529_v53  ;;  %v521_v54 = vpop.f32.mrb[10].mxu1 }
 0x46c   : > { %v522_v55 = vadd.f32 %v521_v54, %v5454_v43  ;;  %v4304_v56 = vpop.f32.mrb[11].mxu1 }
 0x46e   : > { %v532_v57 = vsel %vm525_vm7, %v522_v55, -inf }
 0x46f   : > { %533 = vmax.xlane.f32.xlu0 %v532_v57 }
 0x478   : > { %4973 = vrot.lane.b32.xlu1 %v5413_v20, %s5246_s26 }
 0x47c   : > { %667 = vrot.lane.b32.xlu1 %v5415_v23, %s5246_s26 }
 0x480   : > { %657 = vrot.lane.b32.xlu1 %v5434_v37, %s5247_s27 }
 0x484   : > { %661 = vrot.lane.b32.xlu1 %v5448_v39, %s5247_s27 }
 0x485   : > { %557 = vrot.lane.b32.xlu0 %v5415_v23, %s5244_s25 }
 0x489   : > { %659 = vrot.lane.b32.xlu0 %v5441_v38, %s5247_s27 }
 0x4f4   : > { %v528_v58 = vpop.xlane.xlu1 %527 }
 0x4f5   : > { %v535_v59 = vsub.f32 %v512_v45, %v528_v58 }
 0x4f7   : > { %v538_v60 = vmul.f32 1.442695, %v535_v59 }
 0x4f8   : > { %v531_v61 = vpop.xlane.xlu0 %530  ;;  %v4974_v3 = vpop.permute.xlu1 %4973 }
 0x4f9   : > { %5048 = vpow2.f32 %v538_v60  ;;  %v536_v62 = vsub.f32 %v517_v50, %v531_v61  ;;  %v4976_v6 = vunpack.i.h.bf16 %v4974_v3  ;;  %v4975_v7 = vunpack.i.l.bf16 %v4974_v3 }
 0x4fb   : > { %v540_v63 = vmul.f32 1.442695, %v536_v62  ;;  %v4788_v9 = vpack.c.bf16 %v4976_v6, %v4975_v7 }
 0x4fc   : > { %v534_v0 = vpop.xlane.xlu0 %533  ;;  %v668_v11 = vpop.permute.xlu1 %667 }
 0x4fd   : > { %5050 = vpow2.f32 %v540_v63  ;;  %v537_v1 = vsub.f32 %v522_v55, %v534_v0 }
 0x4ff   : > { %v542_v2 = vmul.f32 1.442695, %v537_v1 }
 0x500   : > { %v558_v4 = vpop.permute.xlu0 %557  ;;  %v658_v12 = vpop.permute.xlu1 %657 }
 0x501   : > { %5052 = vpow2.f32 %v542_v2  ;;  %4310 = vmatpush3.msra.mxu0 %v558_v4  ;;  %v414_v4 = vld [vmem:[%s6348_s1 + $0x98] sm:$0xff] }
 0x502   : > { %4787 = vmatprep.subr.bf16.mxu0 %v5240_v49 }
 0x503   : > { %v5475_v5 = vpop.eup %5048 }
 0x504   : > { %4312 = vmatmul.mubr.msk.f32.vlgmr.msra.gmra.mrb[2].mxu0 %vm525_vm7, %v5475_v5  ;;  %v660_v13 = vpop.permute.xlu0 %659  ;;  %v662_v14 = vpop.permute.xlu1 %661  ;;  %v544_v1 = vsel %vm525_vm7, %v5475_v5, 0.0  ;;  %v413_v5 = vld [vmem:[%s6348_s1 + $0x90] sm:$0xff] }
 0x505   : > { %4314 = vmatprep.mubr.msk.f32.mxu0 %vm5241_vm3, %v5242_v52  ;;  %4362 = vmatpush3.msra.mxu1 %v413_v5 }
 0x506   : > { %4798 = vmatprep.subr.bf16.mxu1 %v5240_v49 }
 0x507   : > { %v5481_v8 = vpop.eup %5050 }
 0x508   : > { %4315 = vmatmul.mubr.msk.f32.gmra.mrb[4].mxu0 %vm525_vm7, %v5481_v8  ;;  %v547_v2 = vsel %vm525_vm7, %v5481_v8, 0.0 }
 0x509   : > { %4790 = vmatpush3.bf16.xpose.msk.msra.mxu0 %vm5425_vm5, %v4788_v9  ;;  %4317 = vmatprep.mubr.msk.f32.mxu0 %vm5241_vm3, %v5242_v52 }
 0x50a   : > { %4324 = vmatprep.subr.mxu0 %v5242_v52 }
 0x50b   : > { %v5490_v10 = vpop.eup %5052 }
 0x50c   : > { %4318 = vmatmul.mubr.msk.f32.gmra.mrb[6].mxu0 %vm525_vm7, %v5490_v10  ;;  %v550_v3 = vsel %vm525_vm7, %v5490_v10, 0.0 }
 0x50d   : > { %4326 = vmatprep.mubr.msk.f32.mxu0 %vm5241_vm3, %v5242_v52 }
 0x511   : > { %4325 = vmatpush3.xpose.msk.msra.mxu0 %vm429_vm4, %v668_v11 }
 0x512   : > { %4791 = vmatprep.subr.bf16.mxu0 %v5240_v49 }
 0x514   : > { %4327 = vmatmul.mubr.msk.f32.vlgmr.msra.gmra.mrb[8].mxu0 %vm429_vm4, %v658_v12 }
 0x515   : > { %4329 = vmatprep.mubr.msk.f32.mxu0 %vm5241_vm3, %v5242_v52 }
 0x518   : > { %4330 = vmatmul.mubr.msk.f32.gmra.mrb[10].mxu0 %vm429_vm4, %v660_v13 }
 0x519   : > { %4332 = vmatprep.mubr.msk.f32.mxu0 %vm5241_vm3, %v5242_v52 }
 0x51c   : > { %4333 = vmatmul.mubr.msk.f32.gmra.mrb[12].mxu0 %vm429_vm4, %v662_v14 }
 0x51d   : > { %4341 = vmatprep.mubr.msk.f32.mxu0 %vm5241_vm3, %v5242_v52 }
 0x5d7   : > { %v5507_v15 = vpop.f32.mrb[2].mxu0 }
 0x5d8   : > { %v4313_v16 = vpop.f32.mrb[3].mxu0 }
 0x5db   : > { %v5509_v17 = vpop.f32.mrb[4].mxu0 }
 0x5dc   : > { %v4316_v18 = vpop.f32.mrb[5].mxu0 }
 0x5df   : > { %v5511_v19 = vpop.f32.mrb[6].mxu0 }
 0x5e0   : > { %v4319_v21 = vpop.f32.mrb[7].mxu0 }
 0x5e7   : > { %v747_v24 = vpop.f32.mrb[8].mxu0 }
 0x5e8   : > { %v748_v25 = vadd.f32 %v747_v24, %v5454_v43  ;;  %v4328_v27 = vpop.f32.mrb[9].mxu0 }
 0x5ea   : > { %v761_v28 = vsel %vm525_vm7, %v748_v25, -inf }
 0x5eb   : > { %762 = vmax.xlane.f32.xlu0 %v761_v28  ;;  %v752_v30 = vpop.f32.mrb[10].mxu0 }
 0x5ec   : > { %v753_v32 = vadd.f32 %v752_v30, %v5454_v43  ;;  %v4331_v33 = vpop.f32.mrb[11].mxu0 }
 0x5ee   : > { %v764_v34 = vsel %vm525_vm7, %v753_v32, -inf }
 0x5ef   : > { %765 = vmax.xlane.f32.xlu1 %v764_v34  ;;  %v757_v35 = vpop.f32.mrb[12].mxu0 }
 0x5f0   : > { %v758_v36 = vadd.f32 %v757_v35, %v5454_v43  ;;  %v4334_v40 = vpop.f32.mrb[13].mxu0 }
 0x5f2   : > { %v767_v41 = vsel %vm525_vm7, %v758_v36, -inf }
 0x5f3   : > { %768 = vmax.xlane.f32.xlu0 %v767_v41 }
 0x600   : > { %792 = vrot.lane.b32.xlu1 %v5415_v23, %s5248_s28 }
 0x609   : > { %4978 = vrot.lane.b32.xlu0 %v5413_v20, %s5248_s28 }
 0x678   : > { %v763_v42 = vpop.xlane.xlu0 %762 }
 0x679   : > { %v770_v44 = vsub.f32 %v748_v25, %v763_v42 }
 0x67b   : > { %v773_v45 = vmul.f32 1.442695, %v770_v44 }
 0x67c   : > { %v766_v46 = vpop.xlane.xlu1 %765 }
 0x67d   : > { %5054 = vpow2.f32 %v773_v45  ;;  %v771_v47 = vsub.f32 %v753_v32, %v766_v46 }
 0x67f   : > { %v775_v48 = vmul.f32 1.442695, %v771_v47 }
 0x680   : > { %v769_v50 = vpop.xlane.xlu0 %768  ;;  %v793_v61 = vpop.permute.xlu1 %792 }
 0x681   : > { %5056 = vpow2.f32 %v775_v48  ;;  %v772_v51 = vsub.f32 %v758_v36, %v769_v50 }
 0x683   : > { %v777_v53 = vmul.f32 1.442695, %v772_v51 }
 0x684   : > { %v4979_v54 = vpop.permute.xlu0 %4978 }
 0x685   : > { %5058 = vpow2.f32 %v777_v53  ;;  %v4981_v55 = vunpack.i.h.bf16 %v4979_v54  ;;  %v4980_v56 = vunpack.i.l.bf16 %v4979_v54 }
 0x687   : > { %v5055_v57 = vpop.eup %5054  ;;  %v4792_v58 = vpack.c.bf16 %v4981_v55, %v4980_v56 }
 0x688   : > { %v779_v59 = vsel %vm525_vm7, %v5055_v57, 0.0 }
 0x689   : > { %780 = vadd.xlane.f32.xlu1 %v779_v59  ;;  %4793 = vmatpush3.bf16.msra.mxu0 %v4792_v58 }
 0x68a   : > { %4339 = vmatprep.subr.mxu0 %v5242_v52 }
 0x68b   : > { %v5057_v60 = vpop.eup %5056 }
 0x68c   : > { %v782_v62 = vsel %vm525_vm7, %v5057_v60, 0.0 }
 0x68d   : > { %783 = vadd.xlane.f32.xlu0 %v782_v62  ;;  %4340 = vmatpush3.msra.mxu0 %v793_v61 }
 0x68e   : > { %4342 = vmatmul.mubr.msk.f32.vlgmr.msra.gmra.mrb[14].mxu0 %vm525_vm7, %v5055_v57  ;;  %4350 = vmatprep.subr.mxu0 %v5242_v52 }
 0x68f   : > { %v5059_v63 = vpop.eup %5058  ;;  %4344 = vmatprep.mubr.msk.f32.mxu0 %vm5241_vm3, %v5242_v52  ;;  %4351 = vmatpush3.msra.mxu0 %v414_v4 }
 0x690   : > { %v785_v0 = vsel %vm525_vm7, %v5059_v63, 0.0  ;;  %4794 = vmatprep.subr.bf16.mxu0 %v5240_v49 }
 0x691   : > { %786 = vadd.xlane.f32.xlu0 %v785_v0 }
 0x692   : > { %4345 = vmatmul.mubr.msk.f32.gmra.mrb[16].mxu0 %vm525_vm7, %v5057_v60 }
 0x693   : > { %4347 = vmatprep.mubr.msk.f32.mxu0 %vm5241_vm3, %v5242_v52 }
 0x696   : > { %4348 = vmatmul.mubr.msk.f32.gmra.mrb[18].mxu0 %vm525_vm7, %v5059_v63 }
 0x697   : > { %4352 = vmatprep.mubr.msk.f32.mxu0 %vm5241_vm3, %v5242_v52 }
 0x69a   : > { %1080 = vrot.lane.b32.xlu1 %v5415_v23, %s5249_s29 }
 0x69e   : > { %1070 = vrot.lane.b32.xlu1 %v5434_v37, %s5250_s30 }
 0x6a2   : > { %1072 = vrot.lane.b32.xlu1 %v5441_v38, %s5250_s30 }
 0x6a7   : > { %4983 = vrot.lane.b32.xlu0 %v5413_v20, %s5249_s29 }
 0x6ab   : > { %1074 = vrot.lane.b32.xlu0 %v5448_v39, %s5250_s30 }
 0x6c6   : > { %545 = vadd.xlane.f32.xlu1 %v544_v1 }
 0x6ca   : > { %548 = vadd.xlane.f32.xlu0 %v547_v2 }
 0x6ce   : > { %551 = vadd.xlane.f32.xlu0 %v550_v3 }
 0x6d7   : > { %4988 = vrot.lane.b32.xlu1 %v5413_v20, %s5251_s3 }
 0x716   : > { %v781_v6 = vpop.xlane.xlu1 %780 }
 0x71a   : > { %v784_v7 = vpop.xlane.xlu0 %783  ;;  %v1081_v8 = vpop.permute.xlu1 %1080 }
 0x71e   : > { %v787_v9 = vpop.xlane.xlu0 %786  ;;  %v1071_v10 = vpop.permute.xlu1 %1070 }
 0x722   : > { %v4984_v11 = vpop.permute.xlu0 %4983  ;;  %v1073_v12 = vpop.permute.xlu1 %1072 }
 0x723   : > { %v4986_v28 = vunpack.i.h.bf16 %v4984_v11  ;;  %v4985_v30 = vunpack.i.l.bf16 %v4984_v11 }
 0x725   : > { %v4795_v42 = vpack.c.bf16 %v4986_v28, %v4985_v30 }
 0x726   : > { %v1075_v13 = vpop.permute.xlu0 %1074 }
 0x753   : > { %v546_v14 = vpop.xlane.xlu1 %545 }
 0x754   : > { %5060 = vrcp.f32 %v546_v14 }
 0x755   : > { %5062 = vrcp.f32 %v781_v6 }
 0x757   : > { %v549_v16 = vpop.xlane.xlu0 %548  ;;  %v4989_v18 = vpop.permute.xlu1 %4988 }
 0x758   : > { %5064 = vrcp.f32 %v549_v16  ;;  %v4991_v24 = vunpack.i.h.bf16 %v4989_v18  ;;  %v4990_v25 = vunpack.i.l.bf16 %v4989_v18 }
 0x759   : > { %5066 = vrcp.f32 %v784_v7 }
 0x75a   : > { %v4799_v33 = vpack.c.bf16 %v4991_v24, %v4990_v25 }
 0x75b   : > { %v552_v21 = vpop.xlane.xlu0 %551 }
 0x75c   : > { %5068 = vrcp.f32 %v552_v21 }
 0x75d   : > { %5070 = vrcp.f32 %v787_v9 }
 0x75e   : > { %v5061_v27 = vpop.eup %5060 }
 0x75f   : > { %v652_v32 = vmul.f32 %v5061_v27, %v5507_v15  ;;  %v5063_v34 = vpop.eup %5062 }
 0x761   : > { %v872_v35 = vpop.f32.mrb[14].mxu0  ;;  %4364 = vmatmul.mubr.msk.f32.vlgmr.msra.gmra.mrb[12].mxu1 %vm429_vm4, %v652_v32 }
 0x762   : > { %v5065_v36 = vpop.eup %5064  ;;  %v887_v40 = vmul.f32 %v5063_v34, %v872_v35  ;;  %4800 = vmatpush3.bf16.msra.mxu1 %v4799_v33  ;;  %v4343_v41 = vpop.f32.mrb[15].mxu0  ;;  %4366 = vmatprep.mubr.msk.f32.mxu1 %vm5241_vm3, %v5242_v52 }
 0x763   : > { %v654_v44 = vmul.f32 %v5065_v36, %v5509_v17  ;;  %4391 = vmatprep.subr.mxu1 %v5242_v52  ;;  %v5067_v15 = vpop.eup %5066 }
 0x764   : > { %4353 = vmatmul.mubr.msk.f32.vlgmr.msra.gmra.mrb[20].mxu0 %vm429_vm4, %v887_v40 }
 0x765   : > { %4797 = vmatpush3.bf16.xpose.msk.msra.mxu0 %vm5425_vm5, %v4795_v42  ;;  %v877_v45 = vpop.f32.mrb[16].mxu0  ;;  %4367 = vmatmul.mubr.msk.f32.gmra.mrb[14].mxu1 %vm429_vm4, %v654_v44 }
 0x766   : > { %v5069_v46 = vpop.eup %5068  ;;  %v889_v47 = vmul.f32 %v5067_v15, %v877_v45  ;;  %v4346_v48 = vpop.f32.mrb[17].mxu0  ;;  %4355 = vmatprep.mubr.msk.f32.mxu0 %vm5241_vm3, %v5242_v52  ;;  %4369 = vmatprep.mubr.msk.f32.mxu1 %vm5241_vm3, %v5242_v52 }
 0x767   : > { %v656_v17 = vmul.f32 %v5069_v46, %v5511_v19  ;;  %4376 = vmatprep.subr.mxu0 %v5242_v52  ;;  %v5071_v50 = vpop.eup %5070 }
 0x768   : > { %4356 = vmatmul.mubr.msk.f32.gmra.mrb[22].mxu0 %vm429_vm4, %v889_v47 }
 0x769   : > { %v882_v51 = vpop.f32.mrb[18].mxu0  ;;  %4370 = vmatmul.mubr.msk.f32.gmra.mrb[16].mxu1 %vm429_vm4, %v656_v17  ;;  %4358 = vmatprep.mubr.msk.f32.mxu0 %vm5241_vm3, %v5242_v52 }
 0x76a   : > { %v891_v53 = vmul.f32 %v5071_v50, %v882_v51  ;;  %v4349_v54 = vpop.f32.mrb[19].mxu0  ;;  %4393 = vmatprep.mubr.msk.f32.mxu1 %vm5241_vm3, %v5242_v52  ;;  %v415_v50 = vld [vmem:[%s6348_s1 + $0xa0] sm:$0xff] }
 0x76c   : > { %4359 = vmatmul.mubr.msk.f32.gmra.mrb[24].mxu0 %vm429_vm4, %v891_v53 }
 0x76d   : > { %4377 = vmatpush3.xpose.msk.msra.mxu0 %vm429_vm4, %v1081_v8  ;;  %4378 = vmatprep.mubr.msk.f32.mxu0 %vm5241_vm3, %v5242_v52 }
 0x76e   : > { %4402 = vmatprep.subr.mxu0 %v5242_v52 }
 0x770   : > { %4379 = vmatmul.mubr.msk.f32.vlgmr.msra.gmra.mrb[26].mxu0 %vm429_vm4, %v1071_v10 }
 0x771   : > { %4381 = vmatprep.mubr.msk.f32.mxu0 %vm5241_vm3, %v5242_v52  ;;  %4403 = vmatpush3.msra.mxu0 %v415_v50 }
 0x772   : > { %4805 = vmatprep.subr.bf16.mxu0 %v5240_v49 }
 0x774   : > { %4382 = vmatmul.mubr.msk.f32.gmra.mrb[28].mxu0 %vm429_vm4, %v1073_v12 }
 0x775   : > { %4384 = vmatprep.mubr.msk.f32.mxu0 %vm5241_vm3, %v5242_v52 }
 0x778   : > { %4385 = vmatmul.mubr.msk.f32.gmra.mrb[30].mxu0 %vm429_vm4, %v1075_v13 }
 0x779   : > { %4404 = vmatprep.mubr.msk.f32.mxu0 %vm5241_vm3, %v5242_v52 }
 0x834   : > { %v1056_v19 = vpop.f32.mrb[12].mxu1 }
 0x835   : > { %v4365_v55 = vpop.f32.mrb[13].mxu1 }
 0x837   : > { %v967_v56 = vpop.f32.mrb[20].mxu0 }
 0x838   : > { %v5599_v57 = vadd.f32 %v1056_v19, %v967_v56  ;;  %v4354_v58 = vpop.f32.mrb[21].mxu0  ;;  %v1061_v59 = vpop.f32.mrb[14].mxu1 }
 0x839   : > { %v4368_v60 = vpop.f32.mrb[15].mxu1 }
 0x83b   : > { %v972_v61 = vpop.f32.mrb[22].mxu0 }
 0x83c   : > { %v5601_v62 = vadd.f32 %v1061_v59, %v972_v61  ;;  %v4357_v63 = vpop.f32.mrb[23].mxu0  ;;  %v1066_v0 = vpop.f32.mrb[16].mxu1 }
 0x83d   : > { %v4371_v1 = vpop.f32.mrb[17].mxu1 }
 0x83f   : > { %v977_v2 = vpop.f32.mrb[24].mxu0 }
 0x840   : > { %v5603_v3 = vadd.f32 %v1066_v0, %v977_v2  ;;  %v4360_v4 = vpop.f32.mrb[25].mxu0 }
 0x843   : > { %v1160_v5 = vpop.f32.mrb[26].mxu0 }
 0x844   : > { %v1161_v6 = vadd.f32 %v1160_v5, %v5454_v43  ;;  %v4380_v7 = vpop.f32.mrb[27].mxu0 }
 0x846   : > { %v1174_v8 = vsel %vm525_vm7, %v1161_v6, -inf }
 0x847   : > { %1175 = vmax.xlane.f32.xlu0 %v1174_v8  ;;  %v1165_v9 = vpop.f32.mrb[28].mxu0 }
 0x848   : > { %v1166_v10 = vadd.f32 %v1165_v9, %v5454_v43  ;;  %v4383_v11 = vpop.f32.mrb[29].mxu0 }
 0x84a   : > { %v1177_v12 = vsel %vm525_vm7, %v1166_v10, -inf }
 0x84b   : > { %1178 = vmax.xlane.f32.xlu1 %v1177_v12  ;;  %v1170_v13 = vpop.f32.mrb[30].mxu0 }
 0x84c   : > { %v1171_v14 = vadd.f32 %v1170_v13, %v5454_v43  ;;  %v4386_v16 = vpop.f32.mrb[31].mxu0 }
 0x84e   : > { %v1180_v18 = vsel %vm525_vm7, %v1171_v14, -inf }
 0x84f   : > { %1181 = vmax.xlane.f32.xlu0 %v1180_v18 }
 0x85c   : > { %4993 = vrot.lane.b32.xlu1 %v5413_v20, %s5252_s8 }
 0x860   : > { %1407 = vrot.lane.b32.xlu1 %v5415_v23, %s5252_s8 }
 0x864   : > { %1397 = vrot.lane.b32.xlu1 %v5434_v37, %s6352_s14 }
 0x865   : > { %1205 = vrot.lane.b32.xlu0 %v5415_v23, %s5251_s3 }
 0x868   : > { %1401 = vrot.lane.b32.xlu1 %v5448_v39, %s6352_s14 }
 0x869   : > { %1399 = vrot.lane.b32.xlu0 %v5441_v38, %s6352_s14 }
 0x8d4   : > { %v1176_v21 = vpop.xlane.xlu0 %1175 }
 0x8d5   : > { %v1183_v24 = vsub.f32 %v1161_v6, %v1176_v21 }
 0x8d7   : > { %v1186_v25 = vmul.f32 1.442695, %v1183_v24 }
 0x8d8   : > { %v1179_v27 = vpop.xlane.xlu1 %1178 }
 0x8d9   : > { %5072 = vpow2.f32 %v1186_v25  ;;  %v1184_v28 = vsub.f32 %v1166_v10, %v1179_v27 }
 0x8db   : > { %v1188_v30 = vmul.f32 1.442695, %v1184_v28 }
 0x8dc   : > { %v1182_v32 = vpop.xlane.xlu0 %1181  ;;  %v4994_v34 = vpop.permute.xlu1 %4993 }
 0x8dd   : > { %5074 = vpow2.f32 %v1188_v30  ;;  %v1185_v33 = vsub.f32 %v1171_v14, %v1182_v32  ;;  %v4996_v36 = vunpack.i.h.bf16 %v4994_v34  ;;  %v4995_v38 = vunpack.i.l.bf16 %v4994_v34 }
 0x8df   : > { %v1190_v37 = vmul.f32 1.442695, %v1185_v33  ;;  %v4802_v42 = vpack.c.bf16 %v4996_v36, %v4995_v38 }
 0x8e0   : > { %v1206_v35 = vpop.permute.xlu0 %1205  ;;  %v1408_v46 = vpop.permute.xlu1 %1407 }
 0x8e1   : > { %5076 = vpow2.f32 %v1190_v37  ;;  %4392 = vmatpush3.msra.mxu1 %v1206_v35 }
 0x8e2   : > { %4801 = vmatprep.subr.bf16.mxu1 %v5240_v49 }
 0x8e3   : > { %v5073_v39 = vpop.eup %5072 }
 0x8e4   : > { %4394 = vmatmul.mubr.msk.f32.vlgmr.msra.gmra.mrb[18].mxu1 %vm525_vm7, %v5073_v39  ;;  %v1192_v40 = vsel %vm525_vm7, %v5073_v39, 0.0  ;;  %v1398_v47 = vpop.permute.xlu1 %1397  ;;  %v1400_v48 = vpop.permute.xlu0 %1399 }
 0x8e5   : > { %1193 = vadd.xlane.f32.xlu0 %v1192_v40  ;;  %4396 = vmatprep.mubr.msk.f32.mxu1 %vm5241_vm3, %v5242_v52 }
 0x8e7   : > { %v5075_v41 = vpop.eup %5074 }
 0x8e8   : > { %4397 = vmatmul.mubr.msk.f32.gmra.mrb[20].mxu1 %vm525_vm7, %v5075_v41  ;;  %v1195_v44 = vsel %vm525_vm7, %v5075_v41, 0.0  ;;  %v1402_v17 = vpop.permute.xlu1 %1401 }
 0x8e9   : > { %4804 = vmatpush3.bf16.xpose.msk.msra.mxu1 %vm5425_vm5, %v4802_v42  ;;  %1196 = vadd.xlane.f32.xlu1 %v1195_v44 }
 0x8ea   : > { %4399 = vmatprep.mubr.msk.f32.mxu1 %vm5241_vm3, %v5242_v52  ;;  %4417 = vmatprep.subr.mxu1 %v5242_v52 }
 0x8eb   : > { %v5077_v15 = vpop.eup %5076 }
 0x8ec   : > { %4400 = vmatmul.mubr.msk.f32.gmra.mrb[22].mxu1 %vm525_vm7, %v5077_v15  ;;  %v1198_v45 = vsel %vm525_vm7, %v5077_v15, 0.0  ;;  %v416_v15 = vld [vmem:[%s6348_s1 + $0xa8] sm:$0xff] }
 0x8ed   : > { %1199 = vadd.xlane.f32.xlu0 %v1198_v45  ;;  %4419 = vmatprep.mubr.msk.f32.mxu1 %vm5241_vm3, %v5242_v52 }
 0x8f1   : > { %4418 = vmatpush3.xpose.msk.msra.mxu1 %vm429_vm4, %v1408_v46 }
 0x8f2   : > { %4443 = vmatprep.subr.mxu1 %v5242_v52 }
 0x8f4   : > { %4420 = vmatmul.mubr.msk.f32.vlgmr.msra.gmra.mrb[24].mxu1 %vm429_vm4, %v1398_v47 }
 0x8f5   : > { %4422 = vmatprep.mubr.msk.f32.mxu1 %vm5241_vm3, %v5242_v52  ;;  %4444 = vmatpush3.msra.mxu1 %v416_v15  ;;  %v1791_v15 = vld [vmem:[%s6348_s1 + $0xd0] sm:$0xff] }
 0x8f6   : > { %4814 = vmatprep.subr.bf16.mxu1 %v5240_v49 }
 0x8f8   : > { %4423 = vmatmul.mubr.msk.f32.gmra.mrb[26].mxu1 %vm429_vm4, %v1400_v48 }
 0x8f9   : > { %4425 = vmatprep.mubr.msk.f32.mxu1 %vm5241_vm3, %v5242_v52 }
 0x8fc   : > { %4426 = vmatmul.mubr.msk.f32.gmra.mrb[28].mxu1 %vm429_vm4, %v1402_v17 }
 0x8fd   : > { %4445 = vmatprep.mubr.msk.f32.mxu1 %vm5241_vm3, %v5242_v52 }
 0x972   : > { %v1194_v51 = vpop.xlane.xlu0 %1193 }
 0x973   : > { %5078 = vrcp.f32 %v1194_v51 }
 0x976   : > { %v1197_v53 = vpop.xlane.xlu1 %1196 }
 0x977   : > { %5080 = vrcp.f32 %v1197_v53 }
 0x97a   : > { %v1200_v54 = vpop.xlane.xlu0 %1199 }
 0x97b   : > { %5082 = vrcp.f32 %v1200_v54 }
 0x97d   : > { %v5079_v19 = vpop.eup %5078 }
 0x981   : > { %v5081_v59 = vpop.eup %5080 }
 0x985   : > { %v5083_v0 = vpop.eup %5082 }
 0x9b7   : > { %v1285_v55 = vpop.f32.mrb[18].mxu1 }
 0x9b8   : > { %v1300_v56 = vmul.f32 %v5079_v19, %v1285_v55  ;;  %v4395_v58 = vpop.f32.mrb[19].mxu1 }
 0x9ba   : > { %4405 = vmatmul.mubr.msk.f32.vlgmr.msra.gmra.mrb[32].mxu0 %vm429_vm4, %v1300_v56 }
 0x9bb   : > { %v1290_v60 = vpop.f32.mrb[20].mxu1  ;;  %4407 = vmatprep.mubr.msk.f32.mxu0 %vm5241_vm3, %v5242_v52 }
 0x9bc   : > { %v1302_v61 = vmul.f32 %v5081_v59, %v1290_v60  ;;  %v4398_v63 = vpop.f32.mrb[21].mxu1 }
 0x9be   : > { %4408 = vmatmul.mubr.msk.f32.gmra.mrb[34].mxu0 %vm429_vm4, %v1302_v61 }
 0x9bf   : > { %v1295_v1 = vpop.f32.mrb[22].mxu1  ;;  %4410 = vmatprep.mubr.msk.f32.mxu0 %vm5241_vm3, %v5242_v52 }
 0x9c0   : > { %v1304_v2 = vmul.f32 %v5083_v0, %v1295_v1  ;;  %v4401_v4 = vpop.f32.mrb[23].mxu1 }
 0x9c2   : > { %4411 = vmatmul.mubr.msk.f32.gmra.mrb[36].mxu0 %vm429_vm4, %v1304_v2 }
 0x9c3   : > { %4434 = vmatprep.mubr.msk.f32.mxu0 %vm5241_vm3, %v5242_v52 }
 0x9c7   : > { %v1487_v5 = vpop.f32.mrb[24].mxu1 }
 0x9c8   : > { %v1488_v6 = vadd.f32 %v1487_v5, %v5454_v43  ;;  %v4421_v7 = vpop.f32.mrb[25].mxu1 }
 0x9ca   : > { %v1501_v8 = vsel %vm525_vm7, %v1488_v6, -inf }
 0x9cb   : > { %1502 = vmax.xlane.f32.xlu0 %v1501_v8  ;;  %v1492_v9 = vpop.f32.mrb[26].mxu1  ;;  %v3976_v8 = vld [vmem:[%s6348_s1 + $0xb0] ss:$0 sm:$0xff] }
 0x9cc   : > { %v1493_v10 = vadd.f32 %v1492_v9, %v5454_v43  ;;  %v4424_v11 = vpop.f32.mrb[27].mxu1 }
 0x9ce   : > { %v1504_v12 = vsel %vm525_vm7, %v1493_v10, -inf }
 0x9cf   : > { %1505 = vmax.xlane.f32.xlu0 %v1504_v12  ;;  %v1497_v13 = vpop.f32.mrb[28].mxu1 }
 0x9d0   : > { %v1498_v14 = vadd.f32 %v1497_v13, %v5454_v43  ;;  %v4427_v16 = vpop.f32.mrb[29].mxu1 }
 0x9d2   : > { %v1507_v18 = vsel %vm525_vm7, %v1498_v14, -inf }
 0x9d3   : > { %1508 = vmax.xlane.f32.xlu1 %v1507_v18 }
 0x9e4   : > { %1532 = vrot.lane.b32.xlu1 %v5415_v23, %s6350_s21 }
 0x9e5   : > { %4998 = vrot.lane.b32.xlu0 %v5413_v20, %s6350_s21  ;;  %s4047_s21 = sshll.u32 %s5292_s13, 4 }
 0xa58   : > { %v1503_v21 = vpop.xlane.xlu0 %1502 }
 0xa59   : > { %v1510_v24 = vsub.f32 %v1488_v6, %v1503_v21 }
 0xa5b   : > { %v1513_v25 = vmul.f32 1.442695, %v1510_v24 }
 0xa5c   : > { %v1506_v27 = vpop.xlane.xlu0 %1505 }
 0xa5d   : > { %5084 = vpow2.f32 %v1513_v25  ;;  %v1511_v28 = vsub.f32 %v1493_v10, %v1506_v27 }
 0xa5f   : > { %v1515_v30 = vmul.f32 1.442695, %v1511_v28 }
 0xa60   : > { %v4999_v32 = vpop.permute.xlu0 %4998  ;;  %v1509_v33 = vpop.xlane.xlu1 %1508 }
 0xa61   : > { %5086 = vpow2.f32 %v1515_v30  ;;  %v5001_v37 = vunpack.i.h.bf16 %v4999_v32  ;;  %v5000_v34 = vunpack.i.l.bf16 %v4999_v32  ;;  %v1512_v35 = vsub.f32 %v1498_v14, %v1509_v33 }
 0xa63   : > { %v4806_v39 = vpack.c.bf16 %v5001_v37, %v5000_v34  ;;  %v1517_v36 = vmul.f32 1.442695, %v1512_v35 }
 0xa64   : > { %v1533_v23 = vpop.permute.xlu1 %1532 }
 0xa65   : > { %5088 = vpow2.f32 %v1517_v36  ;;  %4807 = vmatpush3.bf16.msra.mxu0 %v4806_v39 }
 0xa66   : > { %4432 = vmatprep.subr.mxu0 %v5242_v52 }
 0xa67   : > { %v5085_v20 = vpop.eup %5084 }
 0xa68   : > { %v1519_v38 = vsel %vm525_vm7, %v5085_v20, 0.0 }
 0xa69   : > { %1520 = vadd.xlane.f32.xlu1 %v1519_v38  ;;  %4433 = vmatpush3.msra.mxu0 %v1533_v23 }
 0xa6a   : > { %4435 = vmatmul.mubr.msk.f32.vlgmr.msra.gmra.mrb[38].mxu0 %vm525_vm7, %v5085_v20  ;;  %4808 = vmatprep.subr.bf16.mxu0 %v5240_v49 }
 0xa6b   : > { %v5087_v40 = vpop.eup %5086  ;;  %4437 = vmatprep.mubr.msk.f32.mxu0 %vm5241_vm3, %v5242_v52 }
 0xa6c   : > { %v1522_v41 = vsel %vm525_vm7, %v5087_v40, 0.0 }
 0xa6d   : > { %1523 = vadd.xlane.f32.xlu0 %v1522_v41 }
 0xa6e   : > { %4438 = vmatmul.mubr.msk.f32.gmra.mrb[40].mxu0 %vm525_vm7, %v5087_v40 }
 0xa6f   : > { %v5089_v42 = vpop.eup %5088  ;;  %4440 = vmatprep.mubr.msk.f32.mxu0 %vm5241_vm3, %v5242_v52 }
 0xa70   : > { %v1525_v44 = vsel %vm525_vm7, %v5089_v42, 0.0 }
 0xa71   : > { %1526 = vadd.xlane.f32.xlu0 %v1525_v44  ;;  %v1790_v44 = vld [vmem:[%s6348_s1 + $0xc8] sm:$0xff] }
 0xa72   : > { %4441 = vmatmul.mubr.msk.f32.gmra.mrb[42].mxu0 %vm525_vm7, %v5089_v42 }
 0xa73   : > { %4462 = vmatprep.mubr.msk.f32.mxu0 %vm5241_vm3, %v5242_v52 }
 0xa8d   : > { %v1380_v45 = vpop.f32.mrb[32].mxu0 }
 0xa8e   : > { %v1394_v46 = vadd.f32 %v1380_v45, %v5599_v57  ;;  %v4406_v47 = vpop.f32.mrb[33].mxu0  ;;  %v4809_v45 = vpack.c.bf16 %v1791_v15, %v1790_v44 }
 0xa8f   : > { %v1793_v47 = vld [vmem:[%s6348_s1 + $0xe0] sm:$0xff] }
 0xa90   : > { %4810 = vmatpush3.bf16.msra.mxu0 %v4809_v45 }
 0xa91   : > { %v1385_v48 = vpop.f32.mrb[34].mxu0  ;;  %4811 = vmatprep.subr.bf16.mxu0 %v5240_v49 }
 0xa92   : > { %v1395_v17 = vadd.f32 %v1385_v48, %v5601_v62  ;;  %v4409_v50 = vpop.f32.mrb[35].mxu0 }
 0xa93   : > { %v1904_v50 = vld [vmem:[%s6348_s1 + $0xf8] sm:$0xff] }
 0xa95   : > { %v1390_v51 = vpop.f32.mrb[36].mxu0 }
 0xa96   : > { %v1396_v53 = vadd.f32 %v1390_v51, %v5603_v3  ;;  %v4412_v54 = vpop.f32.mrb[37].mxu0  ;;  %v1905_v51 = vld [vmem:[%s6348_s1 + $0x100] sm:$0xff] }
 0xa97   : > { %v1906_v54 = vld [vmem:[%s6348_s1 + $0x108] sm:$0xff] }
 0xaf6   : > { %v1521_v19 = vpop.xlane.xlu1 %1520 }
 0xaf7   : > { %5090 = vrcp.f32 %v1521_v19  ;;  %v4818_v19 = vpack.c.bf16 %v1906_v54, %v1905_v51 }
 0xafa   : > { %v1524_v55 = vpop.xlane.xlu0 %1523 }
 0xafb   : > { %5092 = vrcp.f32 %v1524_v55  ;;  %v1907_v55 = vld [vmem:[%s6348_s1 + $0x110] sm:$0xff] }
 0xafe   : > { %v1527_v56 = vpop.xlane.xlu0 %1526 }
 0xaff   : > { %5094 = vrcp.f32 %v1527_v56  ;;  %v1908_v56 = vld [vmem:[%s6348_s1 + $0x118] sm:$0xff] }
 0xb01   : > { %v5091_v58 = vpop.eup %5090 }
 0xb05   : > { %v5093_v57 = vpop.eup %5092 }
 0xb09   : > { %v5095_v0 = vpop.eup %5094 }
 0xb3d   : > { %v1612_v59 = vpop.f32.mrb[38].mxu0 }
 0xb3e   : > { %v1627_v60 = vmul.f32 %v5091_v58, %v1612_v59  ;;  %v4436_v61 = vpop.f32.mrb[39].mxu0  ;;  %v4821_v58 = vpack.c.bf16 %v1908_v56, %v1907_v55 }
 0xb40   : > { %4446 = vmatmul.mubr.msk.f32.vlgmr.msra.gmra.mrb[30].mxu1 %vm429_vm4, %v1627_v60 }
 0xb41   : > { %v1617_v63 = vpop.f32.mrb[40].mxu0  ;;  %4448 = vmatprep.mubr.msk.f32.mxu1 %vm5241_vm3, %v5242_v52 }
 0xb42   : > { %v1629_v62 = vmul.f32 %v5093_v57, %v1617_v63  ;;  %v4439_v3 = vpop.f32.mrb[41].mxu0 }
 0xb44   : > { %4449 = vmatmul.mubr.msk.f32.gmra.mrb[32].mxu1 %vm429_vm4, %v1629_v62 }
 0xb45   : > { %v1622_v1 = vpop.f32.mrb[42].mxu0  ;;  %4451 = vmatprep.mubr.msk.f32.mxu1 %vm5241_vm3, %v5242_v52 }
 0xb46   : > { %v1631_v2 = vmul.f32 %v5095_v0, %v1622_v1  ;;  %v4442_v4 = vpop.f32.mrb[43].mxu0 }
 0xb47   : > { %v3977_v4 = vld [vmem:[%s6348_s1 + $0xb8] ss:$0 sm:$0xff] }
 0xb48   : > { %4452 = vmatmul.mubr.msk.f32.gmra.mrb[34].mxu1 %vm429_vm4, %v1631_v2 }
 0xb49   : > { %4503 = vmatprep.mubr.msk.f32.mxu1 %vm5241_vm3, %v5242_v52 }
 0xc13   : > { %v1707_v5 = vpop.f32.mrb[30].mxu1 }
 0xc14   : > { %v1721_v6 = vadd.f32 %v1707_v5, %v1394_v46  ;;  %v4447_v7 = vpop.f32.mrb[31].mxu1  ;;  %v1792_v46 = vld [vmem:[%s6348_s1 + $0xd8] sm:$0xff] }
 0xc15   : > { %v4812_v48 = vpack.c.bf16 %v1793_v47, %v1792_v46 }
 0xc16   : > { %v1724_v9 = vadd.f32 %v1721_v6, %v5359_v26  ;;  %v3978_v6 = vld [vmem:[%s6348_s1 + $0xc0] ss:$0 sm:$0xff] }
 0xc17   : > { %v1712_v10 = vpop.f32.mrb[32].mxu1  ;;  %4813 = vmatpush3.bf16.msra.mxu0 %v4812_v48 }
 0xc18   : > { %v5707_v11 = vadd.f32 %v3976_v8, %v1724_v9  ;;  %v1722_v12 = vadd.f32 %v1712_v10, %v1395_v17  ;;  %v4450_v13 = vpop.f32.mrb[33].mxu1  ;;  %4838 = vmatprep.subr.bf16.mxu0 %v5240_v49  ;;  %v1903_v17 = vld [vmem:[%s6348_s1 + $0xf0] sm:$0xff] }
 0xc1a   : > { %v1725_v14 = vadd.f32 %v1722_v12, %v5365_v29  ;;  %v1737_v16 = vsel %vm260_vm2, %v5707_v11, 0.0 }
 0xc1b   : > { %1738 = vadd.xlane.f32.xlu1 %v1737_v16  ;;  %v1717_v18 = vpop.f32.mrb[34].mxu1 }
 0xc1c   : > { %v5712_v21 = vadd.f32 %v3976_v8, %v1725_v14  ;;  %v1723_v24 = vadd.f32 %v1717_v18, %v1396_v53  ;;  %v4453_v25 = vpop.f32.mrb[35].mxu1  ;;  %v4815_v53 = vpack.c.bf16 %v1904_v50, %v1903_v17 }
 0xc1d   : > { %v1909_v25 = vld [vmem:[%s6348_s1 + $0x120] sm:$0xff] }
 0xc1e   : > { %v1726_v27 = vadd.f32 %v1723_v24, %v5354_v22  ;;  %v1740_v26 = vsel %vm260_vm2, %v5712_v21, 0.0  ;;  %4816 = vmatpush3.bf16.msra.mxu1 %v4815_v53 }
 0xc1f   : > { %1741 = vadd.xlane.f32.xlu0 %v1740_v26  ;;  %4817 = vmatprep.subr.bf16.mxu1 %v5240_v49 }
 0xc20   : > { %v5717_v28 = vadd.f32 %v3976_v8, %v1726_v27  ;;  %v1910_v27 = vld [vmem:[%s6348_s1 + $0x128] sm:$0xff] }
 0xc21   : > { %v4824_v26 = vpack.c.bf16 %v1910_v27, %v1909_v25 }
 0xc22   : > { %v1743_v29 = vsel %vm260_vm2, %v5717_v28, 0.0  ;;  %4819 = vmatpush3.bf16.msra.mxu1 %v4818_v19 }
 0xc23   : > { %1744 = vadd.xlane.f32.xlu1 %v1743_v29  ;;  %4820 = vmatprep.subr.bf16.mxu1 %v5240_v49  ;;  %v1911_v29 = vld [vmem:[%s6348_s1 + $0x130] sm:$0xff] }
 0xc26   : > { %4822 = vmatpush3.bf16.msra.mxu1 %v4821_v58 }
 0xc27   : > { %4823 = vmatprep.subr.bf16.mxu1 %v5240_v49 }
 0xc2a   : > { %4825 = vmatpush3.bf16.msra.mxu1 %v4824_v26 }
 0xc2b   : > { %4826 = vmatprep.subr.bf16.mxu1 %v5240_v49 }
 0xca8   : > { %v1739_v30 = vpop.xlane.xlu1 %1738 }
 0xca9   : > { %v1746_v32 = vmul.f32 0.03125, %v1739_v30  ;;  %v1912_v30 = vld [vmem:[%s6348_s1 + $0x138] sm:$0xff] }
 0xcab   : > { %v1749_v33 = vsub.f32 %v5707_v11, %v1746_v32  ;;  %v4827_v32 = vpack.c.bf16 %v1912_v30, %v1911_v29 }
 0xcac   : > { %v1742_v37 = vpop.xlane.xlu0 %1741 }
 0xcad   : > { %v1747_v34 = vmul.f32 0.03125, %v1742_v37  ;;  %v1752_v35 = vmul.f32 %v1749_v33, %v1749_v33  ;;  %4828 = vmatpush3.bf16.msra.mxu1 %v4827_v32  ;;  %v1914_v37 = vld [vmem:[%s6348_s1 + $0x148] sm:$0xff] }
 0xcae   : > { %4829 = vmatprep.subr.bf16.mxu1 %v5240_v49 }
 0xcaf   : > { %v1750_v39 = vsub.f32 %v5712_v21, %v1747_v34  ;;  %v1755_v22 = vsel %vm260_vm2, %v1752_v35, 0.0  ;;  %v1915_v35 = vld [vmem:[%s6348_s1 + $0x150] sm:$0xff] }
 0xcb0   : > { %1756 = vadd.xlane.f32.xlu0 %v1755_v22  ;;  %v1745_v36 = vpop.xlane.xlu1 %1744 }
 0xcb1   : > { %v1748_v20 = vmul.f32 0.03125, %v1745_v36  ;;  %v1753_v23 = vmul.f32 %v1750_v39, %v1750_v39  ;;  %v1917_v36 = vld [vmem:[%s6348_s1 + $0x160] sm:$0xff] }
 0xcb3   : > { %v1751_v38 = vsub.f32 %v5717_v28, %v1748_v20  ;;  %v1758_v40 = vsel %vm260_vm2, %v1753_v23, 0.0  ;;  %v1918_v20 = vld [vmem:[%s6348_s1 + $0x168] sm:$0xff] }
 0xcb4   : > { %1759 = vadd.xlane.f32.xlu1 %v1758_v40  ;;  %v4836_v23 = vpack.c.bf16 %v1918_v20, %v1917_v36  ;;  %v2063_v36 = vld [vmem:[%s6348_s1 + $0x190] sm:$0xff] }
 0xcb5   : > { %v1754_v41 = vmul.f32 %v1751_v38, %v1751_v38 }
 0xcb7   : > { %v1761_v42 = vsel %vm260_vm2, %v1754_v41, 0.0 }
 0xcb8   : > { %1762 = vadd.xlane.f32.xlu0 %v1761_v42 }
 0xd3d   : > { %v1757_v59 = vpop.xlane.xlu0 %1756 }
 0xd3e   : > { %v1764_v60 = vmul.f32 0.03125, %v1757_v59 }
 0xd40   : > { %v1767_v61 = vadd.f32 1e-05, %v1764_v60 }
 0xd41   : > { %v1760_v57 = vpop.xlane.xlu1 %1759 }
 0xd42   : > { %5096 = vrsqrt.f32 %v1767_v61  ;;  %v1765_v63 = vmul.f32 0.03125, %v1760_v57 }
 0xd44   : > { %v1768_v62 = vadd.f32 1e-05, %v1765_v63 }
 0xd45   : > { %v1763_v3 = vpop.xlane.xlu0 %1762 }
 0xd46   : > { %5098 = vrsqrt.f32 %v1768_v62  ;;  %v1766_v0 = vmul.f32 0.03125, %v1763_v3  ;;  %v3983_v3 = vld [vmem:[%s6348_s1 + $0x170] ss:$0 sm:$0xff] }
 0xd48   : > { %v1769_v1 = vadd.f32 1e-05, %v1766_v0 }
 0xd4a   : > { %5100 = vrsqrt.f32 %v1769_v1 }
 0xd4c   : > { %v5097_v2 = vpop.eup %5096 }
 0xd4d   : > { %v1773_v5 = vmul.f32 %v5097_v2, %v1749_v33  ;;  %v1913_v33 = vld [vmem:[%s6348_s1 + $0x140] sm:$0xff] }
 0xd4e   : > { %v4830_v34 = vpack.c.bf16 %v1914_v37, %v1913_v33 }
 0xd4f   : > { %v1780_v7 = vmul.f32 %v3977_v4, %v1773_v5 }
 0xd50   : > { %v5099_v8 = vpop.eup %5098  ;;  %4831 = vmatpush3.bf16.msra.mxu1 %v4830_v34 }
 0xd51   : > { %v1787_v9 = vadd.f32 %v3978_v6, %v1780_v7  ;;  %v1774_v10 = vmul.f32 %v5099_v8, %v1750_v39  ;;  %4832 = vmatprep.subr.bf16.mxu1 %v5240_v49  ;;  %v1916_v39 = vld [vmem:[%s6348_s1 + $0x158] sm:$0xff] }
 0xd52   : > { %v4833_v22 = vpack.c.bf16 %v1916_v39, %v1915_v35 }
 0xd53   : > { %4463 = vmatmul.mubr.msk.f32.vlgmr.msra.gmra.mrb[44].mxu0 %vm260_vm2, %v1787_v9  ;;  %v1781_v12 = vmul.f32 %v3977_v4, %v1774_v10 }
 0xd54   : > { %v5101_v13 = vpop.eup %5100  ;;  %4465 = vmatprep.mubr.msk.f32.mxu0 %vm5241_vm3, %v5242_v52  ;;  %4834 = vmatpush3.bf16.msra.mxu1 %v4833_v22  ;;  %v2062_v22 = vld [vmem:[%s6348_s1 + $0x188] sm:$0xff] }
 0xd55   : > { %v1788_v14 = vadd.f32 %v3978_v6, %v1781_v12  ;;  %v1775_v16 = vmul.f32 %v5101_v13, %v1751_v38  ;;  %4835 = vmatprep.subr.bf16.mxu1 %v5240_v49  ;;  %v3979_v38 = vld [vmem:[%s6348_s1 + $0xe8] ss:$0 sm:$0xff]  ;;  %v4839_v20 = vpack.c.bf16 %v2063_v36, %v2062_v22 }
 0xd57   : > { %4466 = vmatmul.mubr.msk.f32.gmra.mrb[46].mxu0 %vm260_vm2, %v1788_v14  ;;  %v1782_v18 = vmul.f32 %v3977_v4, %v1775_v16 }
 0xd58   : > { %4468 = vmatprep.mubr.msk.f32.mxu0 %vm5241_vm3, %v5242_v52  ;;  %4837 = vmatpush3.bf16.msra.mxu1 %v4836_v23  ;;  %v2064_v23 = vld [vmem:[%s6348_s1 + $0x198] sm:$0xff] }
 0xd59   : > { %v1789_v24 = vadd.f32 %v3978_v6, %v1782_v18  ;;  %4848 = vmatprep.subr.bf16.mxu1 %v5240_v49  ;;  %4840 = vmatpush3.bf16.msra.mxu0 %v4839_v20 }
 0xd5a   : > { %4841 = vmatprep.subr.bf16.mxu0 %v5240_v49 }
 0xd5b   : > { %4469 = vmatmul.mubr.msk.f32.gmra.mrb[48].mxu0 %vm260_vm2, %v1789_v24 }
 0xd5c   : > { %4520 = vmatprep.mubr.msk.f32.mxu0 %vm5241_vm3, %v5242_v52 }
 0xe26   : > { %v1874_v40 = vpop.f32.mrb[44].mxu0 }
 0xe27   : > { %v1875_v41 = vadd.f32 %v3979_v38, %v1874_v40  ;;  %v4464_v42 = vpop.f32.mrb[45].mxu0 }
 0xe29   : > { %v1891_v44 = vmul.f32 0.70710677, %v1875_v41  ;;  %v1888_v54 = vmul.f32 0.5, %v1875_v41 }
 0xe2a   : > { %v1879_v15 = vpop.f32.mrb[46].mxu0 }
 0xe2b   : > { %5102 = verf.f32 %v1891_v44  ;;  %v1880_v45 = vadd.f32 %v3979_v38, %v1879_v15  ;;  %v4467_v46 = vpop.f32.mrb[47].mxu0 }
 0xe2d   : > { %v1892_v47 = vmul.f32 0.70710677, %v1880_v45  ;;  %v1889_v58 = vmul.f32 0.5, %v1880_v45 }
 0xe2e   : > { %v1884_v48 = vpop.f32.mrb[48].mxu0 }
 0xe2f   : > { %5104 = verf.f32 %v1892_v47  ;;  %v1885_v17 = vadd.f32 %v3979_v38, %v1884_v48  ;;  %v4470_v50 = vpop.f32.mrb[49].mxu0  ;;  %v2065_v38 = vld [vmem:[%s6348_s1 + $0x1a0] sm:$0xff] }
 0xe30   : > { %v4842_v40 = vpack.c.bf16 %v2065_v38, %v2064_v23 }
 0xe31   : > { %v1893_v51 = vmul.f32 0.70710677, %v1885_v17  ;;  %v1890_v57 = vmul.f32 0.5, %v1885_v17 }
 0xe32   : > { %4843 = vmatpush3.bf16.msra.mxu0 %v4842_v40 }
 0xe33   : > { %5106 = verf.f32 %v1893_v51  ;;  %4844 = vmatprep.subr.bf16.mxu0 %v5240_v49  ;;  %v3984_v51 = vld [vmem:[%s6348_s1 + $0x178] ss:$0 sm:$0xff] }
 0xe35   : > { %v5103_v53 = vpop.eup %5102 }
 0xe36   : > { %v1897_v19 = vadd.f32 1.0, %v5103_v53 }
 0xe38   : > { %v1900_v55 = vmul.f32 %v1897_v19, %v1888_v54  ;;  %v3985_v54 = vld [vmem:[%s6348_s1 + $0x180] ss:$0 sm:$0xff] }
 0xe39   : > { %v5105_v56 = vpop.eup %5104 }
 0xe3a   : > { %v1898_v59 = vadd.f32 1.0, %v5105_v56  ;;  %4504 = vmatmul.mubr.f32.vlgmr.msra.gmra.mrb[36].mxu1 %v1900_v55 }
 0xe3b   : > { %4506 = vmatprep.mubr.msk.f32.mxu1 %vm5241_vm3, %v5242_v52 }
 0xe3c   : > { %v1901_v60 = vmul.f32 %v1898_v59, %v1889_v58 }
 0xe3d   : > { %v5107_v61 = vpop.eup %5106 }
 0xe3e   : > { %v1899_v63 = vadd.f32 1.0, %v5107_v61  ;;  %4507 = vmatmul.mubr.f32.gmra.mrb[38].mxu1 %v1901_v60 }
 0xe3f   : > { %4509 = vmatprep.mubr.msk.f32.mxu1 %vm5241_vm3, %v5242_v52 }
 0xe40   : > { %v1902_v62 = vmul.f32 %v1899_v63, %v1890_v57 }
 0xe42   : > { %4510 = vmatmul.mubr.f32.gmra.mrb[40].mxu1 %v1902_v62 }
 0xe43   : > { %4550 = vmatprep.mubr.msk.f32.mxu1 %vm5241_vm3, %v5242_v52 }
 0xf0d   : > { %v1990_v0 = vpop.f32.mrb[36].mxu1 }
 0xf0e   : > { %v1991_v1 = vadd.f32 %v3983_v3, %v1990_v0  ;;  %v4505_v2 = vpop.f32.mrb[37].mxu1 }
 0xf10   : > { %v5825_v4 = vadd.f32 %v1991_v1, %v5707_v11  ;;  %v3986_v1 = vld [vmem:[%s6348_s1 + $0x1a8] ss:$0 sm:$0xff] }
 0xf11   : > { %v1995_v5 = vpop.f32.mrb[38].mxu1 }
 0xf12   : > { %v1996_v6 = vadd.f32 %v3983_v3, %v1995_v5  ;;  %v4508_v7 = vpop.f32.mrb[39].mxu1  ;;  %v2009_v8 = vsel %vm260_vm2, %v5825_v4, 0.0 }
 0xf13   : > { %2010 = vadd.xlane.f32.xlu1 %v2009_v8 }
 0xf14   : > { %v5830_v9 = vadd.f32 %v1996_v6, %v5712_v21 }
 0xf15   : > { %v2000_v10 = vpop.f32.mrb[40].mxu1 }
 0xf16   : > { %v2001_v12 = vadd.f32 %v3983_v3, %v2000_v10  ;;  %v4511_v13 = vpop.f32.mrb[41].mxu1  ;;  %v2012_v14 = vsel %vm260_vm2, %v5830_v9, 0.0 }
 0xf17   : > { %2013 = vadd.xlane.f32.xlu0 %v2012_v14 }
 0xf18   : > { %v5835_v11 = vadd.f32 %v2001_v12, %v5717_v28 }
 0xf1a   : > { %v2015_v16 = vsel %vm260_vm2, %v5835_v11, 0.0 }
 0xf1b   : > { %2016 = vadd.xlane.f32.xlu1 %v2015_v16 }
 0xfa0   : > { %v2011_v18 = vpop.xlane.xlu1 %2010 }
 0xfa1   : > { %v2018_v24 = vmul.f32 0.03125, %v2011_v18 }
 0xfa3   : > { %v2021_v25 = vsub.f32 %v5825_v4, %v2018_v24 }
 0xfa4   : > { %v2014_v21 = vpop.xlane.xlu0 %2013 }
 0xfa5   : > { %v2019_v27 = vmul.f32 0.03125, %v2014_v21  ;;  %v2024_v26 = vmul.f32 %v2021_v25, %v2021_v25 }
 0xfa7   : > { %v2022_v29 = vsub.f32 %v5830_v9, %v2019_v27  ;;  %v2027_v30 = vsel %vm260_vm2, %v2024_v26, 0.0 }
 0xfa8   : > { %2028 = vadd.xlane.f32.xlu0 %v2027_v30  ;;  %v2017_v32 = vpop.xlane.xlu1 %2016 }
 0xfa9   : > { %v2020_v33 = vmul.f32 0.03125, %v2017_v32  ;;  %v2025_v28 = vmul.f32 %v2022_v29, %v2022_v29 }
 0xfab   : > { %v2023_v37 = vsub.f32 %v5835_v11, %v2020_v33  ;;  %v2030_v34 = vsel %vm260_vm2, %v2025_v28, 0.0 }
 0xfac   : > { %2031 = vadd.xlane.f32.xlu1 %v2030_v34 }
 0xfad   : > { %v2026_v35 = vmul.f32 %v2023_v37, %v2023_v37 }
 0xfaf   : > { %v2033_v39 = vsel %vm260_vm2, %v2026_v35, 0.0 }
 0xfb0   : > { %2034 = vadd.xlane.f32.xlu0 %v2033_v39 }
0x1035   : > { %v2029_v41 = vpop.xlane.xlu0 %2028 }
0x1036   : > { %v2036_v42 = vmul.f32 0.03125, %v2029_v41 }
0x1038   : > { %v2039_v44 = vadd.f32 1e-05, %v2036_v42 }
0x1039   : > { %v2032_v15 = vpop.xlane.xlu1 %2031 }
0x103a   : > { %5108 = vrsqrt.f32 %v2039_v44  ;;  %v2037_v45 = vmul.f32 0.03125, %v2032_v15 }
0x103c   : > { %v2040_v46 = vadd.f32 1e-05, %v2037_v45 }
0x103d   : > { %v2035_v47 = vpop.xlane.xlu0 %2034 }
0x103e   : > { %5110 = vrsqrt.f32 %v2040_v46  ;;  %v2038_v48 = vmul.f32 0.03125, %v2035_v47 }
0x1040   : > { %v2041_v17 = vadd.f32 1e-05, %v2038_v48 }
0x1042   : > { %5112 = vrsqrt.f32 %v2041_v17 }
0x1044   : > { %v5109_v50 = vpop.eup %5108 }
0x1045   : > { %v2045_v53 = vmul.f32 %v5109_v50, %v2021_v25 }
0x1047   : > { %v2052_v19 = vmul.f32 %v3984_v51, %v2045_v53 }
0x1048   : > { %v5111_v55 = vpop.eup %5110 }
0x1049   : > { %v2059_v56 = vadd.f32 %v3985_v54, %v2052_v19  ;;  %v2046_v58 = vmul.f32 %v5111_v55, %v2022_v29 }
0x104b   : > { %4521 = vmatmul.mubr.msk.f32.vlgmr.msra.gmra.mrb[50].mxu0 %vm260_vm2, %v2059_v56  ;;  %v2053_v59 = vmul.f32 %v3984_v51, %v2046_v58 }
0x104c   : > { %v5113_v60 = vpop.eup %5112  ;;  %4523 = vmatprep.mubr.msk.f32.mxu0 %vm5241_vm3, %v5242_v52 }
0x104d   : > { %v2060_v61 = vadd.f32 %v3985_v54, %v2053_v59  ;;  %v2047_v57 = vmul.f32 %v5113_v60, %v2023_v37 }
0x104f   : > { %4524 = vmatmul.mubr.msk.f32.gmra.mrb[52].mxu0 %vm260_vm2, %v2060_v61  ;;  %v2054_v63 = vmul.f32 %v3984_v51, %v2047_v57 }
0x1050   : > { %4526 = vmatprep.mubr.msk.f32.mxu0 %vm5241_vm3, %v5242_v52 }
0x1051   : > { %v2061_v62 = vadd.f32 %v3985_v54, %v2054_v63 }
0x1053   : > { %4527 = vmatmul.mubr.msk.f32.gmra.mrb[54].mxu0 %vm260_vm2, %v2061_v62 }
0x1054   : > { %4535 = vmatprep.mubr.msk.f32.mxu0 %vm5241_vm3, %v5242_v52 }
0x111e   : > { %v2146_v3 = vpop.f32.mrb[50].mxu0 }
0x111f   : > { %v4522_v0 = vpop.f32.mrb[51].mxu0  ;;  %v2147_v5 = vadd.f32 %v3986_v1, %v2146_v3 }
0x1121   : > { %v5893_v16 = vmul.f32 0.35355338, %v2147_v5 }
0x1122   : > { %v2151_v2 = vpop.f32.mrb[52].mxu0 }
0x1123   : > { %v2152_v6 = vadd.f32 %v3986_v1, %v2151_v2  ;;  %v4525_v7 = vpop.f32.mrb[53].mxu0 }
0x1125   : > { %v5877_v8 = vpack.i.bf16 %v2152_v6, %v2147_v5  ;;  %v5887_v14 = vmul.f32 0.35355338, %v2152_v6 }
0x1126   : > { %v2156_v10 = vpop.f32.mrb[54].mxu0 }
0x1127   : > { %v5879_v12 = vadd.f32 %v3986_v1, %v2156_v10  ;;  %5003 = vrot.lane.b32.xlu1 %v5877_v8, %s5243_s24  ;;  %v4528_v13 = vpop.f32.mrb[55].mxu0 }
0x1129   : > { %2174 = vrot.lane.b32.xlu0 %v5879_v12, %s5243_s24  ;;  %v5898_v18 = vmul.f32 0.35355338, %v5879_v12  ;;  %s135_s24 = scalar_lea.vmem [#allocation2], %s134_s6 }
0x112b   : > { %5008 = vrot.lane.b32.xlu1 %v5877_v8, %s5246_s26 }
0x112d   : > { %2404 = vrot.lane.b32.xlu0 %v5887_v14, %s5247_s27 }
0x112f   : > { %2412 = vrot.lane.b32.xlu1 %v5879_v12, %s5246_s26 }
0x1133   : > { %2402 = vrot.lane.b32.xlu1 %v5893_v16, %s5247_s27 }
0x1137   : > { %2406 = vrot.lane.b32.xlu1 %v5898_v18, %s5247_s27 }
0x1199   : > { %v5004_v24 = vpop.permute.xlu1 %5003 }
0x119a   : > { %v5006_v25 = vunpack.i.h.bf16 %v5004_v24  ;;  %v5005_v21 = vunpack.i.l.bf16 %v5004_v24 }
0x119b   : > { %v2175_v32 = vpop.permute.xlu0 %2174 }
0x119c   : > { %v4845_v27 = vpack.c.bf16 %v5006_v25, %v5005_v21 }
0x119d   : > { %v5009_v26 = vpop.permute.xlu1 %5008 }
0x119e   : > { %4847 = vmatpush3.bf16.xpose.msk.msra.mxu0 %vm5425_vm5, %v4845_v27  ;;  %v5011_v29 = vunpack.i.h.bf16 %v5009_v26  ;;  %v5010_v30 = vunpack.i.l.bf16 %v5009_v26 }
0x119f   : > { %4533 = vmatprep.subr.mxu0 %v5242_v52  ;;  %v2405_v34 = vpop.permute.xlu0 %2404 }
0x11a0   : > { %v4852_v33 = vpack.c.bf16 %v5011_v29, %v5010_v30 }
0x11a1   : > { %v2413_v28 = vpop.permute.xlu1 %2412 }
0x11a5   : > { %v2403_v37 = vpop.permute.xlu1 %2402 }
0x11a6   : > { %4534 = vmatpush3.xpose.msk.msra.mxu0 %vm429_vm4, %v2175_v32 }
0x11a7   : > { %4851 = vmatprep.subr.bf16.mxu0 %v5240_v49 }
0x11a9   : > { %4536 = vmatmul.mubr.msk.f32.vlgmr.msra.gmra.mrb[56].mxu0 %vm429_vm4, %v5893_v16  ;;  %v2407_v35 = vpop.permute.xlu1 %2406 }
0x11aa   : > { %4854 = vmatpush3.bf16.xpose.msk.msra.mxu0 %vm5425_vm5, %v4852_v33  ;;  %4538 = vmatprep.mubr.msk.f32.mxu0 %vm5241_vm3, %v5242_v52 }
0x11ab   : > { %4563 = vmatprep.subr.mxu0 %v5242_v52 }
0x11ad   : > { %4539 = vmatmul.mubr.msk.f32.gmra.mrb[58].mxu0 %vm429_vm4, %v5887_v14 }
0x11ae   : > { %4541 = vmatprep.mubr.msk.f32.mxu0 %vm5241_vm3, %v5242_v52 }
0x11b1   : > { %4542 = vmatmul.mubr.msk.f32.gmra.mrb[60].mxu0 %vm429_vm4, %v5898_v18 }
0x11b2   : > { %4564 = vmatpush3.xpose.msk.msra.mxu0 %vm429_vm4, %v2413_v28  ;;  %4565 = vmatprep.mubr.msk.f32.mxu0 %vm5241_vm3, %v5242_v52 }
0x11b3   : > { %4589 = vmatprep.subr.mxu0 %v5242_v52 }
0x11b5   : > { %4566 = vmatmul.mubr.msk.f32.vlgmr.msra.gmra.mrb[62].mxu0 %vm429_vm4, %v2403_v37 }
0x11b6   : > { %4568 = vmatprep.mubr.msk.f32.mxu0 %vm5241_vm3, %v5242_v52 }
0x11b9   : > { %4569 = vmatmul.mubr.msk.f32.gmra.mrb[64].mxu0 %vm429_vm4, %v2405_v34 }
0x11ba   : > { %4571 = vmatprep.mubr.msk.f32.mxu0 %vm5241_vm3, %v5242_v52 }
0x11bd   : > { %4572 = vmatmul.mubr.msk.f32.gmra.mrb[66].mxu0 %vm429_vm4, %v2407_v35 }
0x11be   : > { %4591 = vmatprep.mubr.msk.f32.mxu0 %vm5241_vm3, %v5242_v52 }
0x127c   : > { %v2257_v39 = vpop.f32.mrb[56].mxu0 }
0x127d   : > { %v2258_v22 = vadd.f32 %v2257_v39, %v5454_v43  ;;  %v4537_v36 = vpop.f32.mrb[57].mxu0 }
0x127f   : > { %v2271_v20 = vsel %vm525_vm7, %v2258_v22, -inf }
0x1280   : > { %2272 = vmax.xlane.f32.xlu0 %v2271_v20  ;;  %v2262_v23 = vpop.f32.mrb[58].mxu0 }
0x1281   : > { %v2263_v38 = vadd.f32 %v2262_v23, %v5454_v43  ;;  %v4540_v40 = vpop.f32.mrb[59].mxu0 }
0x1283   : > { %v2274_v41 = vsel %vm525_vm7, %v2263_v38, -inf }
0x1284   : > { %2275 = vmax.xlane.f32.xlu1 %v2274_v41  ;;  %v2267_v42 = vpop.f32.mrb[60].mxu0 }
0x1285   : > { %v2268_v44 = vadd.f32 %v2267_v42, %v5454_v43  ;;  %v4543_v15 = vpop.f32.mrb[61].mxu0 }
0x1286   : > { %v2161_v15 = vld [vmem:[%s6348_s1 + $0x1b8] sm:$0xff] }
0x1287   : > { %v2277_v45 = vsel %vm525_vm7, %v2268_v44, -inf  ;;  %4590 = vmatpush3.msra.mxu0 %v2161_v15 }
0x1288   : > { %2278 = vmax.xlane.f32.xlu0 %v2277_v45  ;;  %v2492_v46 = vpop.f32.mrb[62].mxu0  ;;  %4858 = vmatprep.subr.bf16.mxu0 %v5240_v49 }
0x1289   : > { %v2493_v47 = vadd.f32 %v2492_v46, %v5454_v43  ;;  %v4567_v48 = vpop.f32.mrb[63].mxu0 }
0x128b   : > { %v2506_v17 = vsel %vm525_vm7, %v2493_v47, -inf }
0x128c   : > { %2507 = vmax.xlane.f32.xlu0 %v2506_v17  ;;  %v2497_v50 = vpop.f32.mrb[64].mxu0 }
0x128d   : > { %v2498_v51 = vadd.f32 %v2497_v50, %v5454_v43  ;;  %v4570_v53 = vpop.f32.mrb[65].mxu0 }
0x128f   : > { %v2509_v54 = vsel %vm525_vm7, %v2498_v51, -inf }
0x1290   : > { %2510 = vmax.xlane.f32.xlu0 %v2509_v54  ;;  %v2502_v19 = vpop.f32.mrb[66].mxu0 }
0x1291   : > { %v4573_v55 = vpop.f32.mrb[67].mxu0  ;;  %v2503_v56 = vadd.f32 %v2502_v19, %v5454_v43 }
0x1293   : > { %v2512_v58 = vsel %vm525_vm7, %v2503_v56, -inf }
0x1295   : > { %2302 = vrot.lane.b32.xlu1 %v5879_v12, %s5244_s25 }
0x1299   : > { %5018 = vrot.lane.b32.xlu1 %v5877_v8, %s5248_s28 }
0x12a6   : > { %5013 = vrot.lane.b32.xlu0 %v5877_v8, %s5244_s25  ;;  %s3858_s25 = sshll.u32 %s135_s24, 4  ;;  %s6307_s25 = int_to_ptr.vmem [resolvable:$true] %s3858_s25 }
0x12a7   : > { %s5176_s13 = scalar_lea.vmem %s6307_s25, 16 }
0x12a8   : > { %p5177_p11 = scmp.ne.s32.totalorder %s6307_s25, %s5176_s13 }
0x12aa   : > { %p5178_p12 = pnand %p5177_p11, %p5309_p5 }
0x12ac   : > { %p5179_p13 = pneg %p5178_p12 }
0x12bd   : > { %2513 = vmax.xlane.f32.xlu1 %v2512_v58 }
0x12ce   : > { %2537 = vrot.lane.b32.xlu1 %v5879_v12, %s5248_s28  ;;  %s6358_s28 = smov 104  }
0x130d   : > { %v2273_v59 = vpop.xlane.xlu0 %2272 }
0x130e   : > { %v2280_v57 = vsub.f32 %v2258_v22, %v2273_v59 }
0x1310   : > { %v2283_v3 = vmul.f32 1.442695, %v2280_v57 }
0x1311   : > { %v2276_v61 = vpop.xlane.xlu1 %2275 }
0x1312   : > { %v2281_v0 = vsub.f32 %v2263_v38, %v2276_v61 }
0x1314   : > { %v2285_v7 = vmul.f32 1.442695, %v2281_v0 }
0x1315   : > { %v2279_v60 = vpop.xlane.xlu0 %2278  ;;  %v2303_v2 = vpop.permute.xlu1 %2302 }
0x1316   : > { %v2282_v10 = vsub.f32 %v2268_v44, %v2279_v60 }
0x1318   : > { %v2287_v26 = vmul.f32 1.442695, %v2282_v10 }
0x1319   : > { %v2508_v63 = vpop.xlane.xlu0 %2507  ;;  %v5019_v27 = vpop.permute.xlu1 %5018 }
0x131a   : > { %v2515_v62 = vsub.f32 %v2493_v47, %v2508_v63  ;;  %v5021_v30 = vunpack.i.h.bf16 %v5019_v27  ;;  %v5020_v32 = vunpack.i.l.bf16 %v5019_v27  ;;  %v2160_v47 = vld [vmem:[%s6348_s1 + $0x1b0] sm:$0xff] }
0x131c   : > { %v2518_v1 = vmul.f32 1.442695, %v2515_v62  ;;  %v4856_v34 = vpack.c.bf16 %v5021_v30, %v5020_v32 }
0x131d   : > { %v2511_v5 = vpop.xlane.xlu0 %2510 }
0x131e   : > { %5114 = vpow2.f32 %v2518_v1  ;;  %v2516_v6 = vsub.f32 %v2498_v51, %v2511_v5 }
0x131f   : > { %5116 = vpow2.f32 %v2283_v3 }
0x1320   : > { %v2520_v13 = vmul.f32 1.442695, %v2516_v6 }
0x1321   : > { %v5014_v24 = vpop.permute.xlu0 %5013 }
0x1322   : > { %5118 = vpow2.f32 %v2520_v13  ;;  %v5016_v25 = vunpack.i.h.bf16 %v5014_v24  ;;  %v5015_v21 = vunpack.i.l.bf16 %v5014_v24 }
0x1323   : > { %5120 = vpow2.f32 %v2285_v7 }
0x1324   : > { %v4849_v29 = vpack.c.bf16 %v5016_v25, %v5015_v21  ;;  %5122 = vpow2.f32 %v2287_v26 }
0x1326   : > { %4850 = vmatpush3.bf16.msra.mxu1 %v4849_v29 }
0x1327   : > { %4548 = vmatprep.subr.mxu1 %v5242_v52 }
0x1328   : > { %v5115_v33 = vpop.eup %5114 }
0x1329   : > { %v2524_v28 = vsel %vm525_vm7, %v5115_v33, 0.0  ;;  %v5117_v37 = vpop.eup %5116 }
0x132a   : > { %2525 = vadd.xlane.f32.xlu0 %v2524_v28  ;;  %4549 = vmatpush3.msra.mxu1 %v2303_v2  ;;  %v2289_v45 = vsel %vm525_vm7, %v5117_v37, 0.0 }
0x132b   : > { %4551 = vmatmul.mubr.msk.f32.vlgmr.msra.gmra.mrb[42].mxu1 %vm525_vm7, %v5117_v37  ;;  %4855 = vmatprep.subr.bf16.mxu1 %v5240_v49 }
0x132c   : > { %v5119_v35 = vpop.eup %5118  ;;  %4857 = vmatpush3.bf16.msra.mxu1 %v4856_v34  ;;  %4553 = vmatprep.mubr.msk.f32.mxu1 %vm5241_vm3, %v5242_v52 }
0x132d   : > { %v2527_v39 = vsel %vm525_vm7, %v5119_v35, 0.0  ;;  %4578 = vmatprep.subr.mxu1 %v5242_v52  ;;  %v5121_v22 = vpop.eup %5120 }
0x132e   : > { %2528 = vadd.xlane.f32.xlu1 %v2527_v39  ;;  %v5123_v36 = vpop.eup %5122  ;;  %v2292_v44 = vsel %vm525_vm7, %v5121_v22, 0.0 }
0x132f   : > { %4554 = vmatmul.mubr.msk.f32.gmra.mrb[44].mxu1 %vm525_vm7, %v5121_v22  ;;  %v2295_v46 = vsel %vm525_vm7, %v5123_v36, 0.0 }
0x1330   : > { %4556 = vmatprep.mubr.msk.f32.mxu1 %vm5241_vm3, %v5242_v52 }
0x1333   : > { %4557 = vmatmul.mubr.msk.f32.gmra.mrb[46].mxu1 %vm525_vm7, %v5123_v36 }
0x1334   : > { %4580 = vmatprep.mubr.msk.f32.mxu1 %vm5241_vm3, %v5242_v52 }
0x133f   : > { %2825 = vrot.lane.b32.xlu1 %v5879_v12, %s5249_s29 }
0x1343   : > { %2815 = vrot.lane.b32.xlu1 %v5893_v16, %s5250_s30 }
0x1347   : > { %2819 = vrot.lane.b32.xlu1 %v5898_v18, %s5250_s30 }
0x134a   : > { %v2514_v20 = vpop.xlane.xlu1 %2513 }
0x134b   : > { %v2517_v23 = vsub.f32 %v2503_v56, %v2514_v20 }
0x134d   : > { %v2522_v38 = vmul.f32 1.442695, %v2517_v23 }
0x134e   : > { %v2538_v40 = vpop.permute.xlu1 %2537 }
0x134f   : > { %5124 = vpow2.f32 %v2522_v38  ;;  %4579 = vmatpush3.msra.mxu1 %v2538_v40 }
0x1350   : > { %4581 = vmatmul.mubr.msk.f32.vlgmr.msra.gmra.mrb[48].mxu1 %vm525_vm7, %v5115_v33  ;;  %4600 = vmatprep.subr.mxu1 %v5242_v52 }
0x1351   : > { %4583 = vmatprep.mubr.msk.f32.mxu1 %vm5241_vm3, %v5242_v52  ;;  %4601 = vmatpush3.msra.mxu1 %v2160_v47 }
0x1352   : > { %4862 = vmatprep.subr.bf16.mxu1 %v5240_v49 }
0x1354   : > { %4584 = vmatmul.mubr.msk.f32.gmra.mrb[50].mxu1 %vm525_vm7, %v5119_v35 }
0x1355   : > { %4586 = vmatprep.mubr.msk.f32.mxu1 %vm5241_vm3, %v5242_v52 }
0x1359   : > { %v5125_v41 = vpop.eup %5124 }
0x135a   : > { %4587 = vmatmul.mubr.msk.f32.gmra.mrb[52].mxu1 %vm525_vm7, %v5125_v41  ;;  %v2530_v42 = vsel %vm525_vm7, %v5125_v41, 0.0 }
0x135b   : > { %2531 = vadd.xlane.f32.xlu0 %v2530_v42  ;;  %4602 = vmatprep.mubr.msk.f32.mxu1 %vm5241_vm3, %v5242_v52 }
0x136b   : > { %2293 = vadd.xlane.f32.xlu1 %v2292_v44 }
0x1371   : > { %5023 = vrot.lane.b32.xlu0 %v5877_v8, %s5249_s29  ;;  %s6359_s29 = smov 40  }
0x1375   : > { %2817 = vrot.lane.b32.xlu0 %v5887_v14, %s5250_s30  ;;  %s5255_s30 = smov [#allocation2]  }
0x137c   : > { %2950 = vrot.lane.b32.xlu1 %v5879_v12, %s5251_s3 }
0x1380   : > { %5033 = vrot.lane.b32.xlu1 %v5877_v8, %s5252_s8 }
0x1394   : > { %2290 = vadd.xlane.f32.xlu0 %v2289_v45 }
0x1398   : > { %2296 = vadd.xlane.f32.xlu0 %v2295_v46 }
0x13b7   : > { %v2526_v55 = vpop.xlane.xlu0 %2525 }
0x13b8   : > { %5126 = vrcp.f32 %v2526_v55 }
0x13bb   : > { %v2529_v19 = vpop.xlane.xlu1 %2528 }
0x13bc   : > { %5128 = vrcp.f32 %v2529_v19 }
0x13bf   : > { %v2826_v56 = vpop.permute.xlu1 %2825 }
0x13c2   : > { %v5127_v1 = vpop.eup %5126 }
0x13c3   : > { %v2816_v59 = vpop.permute.xlu1 %2815 }
0x13c6   : > { %v5129_v13 = vpop.eup %5128 }
0x13c7   : > { %v2820_v61 = vpop.permute.xlu1 %2819 }
0x13e8   : > { %v2532_v58 = vpop.xlane.xlu0 %2531 }
0x13ec   : > { %v5024_v60 = vpop.permute.xlu0 %5023 }
0x13ed   : > { %v5026_v63 = vunpack.i.h.bf16 %v5024_v60  ;;  %v5025_v62 = vunpack.i.l.bf16 %v5024_v60 }
0x13ef   : > { %v4859_v7 = vpack.c.bf16 %v5026_v63, %v5025_v62 }
0x13f0   : > { %v2818_v57 = vpop.permute.xlu0 %2817 }
0x13f8   : > { %v2294_v3 = vpop.xlane.xlu1 %2293 }
0x13fe   : > { %v2382_v48 = vpop.f32.mrb[42].mxu1 }
0x13ff   : > { %v4552_v17 = vpop.f32.mrb[43].mxu1 }
0x1402   : > { %v2387_v50 = vpop.f32.mrb[44].mxu1 }
0x1403   : > { %v4555_v51 = vpop.f32.mrb[45].mxu1 }
0x1406   : > { %v2392_v53 = vpop.f32.mrb[46].mxu1 }
0x1407   : > { %v4558_v54 = vpop.f32.mrb[47].mxu1 }
0x1421   : > { %v2291_v0 = vpop.xlane.xlu0 %2290 }
0x1422   : > { %5130 = vrcp.f32 %v2291_v0 }
0x1423   : > { %5132 = vrcp.f32 %v2532_v58  ;;  %v2617_v2 = vpop.f32.mrb[48].mxu1 }
0x1424   : > { %5134 = vrcp.f32 %v2294_v3  ;;  %v2632_v5 = vmul.f32 %v5127_v1, %v2617_v2  ;;  %v4582_v6 = vpop.f32.mrb[49].mxu1 }
0x1425   : > { %v2297_v10 = vpop.xlane.xlu0 %2296 }
0x1426   : > { %4592 = vmatmul.mubr.msk.f32.vlgmr.msra.gmra.mrb[68].mxu0 %vm429_vm4, %v2632_v5  ;;  %5136 = vrcp.f32 %v2297_v10 }
0x1427   : > { %4861 = vmatpush3.bf16.xpose.msk.msra.mxu0 %vm5425_vm5, %v4859_v7  ;;  %v2622_v24 = vpop.f32.mrb[50].mxu1  ;;  %4594 = vmatprep.mubr.msk.f32.mxu0 %vm5241_vm3, %v5242_v52 }
0x1428   : > { %v2634_v25 = vmul.f32 %v5129_v13, %v2622_v24  ;;  %v4585_v21 = vpop.f32.mrb[51].mxu1  ;;  %4615 = vmatprep.subr.mxu0 %v5242_v52 }
0x142a   : > { %4595 = vmatmul.mubr.msk.f32.gmra.mrb[70].mxu0 %vm429_vm4, %v2634_v25 }
0x142b   : > { %4597 = vmatprep.mubr.msk.f32.mxu0 %vm5241_vm3, %v5242_v52 }
0x142c   : > { %v5131_v27 = vpop.eup %5130 }
0x142d   : > { %v5133_v26 = vpop.eup %5132  ;;  %v2397_v29 = vmul.f32 %v5131_v27, %v2382_v48  ;;  %v2627_v30 = vpop.f32.mrb[52].mxu1 }
0x142e   : > { %v5135_v32 = vpop.eup %5134  ;;  %v2636_v33 = vmul.f32 %v5133_v26, %v2627_v30  ;;  %v4588_v28 = vpop.f32.mrb[53].mxu1 }
0x142f   : > { %4616 = vmatpush3.xpose.msk.msra.mxu0 %vm429_vm4, %v2826_v56  ;;  %4603 = vmatmul.mubr.msk.f32.vlgmr.msra.gmra.mrb[54].mxu1 %vm429_vm4, %v2397_v29  ;;  %v2399_v37 = vmul.f32 %v5135_v32, %v2387_v50 }
0x1430   : > { %4598 = vmatmul.mubr.msk.f32.gmra.mrb[72].mxu0 %vm429_vm4, %v2636_v33  ;;  %4605 = vmatprep.mubr.msk.f32.mxu1 %vm5241_vm3, %v5242_v52  ;;  %v5137_v34 = vpop.eup %5136 }
0x1431   : > { %4617 = vmatprep.mubr.msk.f32.mxu0 %vm5241_vm3, %v5242_v52  ;;  %4641 = vmatprep.subr.mxu0 %v5242_v52  ;;  %v2401_v35 = vmul.f32 %v5137_v34, %v2392_v53 }
0x1433   : > { %4606 = vmatmul.mubr.msk.f32.gmra.mrb[56].mxu1 %vm429_vm4, %v2399_v37 }
0x1434   : > { %4618 = vmatmul.mubr.msk.f32.vlgmr.msra.gmra.mrb[74].mxu0 %vm429_vm4, %v2816_v59  ;;  %4608 = vmatprep.mubr.msk.f32.mxu1 %vm5241_vm3, %v5242_v52 }
0x1435   : > { %4620 = vmatprep.mubr.msk.f32.mxu0 %vm5241_vm3, %v5242_v52  ;;  %4642 = vmatpush3.msra.mxu0 %v2162_v31 }
0x1436   : > { %4869 = vmatprep.subr.bf16.mxu0 %v5240_v49 }
0x1437   : > { %4609 = vmatmul.mubr.msk.f32.gmra.mrb[58].mxu1 %vm429_vm4, %v2401_v35 }
0x1438   : > { %4621 = vmatmul.mubr.msk.f32.gmra.mrb[76].mxu0 %vm429_vm4, %v2818_v57  ;;  %4632 = vmatprep.mubr.msk.f32.mxu1 %vm5241_vm3, %v5242_v52  ;;  %v2951_v57 = vpop.permute.xlu1 %2950 }
0x1439   : > { %4623 = vmatprep.mubr.msk.f32.mxu0 %vm5241_vm3, %v5242_v52 }
0x143c   : > { %4624 = vmatmul.mubr.msk.f32.gmra.mrb[78].mxu0 %vm429_vm4, %v2820_v61  ;;  %v5034_v0 = vpop.permute.xlu1 %5033 }
0x143d   : > { %4643 = vmatprep.mubr.msk.f32.mxu0 %vm5241_vm3, %v5242_v52  ;;  %v5036_v26 = vunpack.i.h.bf16 %v5034_v0  ;;  %v5035_v29 = vunpack.i.l.bf16 %v5034_v0 }
0x143f   : > { %v4866_v33 = vpack.c.bf16 %v5036_v26, %v5035_v29 }
0x14f9   : > { %v2712_v39 = vpop.f32.mrb[68].mxu0 }
0x14fa   : > { %v4593_v22 = vpop.f32.mrb[69].mxu0 }
0x14fd   : > { %v2717_v36 = vpop.f32.mrb[70].mxu0 }
0x14fe   : > { %v4596_v20 = vpop.f32.mrb[71].mxu0 }
0x1502   : > { %v2801_v23 = vpop.f32.mrb[54].mxu1 }
0x1503   : > { %v6035_v38 = vadd.f32 %v2801_v23, %v2712_v39  ;;  %v2722_v40 = vpop.f32.mrb[72].mxu0  ;;  %v4604_v41 = vpop.f32.mrb[55].mxu1 }
0x1504   : > { %v4599_v42 = vpop.f32.mrb[73].mxu0 }
0x1506   : > { %v2806_v44 = vpop.f32.mrb[56].mxu1 }
0x1507   : > { %v6037_v15 = vadd.f32 %v2806_v44, %v2717_v36  ;;  %v4607_v45 = vpop.f32.mrb[57].mxu1  ;;  %v2905_v46 = vpop.f32.mrb[74].mxu0 }
0x1508   : > { %v2906_v47 = vadd.f32 %v2905_v46, %v5454_v43  ;;  %v4619_v48 = vpop.f32.mrb[75].mxu0 }
0x150a   : > { %v2811_v17 = vpop.f32.mrb[58].mxu1  ;;  %v2919_v50 = vsel %vm525_vm7, %v2906_v47, -inf }
0x150b   : > { %v6041_v51 = vadd.f32 %v2811_v17, %v2722_v40  ;;  %2920 = vmax.xlane.f32.xlu0 %v2919_v50  ;;  %v4610_v53 = vpop.f32.mrb[59].mxu1  ;;  %v2910_v54 = vpop.f32.mrb[76].mxu0 }
0x150c   : > { %v2911_v19 = vadd.f32 %v2910_v54, %v5454_v43  ;;  %v4622_v55 = vpop.f32.mrb[77].mxu0 }
0x150e   : > { %v2922_v56 = vsel %vm525_vm7, %v2911_v19, -inf }
0x150f   : > { %2923 = vmax.xlane.f32.xlu0 %v2922_v56  ;;  %v2915_v58 = vpop.f32.mrb[78].mxu0 }
0x1510   : > { %v2916_v59 = vadd.f32 %v2915_v58, %v5454_v43  ;;  %v4625_v60 = vpop.f32.mrb[79].mxu0 }
0x1512   : > { %v2925_v61 = vsel %vm525_vm7, %v2916_v59, -inf }
0x1513   : > { %2926 = vmax.xlane.f32.xlu1 %v2925_v61 }
0x1524   : > { %3152 = vrot.lane.b32.xlu1 %v5879_v12, %s5252_s8 }
0x1525   : > { %5028 = vrot.lane.b32.xlu0 %v5877_v8, %s5251_s3  ;;  %s5180_s3 = sshll.u32 %s5255_s30, 4  ;;  %s5181_s3 = int_to_ptr.vmem [resolvable:$false] %s5180_s3 }
0x1526   : > { %s5182_s8 = scalar_lea.vmem %s5181_s3, 32  ;;  %p5183_p0 = scmp.lt.s32.totalorder %s6307_s25, %s5181_s3 }
0x1527   : > { %p5184_p1 = scmp.lt.s32.totalorder %s5182_s8, %s5176_s13 }
0x1529   : > { %3142 = vrot.lane.b32.xlu0 %v5893_v16, %s6358_s28  ;;  %p5185_p2 = por %p5184_p1, %p5183_p0 }
0x152b   : > { %p5186_p3 = pnand %p5185_p2, %p5179_p13 }
0x1598   : > { %v2921_v63 = vpop.xlane.xlu0 %2920 }
0x1599   : > { %v2928_v62 = vsub.f32 %v2906_v47, %v2921_v63 }
0x159b   : > { %v2931_v3 = vmul.f32 1.442695, %v2928_v62 }
0x159c   : > { %v2924_v1 = vpop.xlane.xlu0 %2923 }
0x159d   : > { %5138 = vpow2.f32 %v2931_v3  ;;  %v2929_v2 = vsub.f32 %v2911_v19, %v2924_v1 }
0x159f   : > { %v2933_v5 = vmul.f32 1.442695, %v2929_v2 }
0x15a0   : > { %v5029_v6 = vpop.permute.xlu0 %5028  ;;  %v2927_v7 = vpop.xlane.xlu1 %2926 }
0x15a1   : > { %5140 = vpow2.f32 %v2933_v5  ;;  %v5031_v10 = vunpack.i.h.bf16 %v5029_v6  ;;  %v5030_v13 = vunpack.i.l.bf16 %v5029_v6  ;;  %v2930_v24 = vsub.f32 %v2916_v59, %v2927_v7 }
0x15a3   : > { %v4863_v25 = vpack.c.bf16 %v5031_v10, %v5030_v13  ;;  %v2935_v21 = vmul.f32 1.442695, %v2930_v24 }
0x15a4   : > { %v3153_v34 = vpop.permute.xlu1 %3152  ;;  %v3143_v35 = vpop.permute.xlu0 %3142 }
0x15a5   : > { %5142 = vpow2.f32 %v2935_v21  ;;  %4864 = vmatpush3.bf16.msra.mxu1 %v4863_v25 }
0x15a6   : > { %4630 = vmatprep.subr.mxu1 %v5242_v52 }
0x15a7   : > { %v5139_v16 = vpop.eup %5138 }
0x15a8   : > { %v2937_v27 = vsel %vm525_vm7, %v5139_v16, 0.0 }
0x15a9   : > { %4631 = vmatpush3.msra.mxu1 %v2951_v57  ;;  %2938 = vadd.xlane.f32.xlu1 %v2937_v27 }
0x15aa   : > { %4633 = vmatmul.mubr.msk.f32.vlgmr.msra.gmra.mrb[60].mxu1 %vm525_vm7, %v5139_v16  ;;  %4865 = vmatprep.subr.bf16.mxu1 %v5240_v49 }
0x15ab   : > { %v5141_v30 = vpop.eup %5140  ;;  %4635 = vmatprep.mubr.msk.f32.mxu1 %vm5241_vm3, %v5242_v52 }
0x15ac   : > { %v2940_v32 = vsel %vm525_vm7, %v5141_v30, 0.0 }
0x15ad   : > { %2941 = vadd.xlane.f32.xlu0 %v2940_v32 }
0x15ae   : > { %4636 = vmatmul.mubr.msk.f32.gmra.mrb[62].mxu1 %vm525_vm7, %v5141_v30 }
0x15af   : > { %v5143_v28 = vpop.eup %5142  ;;  %4638 = vmatprep.mubr.msk.f32.mxu1 %vm5241_vm3, %v5242_v52 }
0x15b0   : > { %4868 = vmatpush3.bf16.xpose.msk.msra.mxu1 %vm5425_vm5, %v4866_v33  ;;  %v2943_v37 = vsel %vm525_vm7, %v5143_v28, 0.0 }
0x15b1   : > { %2944 = vadd.xlane.f32.xlu0 %v2943_v37  ;;  %4656 = vmatprep.subr.mxu1 %v5242_v52 }
0x15b2   : > { %4639 = vmatmul.mubr.msk.f32.gmra.mrb[64].mxu1 %vm525_vm7, %v5143_v28 }
0x15b3   : > { %4658 = vmatprep.mubr.msk.f32.mxu1 %vm5241_vm3, %v5242_v52 }
0x15b8   : > { %4657 = vmatpush3.xpose.msk.msra.mxu1 %vm429_vm4, %v3153_v34 }
0x15b9   : > { %4682 = vmatprep.subr.mxu1 %v5242_v52 }
0x15ba   : > { %5038 = vrot.lane.b32.xlu1 %v5877_v8, %s6359_s29 }
0x15bb   : > { %4659 = vmatmul.mubr.msk.f32.vlgmr.msra.gmra.mrb[66].mxu1 %vm429_vm4, %v3143_v35 }
0x15bc   : > { %4661 = vmatprep.mubr.msk.f32.mxu1 %vm5241_vm3, %v5242_v52 }
0x15be   : > { %3144 = vrot.lane.b32.xlu1 %v5887_v14, %s6358_s28 }
0x15c2   : > { %3146 = vrot.lane.b32.xlu1 %v5898_v18, %s6358_s28  ;;  %s6305_s28 = scalar_lea.hbm %s6349_s2, %s4047_s21 }
0x1636   : > { %v2939_v39 = vpop.xlane.xlu1 %2938 }
0x1637   : > { %5144 = vrcp.f32 %v2939_v39 }
0x163a   : > { %v5039_v8 = vpop.permute.xlu1 %5038  ;;  %v2942_v14 = vpop.xlane.xlu0 %2941 }
0x163b   : > { %5146 = vrcp.f32 %v2942_v14  ;;  %v5041_v20 = vunpack.i.h.bf16 %v5039_v8  ;;  %v5040_v23 = vunpack.i.l.bf16 %v5039_v8 }
0x163d   : > { %v4870_v45 = vpack.c.bf16 %v5041_v20, %v5040_v23 }
0x163e   : > { %v3145_v22 = vpop.permute.xlu1 %3144  ;;  %v2945_v18 = vpop.xlane.xlu0 %2944 }
0x163f   : > { %4662 = vmatmul.mubr.msk.f32.gmra.mrb[68].mxu1 %vm429_vm4, %v3145_v22  ;;  %5148 = vrcp.f32 %v2945_v18 }
0x1640   : > { %4664 = vmatprep.mubr.msk.f32.mxu1 %vm5241_vm3, %v5242_v52 }
0x1641   : > { %v5145_v40 = vpop.eup %5144 }
0x1642   : > { %v3147_v36 = vpop.permute.xlu1 %3146 }
0x1643   : > { %4665 = vmatmul.mubr.msk.f32.gmra.mrb[70].mxu1 %vm429_vm4, %v3147_v36 }
0x1644   : > { %4684 = vmatprep.mubr.msk.f32.mxu1 %vm5241_vm3, %v5242_v52 }
0x1645   : > { %v5147_v46 = vpop.eup %5146 }
0x1649   : > { %v5149_v50 = vpop.eup %5148 }
0x167d   : > { %v3030_v41 = vpop.f32.mrb[60].mxu1 }
0x167e   : > { %v3045_v42 = vmul.f32 %v5145_v40, %v3030_v41  ;;  %v4634_v44 = vpop.f32.mrb[61].mxu1 }
0x1680   : > { %4644 = vmatmul.mubr.msk.f32.vlgmr.msra.gmra.mrb[80].mxu0 %vm429_vm4, %v3045_v42  ;;  %v6137_v42 = vld [vmem:[%s6348_s1 + $0x1d0] ss:$0 sm:$0xff] }
0x1681   : > { %4871 = vmatpush3.bf16.msra.mxu0 %v4870_v45  ;;  %v3035_v47 = vpop.f32.mrb[62].mxu1  ;;  %4646 = vmatprep.mubr.msk.f32.mxu0 %vm5241_vm3, %v5242_v52 }
0x1682   : > { %v3047_v48 = vmul.f32 %v5147_v46, %v3035_v47  ;;  %v4637_v17 = vpop.f32.mrb[63].mxu1  ;;  %4671 = vmatprep.subr.mxu0 %v5242_v52 }
0x1684   : > { %4647 = vmatmul.mubr.msk.f32.gmra.mrb[82].mxu0 %vm429_vm4, %v3047_v48 }
0x1685   : > { %v3040_v53 = vpop.f32.mrb[64].mxu1  ;;  %4649 = vmatprep.mubr.msk.f32.mxu0 %vm5241_vm3, %v5242_v52 }
0x1686   : > { %v3049_v54 = vmul.f32 %v5149_v50, %v3040_v53  ;;  %v4640_v19 = vpop.f32.mrb[65].mxu1 }
0x1688   : > { %4650 = vmatmul.mubr.msk.f32.gmra.mrb[84].mxu0 %vm429_vm4, %v3049_v54 }
0x1689   : > { %4673 = vmatprep.mubr.msk.f32.mxu0 %vm5241_vm3, %v5242_v52 }
0x168e   : > { %v3232_v55 = vpop.f32.mrb[66].mxu1 }
0x168f   : > { %v3233_v56 = vadd.f32 %v3232_v55, %v5454_v43  ;;  %v4660_v58 = vpop.f32.mrb[67].mxu1 }
0x1690   : > { %v3535_v58 = vld [vmem:[%s6348_s1 + $0x1e8] sm:$0xff] }
0x1691   : > { %v3246_v59 = vsel %vm525_vm7, %v3233_v56, -inf }
0x1692   : > { %3247 = vmax.xlane.f32.xlu0 %v3246_v59  ;;  %v3536_v59 = vld [vmem:[%s6348_s1 + $0x1f0] sm:$0xff] }
0x16a8   : > { %3277 = vrot.lane.b32.xlu0 %v5879_v12, %s6359_s29  ;;  %s3846_s29 = scalar_lea.sflag [#allocation3], %s134_s6 }
0x1712   : > { %v3237_v60 = vpop.f32.mrb[68].mxu1 }
0x1713   : > { %v3238_v61 = vadd.f32 %v3237_v60, %v5454_v43  ;;  %v4663_v57 = vpop.f32.mrb[69].mxu1  ;;  %v4873_v60 = vpack.c.bf16 %v3536_v59, %v3535_v58 }
0x1714   : > { %v3538_v57 = vld [vmem:[%s6348_s1 + $0x200] sm:$0xff] }
0x1715   : > { %v3249_v63 = vsel %vm525_vm7, %v3238_v61, -inf }
0x1716   : > { %3250 = vmax.xlane.f32.xlu0 %v3249_v63  ;;  %v3242_v62 = vpop.f32.mrb[70].mxu1 }
0x1717   : > { %v3243_v3 = vadd.f32 %v3242_v62, %v5454_v43  ;;  %v4666_v0 = vpop.f32.mrb[71].mxu1  ;;  %v2163_v43 = vld [vmem:[%s6348_s1 + $0x1c8] sm:$0xff]  ;;  %v3648_v62 = vld [vmem:[%s6348_s1 + $0x210] sm:$0xff] }
0x1718   : > { %4683 = vmatpush3.msra.mxu1 %v2163_v43  ;;  %v3650_v0 = vld [vmem:[%s6348_s1 + $0x220] sm:$0xff] }
0x1719   : > { %v3252_v1 = vsel %vm525_vm7, %v3243_v3, -inf  ;;  %4878 = vmatprep.subr.bf16.mxu1 %v5240_v49 }
0x171a   : > { %3253 = vmax.xlane.f32.xlu0 %v3252_v1 }
0x171f   : > { %v3248_v2 = vpop.xlane.xlu0 %3247 }
0x1720   : > { %v3255_v5 = vsub.f32 %v3233_v56, %v3248_v2  ;;  %v3651_v2 = vld [vmem:[%s6348_s1 + $0x228] sm:$0xff] }
0x1722   : > { %v3258_v6 = vmul.f32 1.442695, %v3255_v5  ;;  %v4882_v5 = vpack.c.bf16 %v3651_v2, %v3650_v0 }
0x1723   : > { %v3278_v7 = vpop.permute.xlu0 %3277 }
0x1724   : > { %5150 = vpow2.f32 %v3258_v6  ;;  %4672 = vmatpush3.msra.mxu0 %v3278_v7 }
0x1725   : > { %4872 = vmatprep.subr.bf16.mxu0 %v5240_v49 }
0x172e   : > { %v5151_v12 = vpop.eup %5150 }
0x172f   : > { %4674 = vmatmul.mubr.msk.f32.vlgmr.msra.gmra.mrb[86].mxu0 %vm525_vm7, %v5151_v12  ;;  %v3264_v10 = vsel %vm525_vm7, %v5151_v12, 0.0 }
0x1730   : > { %3265 = vadd.xlane.f32.xlu1 %v3264_v10  ;;  %4676 = vmatprep.mubr.msk.f32.mxu0 %vm5241_vm3, %v5242_v52 }
0x1731   : > { %4874 = vmatpush3.bf16.msra.mxu0 %v4873_v60 }
0x1732   : > { %4875 = vmatprep.subr.bf16.mxu0 %v5240_v49 }
0x1753   : > { %v3125_v13 = vpop.f32.mrb[80].mxu0 }
0x1754   : > { %v3139_v24 = vadd.f32 %v3125_v13, %v6035_v38  ;;  %v4645_v25 = vpop.f32.mrb[81].mxu0  ;;  %v6183_v13 = vld [vmem:[%s6348_s1 + $0x1d8] ss:$0 sm:$0xff] }
0x1757   : > { %v3130_v21 = vpop.f32.mrb[82].mxu0 }
0x1758   : > { %v6120_v16 = vadd.f32 %v3130_v21, %v6037_v15  ;;  %v4648_v27 = vpop.f32.mrb[83].mxu0  ;;  %v6188_v21 = vld [vmem:[%s6348_s1 + $0x1e0] ss:$0 sm:$0xff] }
0x175b   : > { %v3135_v26 = vpop.f32.mrb[84].mxu0 }
0x175c   : > { %v6123_v29 = vadd.f32 %v3135_v26, %v6041_v51  ;;  %v4651_v30 = vpop.f32.mrb[85].mxu0 }
0x17a3   : > { %v3251_v32 = vpop.xlane.xlu0 %3250 }
0x17a4   : > { %v3256_v33 = vsub.f32 %v3238_v61, %v3251_v32  ;;  %v3537_v61 = vld [vmem:[%s6348_s1 + $0x1f8] sm:$0xff] }
0x17a5   : > { %v4876_v63 = vpack.c.bf16 %v3538_v57, %v3537_v61 }
0x17a6   : > { %v3260_v28 = vmul.f32 1.442695, %v3256_v33 }
0x17a7   : > { %v3254_v37 = vpop.xlane.xlu0 %3253  ;;  %4877 = vmatpush3.bf16.msra.mxu0 %v4876_v63 }
0x17a8   : > { %5152 = vpow2.f32 %v3260_v28  ;;  %v3257_v34 = vsub.f32 %v3243_v3, %v3254_v37  ;;  %4902 = vmatprep.subr.bf16.mxu0 %v5240_v49  ;;  %v3649_v3 = vld [vmem:[%s6348_s1 + $0x218] sm:$0xff] }
0x17a9   : > { %v4879_v1 = vpack.c.bf16 %v3649_v3, %v3648_v62 }
0x17aa   : > { %v3262_v35 = vmul.f32 1.442695, %v3257_v34 }
0x17ac   : > { %5154 = vpow2.f32 %v3262_v35 }
0x17b2   : > { %v5153_v38 = vpop.eup %5152 }
0x17b3   : > { %4677 = vmatmul.mubr.msk.f32.gmra.mrb[88].mxu0 %vm525_vm7, %v5153_v38  ;;  %v3267_v47 = vsel %vm525_vm7, %v5153_v38, 0.0  ;;  %v3652_v38 = vld [vmem:[%s6348_s1 + $0x230] sm:$0xff] }
0x17b4   : > { %4679 = vmatprep.mubr.msk.f32.mxu0 %vm5241_vm3, %v5242_v52 }
0x17b6   : > { %v5155_v15 = vpop.eup %5154 }
0x17b7   : > { %4680 = vmatmul.mubr.msk.f32.gmra.mrb[90].mxu0 %vm525_vm7, %v5155_v15 }
0x17b8   : > { %4701 = vmatprep.mubr.msk.f32.mxu0 %vm5241_vm3, %v5242_v52 }
0x17bd   : > { %v3266_v51 = vpop.xlane.xlu1 %3265 }
0x17be   : > { %5156 = vrcp.f32 %v3266_v51 }
0x17c8   : > { %v5157_v31 = vpop.eup %5156 }
0x1802   : > { %v3357_v39 = vpop.f32.mrb[86].mxu0 }
0x1803   : > { %v3372_v8 = vmul.f32 %v5157_v31, %v3357_v39  ;;  %v4675_v22 = vpop.f32.mrb[87].mxu0  ;;  %v3656_v39 = vld [vmem:[%s6348_s1 + $0x250] sm:$0xff] }
0x1805   : > { %4685 = vmatmul.mubr.msk.f32.vlgmr.msra.gmra.mrb[72].mxu1 %vm429_vm4, %v3372_v8  ;;  %v3657_v8 = vld [vmem:[%s6348_s1 + $0x258] sm:$0xff] }
0x1806   : > { %4687 = vmatprep.mubr.msk.f32.mxu1 %vm5241_vm3, %v5242_v52  ;;  %4880 = vmatpush3.bf16.msra.mxu1 %v4879_v1  ;;  %v4891_v22 = vpack.c.bf16 %v3657_v8, %v3656_v39 }
0x1807   : > { %4881 = vmatprep.subr.bf16.mxu1 %v5240_v49 }
0x180a   : > { %4883 = vmatpush3.bf16.msra.mxu1 %v4882_v5 }
0x180b   : > { %4884 = vmatprep.subr.bf16.mxu1 %v5240_v49 }
0x1886   : > { %v3362_v36 = vpop.f32.mrb[88].mxu0 }
0x1887   : > { %v4678_v14 = vpop.f32.mrb[89].mxu0 }
0x1888   : > { %v3659_v14 = vld [vmem:[%s6348_s1 + $0x268] sm:$0xff] }
0x188a   : > { %v3367_v18 = vpop.f32.mrb[90].mxu0 }
0x188b   : > { %v4681_v20 = vpop.f32.mrb[91].mxu0 }
0x188c   : > { %v3660_v20 = vld [vmem:[%s6348_s1 + $0x270] sm:$0xff] }
0x18d8   : > { %v3452_v23 = vpop.f32.mrb[72].mxu1 }
0x18d9   : > { %v3466_v40 = vadd.f32 %v3452_v23, %v3139_v24  ;;  %v4686_v41 = vpop.f32.mrb[73].mxu1  ;;  %v3661_v23 = vld [vmem:[%s6348_s1 + $0x278] sm:$0xff] }
0x18da   : > { %v3662_v41 = vld [vmem:[%s6348_s1 + $0x280] sm:$0xff] }
0x18db   : > { %v3469_v44 = vadd.f32 %v3466_v40, %v5825_v4  ;;  %v3270_v4 = vsel %vm525_vm7, %v5155_v15, 0.0  ;;  %v3653_v15 = vld [vmem:[%s6348_s1 + $0x238] sm:$0xff]  ;;  %v4897_v40 = vpack.c.bf16 %v3661_v23, %v3660_v20 }
0x18dc   : > { %v4885_v51 = vpack.c.bf16 %v3653_v15, %v3652_v38 }
0x18dd   : > { %v6141_v45 = vadd.f32 %v6137_v42, %v3469_v44  ;;  %v3663_v44 = vld [vmem:[%s6348_s1 + $0x288] sm:$0xff] }
0x18de   : > { %4886 = vmatpush3.bf16.msra.mxu1 %v4885_v51 }
0x18df   : > { %v3482_v46 = vsel %vm260_vm2, %v6141_v45, 0.0  ;;  %4887 = vmatprep.subr.bf16.mxu1 %v5240_v49 }
0x18e0   : > { %3483 = vadd.xlane.f32.xlu0 %v3482_v46  ;;  %v4900_v46 = vpack.c.bf16 %v3663_v44, %v3662_v41  ;;  %v3767_v41 = vld [vmem:[%s6348_s1 + $0x2b0] sm:$0xff] }
0x18e4   : > { %3268 = vadd.xlane.f32.xlu0 %v3267_v47 }
0x196d   : > { %v3484_v48 = vpop.xlane.xlu0 %3483 }
0x196e   : > { %v3491_v17 = vmul.f32 0.03125, %v3484_v48 }
0x1970   : > { %v3494_v50 = vsub.f32 %v6141_v45, %v3491_v17 }
0x1971   : > { %v3269_v53 = vpop.xlane.xlu0 %3268 }
0x1972   : > { %5158 = vrcp.f32 %v3269_v53  ;;  %v3497_v54 = vmul.f32 %v3494_v50, %v3494_v50 }
0x1974   : > { %v3500_v19 = vsel %vm260_vm2, %v3497_v54, 0.0  ;;  %v6247_v54 = vld [vmem:[%s6348_s1 + $0x208] ss:$0 sm:$0xff] }
0x1975   : > { %3501 = vadd.xlane.f32.xlu1 %v3500_v19 }
0x1979   : > { %3271 = vadd.xlane.f32.xlu1 %v3270_v4 }
0x197c   : > { %v5159_v55 = vpop.eup %5158 }
0x197d   : > { %v3374_v56 = vmul.f32 %v5159_v55, %v3362_v36  ;;  %v3658_v36 = vld [vmem:[%s6348_s1 + $0x260] sm:$0xff] }
0x197f   : > { %4688 = vmatmul.mubr.msk.f32.gmra.mrb[74].mxu1 %vm429_vm4, %v3374_v56 }
0x1980   : > { %4690 = vmatprep.mubr.msk.f32.mxu1 %vm5241_vm3, %v5242_v52 }
0x1a02   : > { %v3502_v6 = vpop.xlane.xlu1 %3501 }
0x1a03   : > { %v3509_v7 = vmul.f32 0.03125, %v3502_v6 }
0x1a05   : > { %v3512_v12 = vadd.f32 1e-05, %v3509_v7 }
0x1a06   : > { %v3272_v10 = vpop.xlane.xlu1 %3271 }
0x1a07   : > { %5160 = vrsqrt.f32 %v3512_v12 }
0x1a08   : > { %5162 = vrcp.f32 %v3272_v10 }
0x1a11   : > { %v5161_v43 = vpop.eup %5160 }
0x1a12   : > { %v5163_v24 = vpop.eup %5162  ;;  %v3518_v25 = vmul.f32 %v5161_v43, %v3494_v50 }
0x1a13   : > { %v3376_v27 = vmul.f32 %v5163_v24, %v3367_v18  ;;  %v4894_v18 = vpack.c.bf16 %v3659_v14, %v3658_v36 }
0x1a14   : > { %v3525_v26 = vmul.f32 %v6183_v13, %v3518_v25 }
0x1a15   : > { %4691 = vmatmul.mubr.msk.f32.gmra.mrb[76].mxu1 %vm429_vm4, %v3376_v27  ;;  %v4045_v27 = vld [vmem:[%s6348_s1 + $0x290] ss:$0 sm:$0xff] }
0x1a16   : > { %v3532_v30 = vadd.f32 %v6188_v21, %v3525_v26  ;;  %4742 = vmatprep.mubr.msk.f32.mxu1 %vm5241_vm3, %v5242_v52 }
0x1a18   : > { %4702 = vmatmul.mubr.msk.f32.vlgmr.msra.gmra.mrb[92].mxu0 %vm260_vm2, %v3532_v30 }
0x1a19   : > { %4704 = vmatprep.mubr.msk.f32.mxu0 %vm5241_vm3, %v5242_v52 }
0x1a52   : > { %v3457_v32 = vpop.f32.mrb[74].mxu1 }
0x1a53   : > { %v3467_v33 = vadd.f32 %v3457_v32, %v6120_v16  ;;  %v4689_v28 = vpop.f32.mrb[75].mxu1  ;;  %v3655_v16 = vld [vmem:[%s6348_s1 + $0x248] sm:$0xff] }
0x1a55   : > { %v3470_v37 = vadd.f32 %v3467_v33, %v5830_v9  ;;  %v3654_v9 = vld [vmem:[%s6348_s1 + $0x240] sm:$0xff] }
0x1a56   : > { %v4888_v31 = vpack.c.bf16 %v3655_v16, %v3654_v9 }
0x1a57   : > { %v3478_v34 = vadd.f32 %v6137_v42, %v3470_v37 }
0x1a58   : > { %4889 = vmatpush3.bf16.msra.mxu1 %v4888_v31 }
0x1a59   : > { %v3485_v35 = vsel %vm260_vm2, %v3478_v34, 0.0  ;;  %4890 = vmatprep.subr.bf16.mxu1 %v5240_v49 }
0x1a5a   : > { %3486 = vadd.xlane.f32.xlu0 %v3485_v35 }
0x1a5c   : > { %4892 = vmatpush3.bf16.msra.mxu1 %v4891_v22 }
0x1a5d   : > { %4893 = vmatprep.subr.bf16.mxu1 %v5240_v49 }
0x1a60   : > { %4895 = vmatpush3.bf16.msra.mxu1 %v4894_v18 }
0x1a61   : > { %4896 = vmatprep.subr.bf16.mxu1 %v5240_v49 }
0x1a64   : > { %4898 = vmatpush3.bf16.msra.mxu1 %v4897_v40  ;;  %v3766_v40 = vld [vmem:[%s6348_s1 + $0x2a8] sm:$0xff] }
0x1a65   : > { %4899 = vmatprep.subr.bf16.mxu1 %v5240_v49  ;;  %v4903_v44 = vpack.c.bf16 %v3767_v41, %v3766_v40 }
0x1a67   : > { %4904 = vmatpush3.bf16.msra.mxu0 %v4903_v44 }
0x1a68   : > { %4901 = vmatpush3.bf16.msra.mxu1 %v4900_v46  ;;  %4905 = vmatprep.subr.bf16.mxu0 %v5240_v49  ;;  %v3768_v46 = vld [vmem:[%s6348_s1 + $0x2b8] sm:$0xff] }
0x1ae7   : > { %v3487_v47 = vpop.xlane.xlu0 %3486 }
0x1ae8   : > { %v3492_v48 = vmul.f32 0.03125, %v3487_v47  ;;  %v3462_v17 = vpop.f32.mrb[76].mxu1 }
0x1ae9   : > { %v3468_v50 = vadd.f32 %v3462_v17, %v6123_v29  ;;  %v4692_v53 = vpop.f32.mrb[77].mxu1 }
0x1aea   : > { %v3495_v19 = vsub.f32 %v3478_v34, %v3492_v48 }
0x1aeb   : > { %v3471_v4 = vadd.f32 %v3468_v50, %v5835_v11  ;;  %v3619_v55 = vpop.f32.mrb[92].mxu0 }
0x1aec   : > { %v3620_v56 = vadd.f32 %v6247_v54, %v3619_v55  ;;  %v4703_v58 = vpop.f32.mrb[93].mxu0  ;;  %v3498_v59 = vmul.f32 %v3495_v19, %v3495_v19 }
0x1aed   : > { %v3479_v60 = vadd.f32 %v6137_v42, %v3471_v4 }
0x1aee   : > { %v3636_v61 = vmul.f32 0.70710677, %v3620_v56  ;;  %v3503_v57 = vsel %vm260_vm2, %v3498_v59, 0.0  ;;  %v3633_v62 = vmul.f32 0.5, %v3620_v56  ;;  %v3748_v56 = vld [vmem:[%s6348_s1 + $0x298] sm:$0x1] }
0x1aef   : > { %3504 = vadd.xlane.f32.xlu0 %v3503_v57  ;;  %v3488_v29 = vsel %vm260_vm2, %v3479_v60, 0.0 }
0x1af0   : > { %5164 = verf.f32 %v3636_v61  ;;  %3489 = vadd.xlane.f32.xlu1 %v3488_v29 }
0x1afa   : > { %v5165_v63 = vpop.eup %5164 }
0x1afb   : > { %v3642_v3 = vadd.f32 1.0, %v5165_v63 }
0x1afd   : > { %v3645_v0 = vmul.f32 %v3642_v3, %v3633_v62 }
0x1aff   : > { %4743 = vmatmul.mubr.f32.vlgmr.msra.gmra.mrb[78].mxu1 %v3645_v0  ;;  %v3770_v0 = vld [vmem:[%s6348_s1 + $0x2c8] sm:$0x1] }
0x1b00   : > { %4745 = vmatprep.mubr.msk.f32.mxu1 %vm5241_vm3, %v5242_v52 }
0x1b7c   : > { %v3505_v11 = vpop.xlane.xlu0 %3504 }
0x1b7d   : > { %v3510_v1 = vmul.f32 0.03125, %v3505_v11  ;;  %v3490_v2 = vpop.xlane.xlu1 %3489 }
0x1b7e   : > { %v3493_v42 = vmul.f32 0.03125, %v3490_v2 }
0x1b7f   : > { %v3513_v5 = vadd.f32 1e-05, %v3510_v1 }
0x1b80   : > { %v3496_v6 = vsub.f32 %v3479_v60, %v3493_v42 }
0x1b81   : > { %5166 = vrsqrt.f32 %v3513_v5 }
0x1b82   : > { %v3499_v7 = vmul.f32 %v3496_v6, %v3496_v6 }
0x1b84   : > { %v3506_v12 = vsel %vm260_vm2, %v3499_v7, 0.0 }
0x1b85   : > { %3507 = vadd.xlane.f32.xlu1 %v3506_v12 }
0x1b8b   : > { %v5167_v10 = vpop.eup %5166 }
0x1b8c   : > { %v3519_v43 = vmul.f32 %v5167_v10, %v3495_v19 }
0x1b8e   : > { %v3526_v24 = vmul.f32 %v6183_v13, %v3519_v43 }
0x1b90   : > { %v3533_v25 = vadd.f32 %v6188_v21, %v3526_v24 }
0x1b92   : > { %4705 = vmatmul.mubr.msk.f32.gmra.mrb[94].mxu0 %vm260_vm2, %v3533_v25 }
0x1b93   : > { %4707 = vmatprep.mubr.msk.f32.mxu0 %vm5241_vm3, %v5242_v52 }
0x1bd2   : > { %v3735_v26 = vpop.f32.mrb[78].mxu1 }
0x1bd3   : > { %v3736_v30 = vadd.f32 %v4045_v27, %v3735_v26  ;;  %v4744_v32 = vpop.f32.mrb[79].mxu1 }
0x1bd5   : > { %v3747_v33 = vadd.f32 %v3736_v30, %v6141_v45 }
0x1bd7   : > { %v3751_v28 = vsel %vm3750_vm8, %v3747_v33, 0.0 }
0x1bd8   : > { %3752 = vadd.xlane.f32.xlu0 %v3751_v28 }
0x1c12   : > { %v3508_v37 = vpop.xlane.xlu1 %3507 }
0x1c13   : > { %v3511_v34 = vmul.f32 0.03125, %v3508_v37 }
0x1c15   : > { %v3514_v35 = vadd.f32 1e-05, %v3511_v34 }
0x1c17   : > { %5168 = vrsqrt.f32 %v3514_v35 }
0x1c21   : > { %v5169_v38 = vpop.eup %5168 }
0x1c22   : > { %v3520_v15 = vmul.f32 %v5169_v38, %v3496_v6 }
0x1c24   : > { %v3527_v51 = vmul.f32 %v6183_v13, %v3520_v15 }
0x1c26   : > { %v3534_v9 = vadd.f32 %v6188_v21, %v3527_v51 }
0x1c28   : > { %4708 = vmatmul.mubr.msk.f32.gmra.mrb[96].mxu0 %vm260_vm2, %v3534_v9 }
0x1c29   : > { %4759 = vmatprep.mubr.msk.f32.mxu0 %vm5241_vm3, %v5242_v52 }
0x1c65   : > { %v3624_v16 = vpop.f32.mrb[94].mxu0  ;;  %v3753_v45 = vpop.xlane.xlu0 %3752 }
0x1c66   : > { %v3625_v31 = vadd.f32 %v6247_v54, %v3624_v16  ;;  %v3754_v39 = vmul.f32 0.03125, %v3753_v45  ;;  %v4706_v8 = vpop.f32.mrb[95].mxu0 }
0x1c68   : > { %v3637_v22 = vmul.f32 0.70710677, %v3625_v31  ;;  %v3755_v36 = vsub.f32 %v3747_v33, %v3754_v39  ;;  %v3634_v21 = vmul.f32 0.5, %v3625_v31 }
0x1c6a   : > { %5170 = verf.f32 %v3637_v22  ;;  %v3756_v14 = vmul.f32 %v3755_v36, %v3755_v36 }
0x1c6c   : > { %v3757_v18 = vsel %vm3750_vm8, %v3756_v14, 0.0 }
0x1c6d   : > { %3758 = vadd.xlane.f32.xlu1 %v3757_v18 }
0x1c74   : > { %v5171_v13 = vpop.eup %5170 }
0x1c75   : > { %v3643_v20 = vadd.f32 1.0, %v5171_v13 }
0x1c77   : > { %v3646_v23 = vmul.f32 %v3643_v20, %v3634_v21 }
0x1c79   : > { %4746 = vmatmul.mubr.f32.gmra.mrb[80].mxu1 %v3646_v23 }
0x1c7a   : > { %4748 = vmatprep.mubr.msk.f32.mxu1 %vm5241_vm3, %v5242_v52  ;;  %v3769_v52 = vld [vmem:[%s6348_s1 + $0x2c0] sm:$0xff] }
0x1c7b   : > { %v4906_v47 = vpack.c.bf16 %v3769_v52, %v3768_v46 }
0x1c7d   : > { %4907 = vmatpush3.bf16.msra.mxu0 %v4906_v47 }
0x1cfa   : > { %v3759_v48 = vpop.xlane.xlu1 %3758 }
0x1cfb   : > { %v3629_v17 = vpop.f32.mrb[96].mxu0  ;;  %v3760_v50 = vmul.f32 0.03125, %v3759_v48 }
0x1cfc   : > { %v3630_v53 = vadd.f32 %v6247_v54, %v3629_v17  ;;  %v4709_v19 = vpop.f32.mrb[97].mxu0  ;;  %v3749_v54 = vld [vmem:[%s6348_s1 + $0x2a0] sm:$0x1] }
0x1cfd   : > { %v3761_v4 = vadd.f32 1e-05, %v3760_v50 }
0x1cfe   : > { %v3638_v55 = vmul.f32 0.70710677, %v3630_v53  ;;  %v3635_v60 = vmul.f32 0.5, %v3630_v53 }
0x1cff   : > { %5172 = vrsqrt.f32 %v3761_v4 }
0x1d00   : > { %5174 = verf.f32 %v3638_v55 }
0x1d09   : > { %v5173_v49 = vpop.eup %5172 }
0x1d0a   : > { %v5175_v58 = vpop.eup %5174  ;;  %v3763_v59 = vmul.f32 %v5173_v49, %v3755_v36 }
0x1d0b   : > { %v3644_v61 = vadd.f32 1.0, %v5175_v58 }
0x1d0c   : > { %v3764_v57 = vmul.f32 %v3763_v59, %v3748_v56 }
0x1d0d   : > { %v3647_v29 = vmul.f32 %v3644_v61, %v3635_v60 }
0x1d0e   : > { %v3765_v63 = vadd.f32 %v3764_v57, %v3749_v54 }
0x1d0f   : > { %4749 = vmatmul.mubr.f32.gmra.mrb[82].mxu1 %v3647_v29 }
0x1d10   : > { %4760 = vmatmul.mubr.msk.f32.vlgmr.msra.gmra.mrb[98].mxu0 %vm260_vm2, %v3765_v63 }
0x1d4c   : > { %v3740_v62 = vpop.f32.mrb[80].mxu1 }
0x1d4d   : > { %v4747_v3 = vpop.f32.mrb[81].mxu1 }
0x1de2   : > { %v3744_v11 = vpop.f32.mrb[82].mxu1 }
0x1de3   : > { %v4750_v1 = vpop.f32.mrb[83].mxu1  ;;  %v3840_v2 = vpop.f32.mrb[98].mxu0 }
0x1de4   : > { %v3841_v42 = vadd.f32 %v3840_v2, %v3770_v0  ;;  %v4761_v5 = vpop.f32.mrb[99].mxu0 }
0x1de6   : > { %3844 = vst [vmem:[%s135_s24] sm:$0x1] %v3841_v42 }
0x1de7   : > { %5189 = shalt.err (!%p5186_p3)
}
0x1de8   : > { %s5190_s16 = scalar_lea.hbm %s6305_s28, 16  ;;  %s5194_s23 = scalar_lea.hbm %s6349_s2, 32 }
0x1de9   : > { %p5191_p4 = scmp.ne.s32.totalorder %s6305_s28, %s5190_s16  ;;  %p5195_p9 = scmp.lt.u32.totalorder %s6305_s28, %s6349_s2 }
0x1dea   : > { %p5196_p10 = scmp.lt.u32.totalorder %s5194_s23, %s5190_s16  ;;  %p5198_p12 = scmp.lt.u32.totalorder %s5190_s16, %s6305_s28 }
0x1deb   : > { %p5192_p7 = pnand %p5191_p4, %p5309_p5 }
0x1dec   : > { %p5197_p11 = por %p5196_p10, %p5195_p9 }
0x1ded   : > { %p5193_p8 = pneg %p5192_p7 }
0x1dee   : > { %p5199_p13 = por %p5198_p12, %p5197_p11 }
0x1df0   : > { %p5200_p0 = pnand %p5199_p13, %p5193_p8 }
0x1df2   : > { %5203 = shalt.err (!%p5200_p0)
}
0x1df3   : > { %4908 = dma.vmem_to_hbm [thread:$0]  (%p5309_p5), %s6307_s25, 16, %s6305_s28, %s3846_s29  }
0x1df4 PF: > { %p4914_p1 = scmp.ge.s32.totalorder %s5238_s12, 2  ;;  %s3870_s6 = sand.u32 1, %s5226_s9  }
0x1df5   : > { %s3871_s7 = scalar_lea.sflag [#allocation3], %s3870_s6 }
0x1df6   : > { %p4911_p2 = pnand %p4914_p1, %p5313_p6 }
0x1df8   : > { %5221 = dma.done.wait (!%p4911_p2), %s3871_s7, 16  }
0x1df9   : > { %5223 = vsyncadd (!%p4911_p2), %s3871_s7, 4294967280  ;;  %p12_p3 = scmp.ge.s32.totalorder %s5296_s15, 4   ;;  %s6360_s9 = smov %s5230_s10 }
0x1dfa   : > { %s6361_s10 = smov %s5234_s11  ;;  %s6362_s11 = smov %s5307_s18 }
0x1dfb   : > { %s6363_s12 = smov %s5296_s15  ;;  %14 = sbr.rel (!%p12_p3) target bundleno = 3 (0x3), region = 63 }
0x1e02   :  { %3875 = vsyncpa [#allocation3], 1 }
0x1e03   :  { %3877 = vsyncpa [#allocation3 + $0x1], 1 }

</bundles_post_ra>
